<compile_context>
chip_gen: v7x
topology: tpu7x:2x2x1
jax: 0.10.0
libtpu: 0.0.40
codegen_flags: <defaults>
</compile_context>

<pallas_src>
import functools

import jax
import jax.numpy as jnp
from jax.experimental import pallas as pl
from jax.experimental.pallas import tpu as pltpu

EPS = 1e-5  # BatchNorm eps (PyTorch default)


# ----------------------------------------------------------------------- helpers
def _pick_row_block(n, max_rows=1024):
    """Largest row block <= max_rows dividing n (8-aligned when actually tiling)."""
    if n <= max_rows:
        return n
    for r in range(max_rows, 7, -8):
        if n % r == 0:
            return r
    return n


def _bn_fold(sum_vec, sq_vec, n, gamma, beta):
    """Training-mode BatchNorm folded to per-channel scale/shift from partial sums."""
    mean = sum_vec / n
    var = sq_vec / n - mean * mean
    scale = gamma / jnp.sqrt(var + EPS)
    shift = beta - mean * scale
    return scale, shift


# --------------------------------------------------------------- kernel A: stem
def _stem_kernel(x_ref, w_ref, b_ref, t1_ref, tsc_ref, s_ref, q_ref, *, Cmid):
    # conv1 and shortcut conv share the same input rows -> single matmul with the
    # concatenated weight [w_conv1 | w_sc] (wider MXU N, one read of x).
    y = jnp.dot(x_ref[...], w_ref[...], preferred_element_type=jnp.float32) + b_ref[...]
    t1_ref[...] = y[:, :Cmid]
    tsc_ref[...] = y[:, Cmid:]
    # BN1 / BNsc partial stats for this row block (replicated over 8 sublanes).
    cs = jnp.sum(y, axis=0, keepdims=True)
    cq = jnp.sum(y * y, axis=0, keepdims=True)
    s_ref[0] = jnp.broadcast_to(cs, s_ref.shape[1:])
    q_ref[0] = jnp.broadcast_to(cq, q_ref.shape[1:])


def stem(x2d, wcat, bcat, Cmid, Cout, row_blk):
    N, Cin = x2d.shape
    Ctot = Cmid + Cout
    nb = N // row_blk
    return pl.pallas_call(
        functools.partial(_stem_kernel, Cmid=Cmid),
        out_shape=(jax.ShapeDtypeStruct((N, Cmid), jnp.float32),
                   jax.ShapeDtypeStruct((N, Cout), jnp.float32),
                   jax.ShapeDtypeStruct((nb, 8, Ctot), jnp.float32),
                   jax.ShapeDtypeStruct((nb, 8, Ctot), jnp.float32)),
        grid=(nb,),
        in_specs=[pl.BlockSpec((row_blk, Cin), lambda i: (i, 0)),
                  pl.BlockSpec((Cin, Ctot), lambda i: (0, 0)),
                  pl.BlockSpec((1, Ctot), lambda i: (0, 0))],
        out_specs=(pl.BlockSpec((row_blk, Cmid), lambda i: (i, 0)),
                   pl.BlockSpec((row_blk, Cout), lambda i: (i, 0)),
                   pl.BlockSpec((1, 8, Ctot), lambda i: (i, 0, 0)),
                   pl.BlockSpec((1, 8, Ctot), lambda i: (i, 0, 0))),
        compiler_params=pltpu.CompilerParams(dimension_semantics=("parallel",)),
    )(x2d, wcat, bcat)


# ------------------------------------------------------------- kernel B: SKConv
def _skconv_kernel(t1_ref, s1_ref, sh1_ref, w_ref, b_ref,
                   wf1_ref, bf1_ref, wf2_ref, bf2_ref,
                   v_ref, vs_ref, vq_ref, shift_ref, *, H, W, Cmid, K):
    P = K // 2
    # BN1 affine on this batch tile.  The conv halo stays exactly zero, matching
    # PyTorch's "BatchNorm, then zero-padded conv" ordering (so the BN shift cannot
    # be folded into the conv bias without boundary error).
    x = t1_ref[0] * s1_ref[...] + sh1_ref[...]                      # (H, W, C)

    # Build K width-shifted, zero-padded copies once per batch; per-tap reads below
    # then slice at sublane offset 0 (no per-tap unaligned relayout).
    shift_ref[...] = jnp.zeros_like(shift_ref)
    for kw in range(K):
        src0 = max(kw - P, 0)
        dst0 = max(P - kw, 0)
        width = W - src0
        shift_ref[kw, P:P + H, dst0:dst0 + width, :] = x[:, src0:src0 + width, :]

    # 25 taps, each one MXU matmul (H*W, C) @ (C, 2C).  The 3x3 branch weights are
    # embedded in the centre taps of w_ref, so both branches share a single pass:
    # output channels [0:C] = U2 (5x5), [C:2C] = U1 (3x3).
    acc = jnp.zeros((H * W, 2 * Cmid), jnp.float32)
    for kh in range(K):
        for kw in range(K):
            win = shift_ref[kw, kh:kh + H, 0:W, :].reshape(H * W, Cmid)
            acc = acc + jnp.dot(win, w_ref[kh, kw],
                                preferred_element_type=jnp.float32)
    u = acc + b_ref[...]                                            # (H*W, 2C)

    # GAP -> fc -> ReLU -> fc -> softmax over the full M*C dim (as in the reference).
    usum = jnp.sum(u, axis=0, keepdims=True)                        # (1, 2C)
    s = (usum[:, :Cmid] + usum[:, Cmid:]) * (1.0 / (H * W))         # (1, C)
    s8 = jnp.broadcast_to(s, (8, Cmid))                             # pad M to a sublane tile
    h1 = jnp.maximum(jnp.dot(s8, wf1_ref[...],
                             preferred_element_type=jnp.float32) + bf1_ref[...], 0.0)
    z = jnp.dot(h1, wf2_ref[...], preferred_element_type=jnp.float32) + bf2_ref[...]
    z = z - jnp.max(z, axis=-1, keepdims=True)
    e = jnp.exp(z)
    z = e / jnp.sum(e, axis=-1, keepdims=True)                      # rows identical
    z1 = z[0:1, :Cmid]                                              # attention for U1 (3x3)
    z2 = z[0:1, Cmid:]                                              # attention for U2 (5x5)

    # Selective fuse: V = U1*z1 + U2*z2
    v = u[:, Cmid:] * z1 + u[:, :Cmid] * z2                         # (H*W, C)
    v_ref[0] = v.reshape(H, W, Cmid)

    # BN2 partial stats for this batch (replicated over 8 sublanes for layout).
    vs = jnp.sum(v, axis=0, keepdims=True)
    vq = jnp.sum(v * v, axis=0, keepdims=True)
    vs_ref[0] = jnp.broadcast_to(vs, vs_ref.shape[1:])
    vq_ref[0] = jnp.broadcast_to(vq, vq_ref.shape[1:])


def skconv(t1r, s1, sh1, wcomb, bcomb, wf1, bf1, wf2, bf2):
    B, H, W, Cmid = t1r.shape
    K = wcomb.shape[0]
    d = wf1.shape[1]
    MC = wf2.shape[1]
    P = K // 2
    wpp = ((W + 2 * P + 7) // 8) * 8
    ce = pl.CostEstimate(
        flops=int(2 * B * K * K * H * W * Cmid * (2 * Cmid)),
        transcendentals=int(B * 8 * MC),
        bytes_accessed=int(4 * (t1r.size + wcomb.size + 2 * t1r.size)))
    return pl.pallas_call(
        functools.partial(_skconv_kernel, H=H, W=W, Cmid=Cmid, K=K),
        out_shape=(jax.ShapeDtypeStruct((B, H, W, Cmid), jnp.float32),
                   jax.ShapeDtypeStruct((B, 8, Cmid), jnp.float32),
                   jax.ShapeDtypeStruct((B, 8, Cmid), jnp.float32)),
        grid=(B,),
        in_specs=[pl.BlockSpec((1, H, W, Cmid), lambda b: (b, 0, 0, 0)),
                  pl.BlockSpec((1, Cmid), lambda b: (0, 0)),
                  pl.BlockSpec((1, Cmid), lambda b: (0, 0)),
                  pl.BlockSpec((K, K, Cmid, 2 * Cmid), lambda b: (0, 0, 0, 0)),
                  pl.BlockSpec((1, 2 * Cmid), lambda b: (0, 0)),
                  pl.BlockSpec((Cmid, d), lambda b: (0, 0)),
                  pl.BlockSpec((1, d), lambda b: (0, 0)),
                  pl.BlockSpec((d, MC), lambda b: (0, 0)),
                  pl.BlockSpec((1, MC), lambda b: (0, 0))],
        out_specs=(pl.BlockSpec((1, H, W, Cmid), lambda b: (b, 0, 0, 0)),
                   pl.BlockSpec((1, 8, Cmid), lambda b: (b, 0, 0)),
                   pl.BlockSpec((1, 8, Cmid), lambda b: (b, 0, 0))),
        scratch_shapes=[pltpu.VMEM((K, H + 2 * P, wpp, Cmid), jnp.float32)],
        compiler_params=pltpu.CompilerParams(dimension_semantics=("parallel",)),
        cost_estimate=ce,
    )(t1r, s1, sh1, wcomb, bcomb, wf1, bf1, wf2, bf2)


# -------------------------------------------------------------- kernel C: conv2
def _conv2_kernel(v_ref, s2_ref, sh2_ref, w_ref, b_ref, o_ref, s_ref, q_ref):
    # BN2 folded into the matmul input affine; BN3 partial stats as extra outputs.
    xn = v_ref[...] * s2_ref[...] + sh2_ref[...]
    y = jnp.dot(xn, w_ref[...], preferred_element_type=jnp.float32) + b_ref[...]
    o_ref[...] = y
    cs = jnp.sum(y, axis=0, keepdims=True)
    cq = jnp.sum(y * y, axis=0, keepdims=True)
    s_ref[0] = jnp.broadcast_to(cs, s_ref.shape[1:])
    q_ref[0] = jnp.broadcast_to(cq, q_ref.shape[1:])


def conv2(v2d, s2, sh2, w, b, row_blk):
    N, Cmid = v2d.shape
    Cout = w.shape[1]
    nb = N // row_blk
    return pl.pallas_call(
        _conv2_kernel,
        out_shape=(jax.ShapeDtypeStruct((N, Cout), jnp.float32),
                   jax.ShapeDtypeStruct((nb, 8, Cout), jnp.float32),
                   jax.ShapeDtypeStruct((nb, 8, Cout), jnp.float32)),
        grid=(nb,),
        in_specs=[pl.BlockSpec((row_blk, Cmid), lambda i: (i, 0)),
                  pl.BlockSpec((1, Cmid), lambda i: (0, 0)),
                  pl.BlockSpec((1, Cmid), lambda i: (0, 0)),
                  pl.BlockSpec((Cmid, Cout), lambda i: (0, 0)),
                  pl.BlockSpec((1, Cout), lambda i: (0, 0))],
        out_specs=(pl.BlockSpec((row_blk, Cout), lambda i: (i, 0)),
                   pl.BlockSpec((1, 8, Cout), lambda i: (i, 0, 0)),
                   pl.BlockSpec((1, 8, Cout), lambda i: (i, 0, 0))),
        compiler_params=pltpu.CompilerParams(dimension_semantics=("parallel",)),
    )(v2d, s2, sh2, w, b)


# --------------------------------------------------------------- kernel D: fuse
def _fuse_kernel(a_ref, b_ref, sa_ref, ta_ref, sb_ref, tb_ref, o_ref):
    o_ref[...] = (a_ref[...] * sa_ref[...] + ta_ref[...]
                  + b_ref[...] * sb_ref[...] + tb_ref[...])


def fuse_bn_add(a2d, b2d, sa, ta, sb, tb, row_blk):
    """out = BN3(a) + BNsc(b), stored lane-dense by folding rows into lanes."""
    N, C = a2d.shape
    fold = 1
    if C < 128:
        f = 128 // C
        if C * f == 128 and N % f == 0:
            fold = f
    Nd, Cd = N // fold, C * fold
    a = a2d.reshape(Nd, Cd)                      # free host-side reshapes
    b = b2d.reshape(Nd, Cd)
    sa_t, ta_t = jnp.tile(sa, (1, fold)), jnp.tile(ta, (1, fold))
    sb_t, tb_t = jnp.tile(sb, (1, fold)), jnp.tile(tb, (1, fold))
    rb = min(row_blk, Nd)
    if Nd % rb != 0:
        rb = Nd
    nb = Nd // rb
    out = pl.pallas_call(
        _fuse_kernel,
        out_shape=jax.ShapeDtypeStruct((Nd, Cd), jnp.float32),
        grid=(nb,),
        in_specs=[pl.BlockSpec((rb, Cd), lambda i: (i, 0)),
                  pl.BlockSpec((rb, Cd), lambda i: (i, 0)),
                  pl.BlockSpec((1, Cd), lambda i: (0, 0)),
                  pl.BlockSpec((1, Cd), lambda i: (0, 0)),
                  pl.BlockSpec((1, Cd), lambda i: (0, 0)),
                  pl.BlockSpec((1, Cd), lambda i: (0, 0))],
        out_specs=pl.BlockSpec((rb, Cd), lambda i: (i, 0)),
        compiler_params=pltpu.CompilerParams(dimension_semantics=("parallel",)),
    )(a, b, sa_t, ta_t, sb_t, tb_t)
    return out.reshape(N, C)


# ----------------------------------------------------------------------- params
def grouped_to_dense(w_g, G):
    """PyTorch grouped conv weight [Cout, Cin/G, K, K] -> dense block-diag [K, K, Cin, Cout]."""
    Cout, Cin_g, K, _ = w_g.shape
    Cout_g = Cout // G
    Cin = Cin_g * G
    dense = jnp.zeros((K, K, Cin, Cout), jnp.float32)
    for g in range(G):
        blk = jnp.transpose(w_g[g * Cout_g:(g + 1) * Cout_g], (2, 3, 1, 0))
        dense = dense.at[:, :, g * Cin_g:(g + 1) * Cin_g,
                         g * Cout_g:(g + 1) * Cout_g].set(blk)
    return dense


def init_params(key, Cin, Cmid, Cout, M, G, r):
    d = Cmid // r
    it = iter(jax.random.split(key, 24))

    def nrm(shape, scale=0.1):
        return (scale * jax.random.normal(next(it), shape)).astype(jnp.float32)

    p = {}
    p['w_conv1'], p['b_conv1'] = nrm((Cin, Cmid)), nrm((1, Cmid))
    p['g_bn1'], p['b_bn1'] = 1.0 + nrm((1, Cmid)), nrm((1, Cmid))
    p['w3_dense'], p['b3'] = grouped_to_dense(nrm((Cmid, Cmid // G, 3, 3)), G), nrm((1, Cmid))
    p['w5_dense'], p['b5'] = grouped_to_dense(nrm((Cmid, Cmid // G, 5, 5)), G), nrm((1, Cmid))
    p['w_fc1'], p['b_fc1'] = nrm((Cmid, d)), nrm((1, d))
    p['w_fc2'], p['b_fc2'] = nrm((d, Cmid * M)), nrm((1, Cmid * M))
    p['g_bn2'], p['b_bn2'] = 1.0 + nrm((1, Cmid)), nrm((1, Cmid))
    p['w_conv2'], p['b_conv2'] = nrm((Cmid, Cout)), nrm((1, Cout))
    p['g_bn3'], p['b_bn3'] = 1.0 + nrm((1, Cout)), nrm((1, Cout))
    p['w_sc'], p['b_sc'] = nrm((Cin, Cout)), nrm((1, Cout))
    p['g_bnsc'], p['b_bnsc'] = 1.0 + nrm((1, Cout)), nrm((1, Cout))
    # Pack both branch weights into one (5,5,Cmid,2*Cmid) tensor: output channels
    # [0:Cmid] = 5x5 branch (U2), [Cmid:2Cmid] = 3x3 branch (U1, centre taps only).
    wcomb = jnp.zeros((5, 5, Cmid, 2 * Cmid), jnp.float32)
    wcomb = wcomb.at[:, :, :, :Cmid].set(p['w5_dense'])
    wcomb = wcomb.at[1:4, 1:4, :, Cmid:].set(p['w3_dense'])
    p['w_comb'] = wcomb
    p['b_comb'] = jnp.concatenate([p['b5'], p['b3']], axis=1)
    return p


# ---------------------------------------------------------------------- forward
def sk_unit_forward(x_nchw, p):
    B, Cin, H, W = x_nchw.shape
    Cmid = p['w_conv1'].shape[1]
    Cout = p['w_conv2'].shape[1]
    N = B * H * W
    row_blk = _pick_row_block(N)

    x2 = jnp.transpose(x_nchw, (0, 2, 3, 1)).reshape(N, Cin)       # NCHW -> row-major NHWC

    # A: conv1 + shortcut conv fused into one matmul, emitting BN1/BNsc partial stats.
    wcat = jnp.concatenate([p['w_conv1'], p['w_sc']], axis=1)
    bcat = jnp.concatenate([p['b_conv1'], p['b_sc']], axis=1)
    t1, tsc, asum, asq = stem(x2, wcat, bcat, Cmid, Cout, row_blk)
    tot_s = jnp.sum(asum[:, 0, :], axis=0)
    tot_q = jnp.sum(asq[:, 0, :], axis=0)
    s1, sh1 = _bn_fold(tot_s[:Cmid], tot_q[:Cmid], N, p['g_bn1'], p['b_bn1'])
    ssc, shsc = _bn_fold(tot_s[Cmid:], tot_q[Cmid:], N, p['g_bnsc'], p['b_bnsc'])

    # B: SKConv fused per batch (BN1 affine, both grouped convs, GAP, fc, softmax, select).
    V, vsum, vsq = skconv(t1.reshape(B, H, W, Cmid), s1, sh1,
                          p['w_comb'], p['b_comb'],
                          p['w_fc1'], p['b_fc1'], p['w_fc2'], p['b_fc2'])
    s2, sh2 = _bn_fold(jnp.sum(vsum[:, 0, :], axis=0), jnp.sum(vsq[:, 0, :], axis=0),
                       N, p['g_bn2'], p['b_bn2'])

    # C: 1x1 conv with BN2 folded into its input affine, emitting BN3 partial stats.
    t2, csum, csq = conv2(V.reshape(N, Cmid), s2, sh2, p['w_conv2'], p['b_conv2'], row_blk)
    s3, sh3 = _bn_fold(jnp.sum(csum[:, 0, :], axis=0), jnp.sum(csq[:, 0, :], axis=0),
                       N, p['g_bn3'], p['b_bn3'])

    # D: BN3(t2) + BNsc(tsc), lane-dense.
    out2 = fuse_bn_add(t2, tsc, s3, sh3, ssc, shsc, row_blk)
    return jnp.transpose(out2.reshape(B, H, W, Cout), (0, 3, 1, 2))


# --------------------------------------------------------------- pure-JAX reference
def sk_unit_reference(x, p, M):
    def conv1x1(x, w, b):
        return jnp.einsum('bchw,cd->bdhw', x, w) + b.reshape(1, -1, 1, 1)

    def bn(x, g, be):
        mu = jnp.mean(x, axis=(0, 2, 3), keepdims=True)
        var = jnp.mean((x - mu) ** 2, axis=(0, 2, 3), keepdims=True)
        return (x - mu) / jnp.sqrt(var + EPS) * g.reshape(1, -1, 1, 1) + be.reshape(1, -1, 1, 1)

    def conv_dense(x, w_dense, b, pad):
        y = jax.lax.conv_general_dilated(
            x, jnp.transpose(w_dense, (3, 2, 0, 1)), window_strides=(1, 1),
            padding=[(pad, pad), (pad, pad)],
            dimension_numbers=('NCHW', 'OIHW', 'NCHW'))
        return y + b.reshape(1, -1, 1, 1)

    t1 = bn(conv1x1(x, p['w_conv1'], p['b_conv1']), p['g_bn1'], p['b_bn1'])
    U1 = conv_dense(t1, p['w3_dense'], p['b3'], 1)
    U2 = conv_dense(t1, p['w5_dense'], p['b5'], 2)
    S = jnp.mean(U1 + U2, axis=(2, 3))
    h = jnp.maximum(S @ p['w_fc1'] + p['b_fc1'], 0.0)
    z = jax.nn.softmax(h @ p['w_fc2'] + p['b_fc2'], axis=1)
    Cmid = t1.shape[1]
    Z = z.reshape(-1, M, Cmid)
    V = U1 * Z[:, 0][:, :, None, None] + U2 * Z[:, 1][:, :, None, None]
    t2 = bn(conv1x1(bn(V, p['g_bn2'], p['b_bn2']), p['w_conv2'], p['b_conv2']),
            p['g_bn3'], p['b_bn3'])
    sc = bn(conv1x1(x, p['w_sc'], p['b_sc']), p['g_bnsc'], p['b_bnsc'])
    return t2 + sc


if __name__ == "__main__":
    B, Cin, H, W = 2, 32, 8, 8
    out_features = 64
    Cmid = out_features // 2          # mid_features = out_features / 2
    M, G, r = 2, 4, 4                 # WH = Cmid (see layout note at the top)

    key = jax.random.PRNGKey(0)
    kx, kp = jax.random.split(key)
    x = jax.random.normal(kx, (B, Cin, H, W), dtype=jnp.float32)
    params = init_params(kp, Cin, Cmid, out_features, M, G, r)

    out = jax.block_until_ready(jax.jit(sk_unit_forward)(x, params))

    with jax.default_matmul_precision("highest"):
        ref = jax.block_until_ready(sk_unit_reference(x, params, M))

    assert out.shape == (B, out_features, H, W)
    assert bool(jnp.max(jnp.abs(out - ref)) < 2e-2), "Pallas output mismatch vs reference"
    print("KERNEL_OK")
</pallas_src>

<mosaic_0001>
module attributes {stable_mosaic.version = 11 : i64} {
  func.func @_stem_kernel(%arg0: i32, %arg1: memref<128x32xf32, #tpu.memory_space<vmem>>, %arg2: memref<32x96xf32, #tpu.memory_space<vmem>>, %arg3: memref<1x96xf32, #tpu.memory_space<vmem>>, %arg4: memref<128x32xf32, #tpu.memory_space<vmem>>, %arg5: memref<128x64xf32, #tpu.memory_space<vmem>>, %arg6: memref<1x8x96xf32, #tpu.memory_space<vmem>>, %arg7: memref<1x8x96xf32, #tpu.memory_space<vmem>>) attributes {dimension_semantics = [#tpu.dimension_semantics<parallel>], iteration_bounds = array<i64: 1>, scalar_prefetch = 0 : i64, scratch_operands = 0 : i64, tpu.core_type = #tpu.core_type<tc>, window_params = [{transform_indices = @transform_0, window_bounds = array<i64: 128, 32>}, {pipeline_mode = #tpu.pipeline_mode<synchronous>, transform_indices = @transform_1, window_bounds = array<i64: 32, 96>}, {pipeline_mode = #tpu.pipeline_mode<synchronous>, transform_indices = @transform_2, window_bounds = array<i64: 1, 96>}, {transform_indices = @transform_3, window_bounds = array<i64: 128, 32>}, {transform_indices = @transform_4, window_bounds = array<i64: 128, 64>}, {transform_indices = @transform_5, window_bounds = array<i64: 1, 8, 96>}, {transform_indices = @transform_6, window_bounds = array<i64: 1, 8, 96>}]} {
    %c0 = arith.constant 0 : index
    %c0_0 = arith.constant 0 : index
    %0 = vector.load %arg1[%c0, %c0_0] : memref<128x32xf32, #tpu.memory_space<vmem>>, vector<128x32xf32>
    %c0_1 = arith.constant 0 : index
    %c0_2 = arith.constant 0 : index
    %1 = vector.load %arg2[%c0_1, %c0_2] : memref<32x96xf32, #tpu.memory_space<vmem>>, vector<32x96xf32>
    %cst = arith.constant dense<0.000000e+00> : vector<128x96xf32>
    %2 = tpu.matmul %0, %1, %cst {dimension_numbers = #tpu.dot_dimension_numbers<[1], [0], [0], [1], [0, 0, 1, 1], [], []>} : vector<128x32xf32>, vector<32x96xf32>, vector<128x96xf32> -> vector<128x96xf32>
    %c0_3 = arith.constant 0 : index
    %c0_4 = arith.constant 0 : index
    %3 = vector.load %arg3[%c0_3, %c0_4] : memref<1x96xf32, #tpu.memory_space<vmem>>, vector<1x96xf32>
    %4 = vector.broadcast %3 : vector<1x96xf32> to vector<128x96xf32>
    %5 = arith.addf %2, %4 : vector<128x96xf32>
    %6 = vector.extract_strided_slice %5 {offsets = [0, 0], sizes = [128, 32], strides = [1, 1]} : vector<128x96xf32> to vector<128x32xf32>
    %c0_5 = arith.constant 0 : index
    %c0_6 = arith.constant 0 : index
    %7 = vector.load %arg4[%c0_5, %c0_6] : memref<128x32xf32, #tpu.memory_space<vmem>>, vector<128x32xf32>
    tpu.vector_store %arg4[%c0_5, %c0_6], %6 {strides = array<i32>} : memref<128x32xf32, #tpu.memory_space<vmem>>, vector<128x32xf32>,
    %8 = vector.extract_strided_slice %5 {offsets = [0, 32], sizes = [128, 64], strides = [1, 1]} : vector<128x96xf32> to vector<128x64xf32>
    %c0_7 = arith.constant 0 : index
    %c0_8 = arith.constant 0 : index
    %9 = vector.load %arg5[%c0_7, %c0_8] : memref<128x64xf32, #tpu.memory_space<vmem>>, vector<128x64xf32>
    tpu.vector_store %arg5[%c0_7, %c0_8], %8 {strides = array<i32>} : memref<128x64xf32, #tpu.memory_space<vmem>>, vector<128x64xf32>,
    %cst_9 = arith.constant dense<0.000000e+00> : vector<96xf32>
    %10 = vector.multi_reduction <add>, %5, %cst_9 [0] : vector<128x96xf32> to vector<96xf32>
    %11 = vector.shape_cast %10 : vector<96xf32> to vector<1x96xf32>
    %12 = arith.mulf %5, %5 : vector<128x96xf32>
    %cst_10 = arith.constant dense<0.000000e+00> : vector<96xf32>
    %13 = vector.multi_reduction <add>, %12, %cst_10 [0] : vector<128x96xf32> to vector<96xf32>
    %14 = vector.shape_cast %13 : vector<96xf32> to vector<1x96xf32>
    %15 = vector.shape_cast %11 : vector<1x96xf32> to vector<1x96xf32>
    %16 = vector.broadcast %15 : vector<1x96xf32> to vector<8x96xf32>
    %c0_11 = arith.constant 0 : index
    %c0_12 = arith.constant 0 : index
    %c0_13 = arith.constant 0 : index
    %17 = vector.load %arg6[%c0_11, %c0_12, %c0_13] : memref<1x8x96xf32, #tpu.memory_space<vmem>>, vector<1x8x96xf32>
    %18 = vector.shape_cast %17 : vector<1x8x96xf32> to vector<8x96xf32>
    %19 = vector.shape_cast %16 : vector<8x96xf32> to vector<1x8x96xf32>
    tpu.vector_store %arg6[%c0_11, %c0_12, %c0_13], %19 {strides = array<i32>} : memref<1x8x96xf32, #tpu.memory_space<vmem>>, vector<1x8x96xf32>,
    %20 = vector.shape_cast %14 : vector<1x96xf32> to vector<1x96xf32>
    %21 = vector.broadcast %20 : vector<1x96xf32> to vector<8x96xf32>
    %c0_14 = arith.constant 0 : index
    %c0_15 = arith.constant 0 : index
    %c0_16 = arith.constant 0 : index
    %22 = vector.load %arg7[%c0_14, %c0_15, %c0_16] : memref<1x8x96xf32, #tpu.memory_space<vmem>>, vector<1x8x96xf32>
    %23 = vector.shape_cast %22 : vector<1x8x96xf32> to vector<8x96xf32>
    %24 = vector.shape_cast %21 : vector<8x96xf32> to vector<1x8x96xf32>
    tpu.vector_store %arg7[%c0_14, %c0_15, %c0_16], %24 {strides = array<i32>} : memref<1x8x96xf32, #tpu.memory_space<vmem>>, vector<1x8x96xf32>,
    return
  }
  func.func @transform_0(%arg0: i32) -> (i32, i32) {
    %c0_i32 = arith.constant 0 : i32
    %c0_i32_0 = arith.constant 0 : i32
    return %arg0, %c0_i32 : i32, i32
  }
  func.func @transform_1(%arg0: i32) -> (i32, i32) {
    %c0_i32 = arith.constant 0 : i32
    %c0_i32_0 = arith.constant 0 : i32
    %c0_i32_1 = arith.constant 0 : i32
    return %c0_i32, %c0_i32_0 : i32, i32
  }
  func.func @transform_2(%arg0: i32) -> (i32, i32) {
    %c0_i32 = arith.constant 0 : i32
    %c0_i32_0 = arith.constant 0 : i32
    %c0_i32_1 = arith.constant 0 : i32
    return %c0_i32, %c0_i32_0 : i32, i32
  }
  func.func @transform_3(%arg0: i32) -> (i32, i32) {
    %c0_i32 = arith.constant 0 : i32
    %c0_i32_0 = arith.constant 0 : i32
    return %arg0, %c0_i32 : i32, i32
  }
  func.func @transform_4(%arg0: i32) -> (i32, i32) {
    %c0_i32 = arith.constant 0 : i32
    %c0_i32_0 = arith.constant 0 : i32
    return %arg0, %c0_i32 : i32, i32
  }
  func.func @transform_5(%arg0: i32) -> (i32, i32, i32) {
    %c0_i32 = arith.constant 0 : i32
    %c0_i32_0 = arith.constant 0 : i32
    %c0_i32_1 = arith.constant 0 : i32
    return %arg0, %c0_i32, %c0_i32_0 : i32, i32, i32
  }
  func.func @transform_6(%arg0: i32) -> (i32, i32, i32) {
    %c0_i32 = arith.constant 0 : i32
    %c0_i32_0 = arith.constant 0 : i32
    %c0_i32_1 = arith.constant 0 : i32
    return %arg0, %c0_i32, %c0_i32_0 : i32, i32, i32
  }
}

module attributes {stable_mosaic.version = 11 : i64} {
  func.func @_skconv_kernel(%arg0: i32, %arg1: memref<1x8x8x32xf32, #tpu.memory_space<vmem>>, %arg2: memref<1x32xf32, #tpu.memory_space<vmem>>, %arg3: memref<1x32xf32, #tpu.memory_space<vmem>>, %arg4: memref<5x5x32x64xf32, #tpu.memory_space<vmem>>, %arg5: memref<1x64xf32, #tpu.memory_space<vmem>>, %arg6: memref<32x8xf32, #tpu.memory_space<vmem>>, %arg7: memref<1x8xf32, #tpu.memory_space<vmem>>, %arg8: memref<8x64xf32, #tpu.memory_space<vmem>>, %arg9: memref<1x64xf32, #tpu.memory_space<vmem>>, %arg10: memref<1x8x8x32xf32, #tpu.memory_space<vmem>>, %arg11: memref<1x8x32xf32, #tpu.memory_space<vmem>>, %arg12: memref<1x8x32xf32, #tpu.memory_space<vmem>>, %arg13: memref<5x12x16x32xf32, #tpu.memory_space<vmem>>) attributes {dimension_semantics = [#tpu.dimension_semantics<parallel>], iteration_bounds = array<i64: 2>, scalar_prefetch = 0 : i64, scratch_operands = 1 : i64, tpu.core_type = #tpu.core_type<tc>, window_params = [{transform_indices = @transform_0, window_bounds = array<i64: 1, 8, 8, 32>}, {pipeline_mode = #tpu.pipeline_mode<synchronous>, transform_indices = @transform_1, window_bounds = array<i64: 1, 32>}, {pipeline_mode = #tpu.pipeline_mode<synchronous>, transform_indices = @transform_2, window_bounds = array<i64: 1, 32>}, {pipeline_mode = #tpu.pipeline_mode<synchronous>, transform_indices = @transform_3, window_bounds = array<i64: 5, 5, 32, 64>}, {pipeline_mode = #tpu.pipeline_mode<synchronous>, transform_indices = @transform_4, window_bounds = array<i64: 1, 64>}, {pipeline_mode = #tpu.pipeline_mode<synchronous>, transform_indices = @transform_5, window_bounds = array<i64: 32, 8>}, {pipeline_mode = #tpu.pipeline_mode<synchronous>, transform_indices = @transform_6, window_bounds = array<i64: 1, 8>}, {pipeline_mode = #tpu.pipeline_mode<synchronous>, transform_indices = @transform_7, window_bounds = array<i64: 8, 64>}, {pipeline_mode = #tpu.pipeline_mode<synchronous>, transform_indices = @transform_8, window_bounds = array<i64: 1, 64>}, {transform_indices = @transform_9, window_bounds = array<i64: 1, 8, 8, 32>}, {transform_indices = @transform_10, window_bounds = array<i64: 1, 8, 32>}, {transform_indices = @transform_11, window_bounds = array<i64: 1, 8, 32>}]} {
    %c0 = arith.constant 0 : index
    %c0_0 = arith.constant 0 : index
    %c0_1 = arith.constant 0 : index
    %c0_2 = arith.constant 0 : index
    %0 = vector.load %arg1[%c0, %c0_0, %c0_1, %c0_2] : memref<1x8x8x32xf32, #tpu.memory_space<vmem>>, vector<1x8x8x32xf32>
    %1 = vector.shape_cast %0 : vector<1x8x8x32xf32> to vector<8x8x32xf32>
    %c0_3 = arith.constant 0 : index
    %c0_4 = arith.constant 0 : index
    %2 = vector.load %arg2[%c0_3, %c0_4] : memref<1x32xf32, #tpu.memory_space<vmem>>, vector<1x32xf32>
    %3 = vector.shape_cast %2 : vector<1x32xf32> to vector<1x1x32xf32>
    %4 = vector.broadcast %3 : vector<1x1x32xf32> to vector<8x8x32xf32>
    %5 = arith.mulf %1, %4 : vector<8x8x32xf32>
    %c0_5 = arith.constant 0 : index
    %c0_6 = arith.constant 0 : index
    %6 = vector.load %arg3[%c0_5, %c0_6] : memref<1x32xf32, #tpu.memory_space<vmem>>, vector<1x32xf32>
    %7 = vector.shape_cast %6 : vector<1x32xf32> to vector<1x1x32xf32>
    %8 = vector.broadcast %7 : vector<1x1x32xf32> to vector<8x8x32xf32>
    %9 = arith.addf %5, %8 : vector<8x8x32xf32>
    %cst = arith.constant 0.000000e+00 : f32
    %10 = vector.broadcast %cst : f32 to vector<5x12x16x32xf32>
    %c0_7 = arith.constant 0 : index
    %c0_8 = arith.constant 0 : index
    %c0_9 = arith.constant 0 : index
    %c0_10 = arith.constant 0 : index
    %11 = vector.load %arg13[%c0_7, %c0_8, %c0_9, %c0_10] : memref<5x12x16x32xf32, #tpu.memory_space<vmem>>, vector<5x12x16x32xf32>
    tpu.vector_store %arg13[%c0_7, %c0_8, %c0_9, %c0_10], %10 {strides = array<i32>} : memref<5x12x16x32xf32, #tpu.memory_space<vmem>>, vector<5x12x16x32xf32>,
    %c0_11 = arith.constant 0 : index
    %c2 = arith.constant 2 : index
    %c2_12 = arith.constant 2 : index
    %c0_13 = arith.constant 0 : index
    %12 = vector.load %arg13[%c0_11, %c2, %c2_12, %c0_13] : memref<5x12x16x32xf32, #tpu.memory_space<vmem>>, vector<1x8x8x32xf32>
    %13 = vector.shape_cast %12 : vector<1x8x8x32xf32> to vector<8x8x32xf32>
    %14 = vector.shape_cast %9 : vector<8x8x32xf32> to vector<1x8x8x32xf32>
    tpu.vector_store %arg13[%c0_11, %c2, %c2_12, %c0_13], %14 {strides = array<i32>} : memref<5x12x16x32xf32, #tpu.memory_space<vmem>>, vector<1x8x8x32xf32>,
    %c1 = arith.constant 1 : index
    %c2_14 = arith.constant 2 : index
    %c1_15 = arith.constant 1 : index
    %c0_16 = arith.constant 0 : index
    %15 = vector.load %arg13[%c1, %c2_14, %c1_15, %c0_16] : memref<5x12x16x32xf32, #tpu.memory_space<vmem>>, vector<1x8x8x32xf32>
    %16 = vector.shape_cast %15 : vector<1x8x8x32xf32> to vector<8x8x32xf32>
    %17 = vector.shape_cast %9 : vector<8x8x32xf32> to vector<1x8x8x32xf32>
    tpu.vector_store %arg13[%c1, %c2_14, %c1_15, %c0_16], %17 {strides = array<i32>} : memref<5x12x16x32xf32, #tpu.memory_space<vmem>>, vector<1x8x8x32xf32>,
    %c2_17 = arith.constant 2 : index
    %c2_18 = arith.constant 2 : index
    %c0_19 = arith.constant 0 : index
    %c0_20 = arith.constant 0 : index
    %18 = vector.load %arg13[%c2_17, %c2_18, %c0_19, %c0_20] : memref<5x12x16x32xf32, #tpu.memory_space<vmem>>, vector<1x8x8x32xf32>
    %19 = vector.shape_cast %18 : vector<1x8x8x32xf32> to vector<8x8x32xf32>
    %20 = vector.shape_cast %9 : vector<8x8x32xf32> to vector<1x8x8x32xf32>
    tpu.vector_store %arg13[%c2_17, %c2_18, %c0_19, %c0_20], %20 {strides = array<i32>} : memref<5x12x16x32xf32, #tpu.memory_space<vmem>>, vector<1x8x8x32xf32>,
    %21 = vector.extract_strided_slice %9 {offsets = [0, 1, 0], sizes = [8, 7, 32], strides = [1, 1, 1]} : vector<8x8x32xf32> to vector<8x7x32xf32>
    %c3 = arith.constant 3 : index
    %c2_21 = arith.constant 2 : index
    %c0_22 = arith.constant 0 : index
    %c0_23 = arith.constant 0 : index
    %22 = vector.load %arg13[%c3, %c2_21, %c0_22, %c0_23] : memref<5x12x16x32xf32, #tpu.memory_space<vmem>>, vector<1x8x7x32xf32>
    %23 = vector.shape_cast %22 : vector<1x8x7x32xf32> to vector<8x7x32xf32>
    %24 = vector.shape_cast %21 : vector<8x7x32xf32> to vector<1x8x7x32xf32>
    tpu.vector_store %arg13[%c3, %c2_21, %c0_22, %c0_23], %24 {strides = array<i32>} : memref<5x12x16x32xf32, #tpu.memory_space<vmem>>, vector<1x8x7x32xf32>,
    %25 = vector.extract_strided_slice %9 {offsets = [0, 2, 0], sizes = [8, 6, 32], strides = [1, 1, 1]} : vector<8x8x32xf32> to vector<8x6x32xf32>
    %c4 = arith.constant 4 : index
    %c2_24 = arith.constant 2 : index
    %c0_25 = arith.constant 0 : index
    %c0_26 = arith.constant 0 : index
    %26 = vector.load %arg13[%c4, %c2_24, %c0_25, %c0_26] : memref<5x12x16x32xf32, #tpu.memory_space<vmem>>, vector<1x8x6x32xf32>
    %27 = vector.shape_cast %26 : vector<1x8x6x32xf32> to vector<8x6x32xf32>
    %28 = vector.shape_cast %25 : vector<8x6x32xf32> to vector<1x8x6x32xf32>
    tpu.vector_store %arg13[%c4, %c2_24, %c0_25, %c0_26], %28 {strides = array<i32>} : memref<5x12x16x32xf32, #tpu.memory_space<vmem>>, vector<1x8x6x32xf32>,
    %cst_27 = arith.constant 0.000000e+00 : f32
    %29 = vector.broadcast %cst_27 : f32 to vector<64x64xf32>
    %c0_28 = arith.constant 0 : index
    %c0_29 = arith.constant 0 : index
    %c0_30 = arith.constant 0 : index
    %c0_31 = arith.constant 0 : index
    %30 = vector.load %arg13[%c0_28, %c0_29, %c0_30, %c0_31] : memref<5x12x16x32xf32, #tpu.memory_space<vmem>>, vector<1x8x8x32xf32>
    %31 = vector.shape_cast %30 : vector<1x8x8x32xf32> to vector<8x8x32xf32>
    %32 = vector.shape_cast %31 : vector<8x8x32xf32> to vector<64x32xf32>
    %c0_32 = arith.constant 0 : index
    %c0_33 = arith.constant 0 : index
    %c0_34 = arith.constant 0 : index
    %c0_35 = arith.constant 0 : index
    %33 = vector.load %arg4[%c0_32, %c0_33, %c0_34, %c0_35] : memref<5x5x32x64xf32, #tpu.memory_space<vmem>>, vector<1x1x32x64xf32>
    %34 = vector.shape_cast %33 : vector<1x1x32x64xf32> to vector<32x64xf32>
    %cst_36 = arith.constant dense<0.000000e+00> : vector<64x64xf32>
    %35 = tpu.matmul %32, %34, %cst_36 {dimension_numbers = #tpu.dot_dimension_numbers<[1], [0], [0], [1], [0, 0, 1, 1], [], []>} : vector<64x32xf32>, vector<32x64xf32>, vector<64x64xf32> -> vector<64x64xf32>
    %36 = arith.addf %29, %35 : vector<64x64xf32>
    %c1_37 = arith.constant 1 : index
    %c0_38 = arith.constant 0 : index
    %c0_39 = arith.constant 0 : index
    %c0_40 = arith.constant 0 : index
    %37 = vector.load %arg13[%c1_37, %c0_38, %c0_39, %c0_40] : memref<5x12x16x32xf32, #tpu.memory_space<vmem>>, vector<1x8x8x32xf32>
    %38 = vector.shape_cast %37 : vector<1x8x8x32xf32> to vector<8x8x32xf32>
    %39 = vector.shape_cast %38 : vector<8x8x32xf32> to vector<64x32xf32>
    %c0_41 = arith.constant 0 : index
    %c1_42 = arith.constant 1 : index
    %c0_43 = arith.constant 0 : index
    %c0_44 = arith.constant 0 : index
    %40 = vector.load %arg4[%c0_41, %c1_42, %c0_43, %c0_44] : memref<5x5x32x64xf32, #tpu.memory_space<vmem>>, vector<1x1x32x64xf32>
    %41 = vector.shape_cast %40 : vector<1x1x32x64xf32> to vector<32x64xf32>
    %cst_45 = arith.constant dense<0.000000e+00> : vector<64x64xf32>
    %42 = tpu.matmul %39, %41, %cst_45 {dimension_numbers = #tpu.dot_dimension_numbers<[1], [0], [0], [1], [0, 0, 1, 1], [], []>} : vector<64x32xf32>, vector<32x64xf32>, vector<64x64xf32> -> vector<64x64xf32>
    %43 = arith.addf %36, %42 : vector<64x64xf32>
    %c2_46 = arith.constant 2 : index
    %c0_47 = arith.constant 0 : index
    %c0_48 = arith.constant 0 : index
    %c0_49 = arith.constant 0 : index
    %44 = vector.load %arg13[%c2_46, %c0_47, %c0_48, %c0_49] : memref<5x12x16x32xf32, #tpu.memory_space<vmem>>, vector<1x8x8x32xf32>
    %45 = vector.shape_cast %44 : vector<1x8x8x32xf32> to vector<8x8x32xf32>
    %46 = vector.shape_cast %45 : vector<8x8x32xf32> to vector<64x32xf32>
    %c0_50 = arith.constant 0 : index
    %c2_51 = arith.constant 2 : index
    %c0_52 = arith.constant 0 : index
    %c0_53 = arith.constant 0 : index
    %47 = vector.load %arg4[%c0_50, %c2_51, %c0_52, %c0_53] : memref<5x5x32x64xf32, #tpu.memory_space<vmem>>, vector<1x1x32x64xf32>
    %48 = vector.shape_cast %47 : vector<1x1x32x64xf32> to vector<32x64xf32>
    %cst_54 = arith.constant dense<0.000000e+00> : vector<64x64xf32>
    %49 = tpu.matmul %46, %48, %cst_54 {dimension_numbers = #tpu.dot_dimension_numbers<[1], [0], [0], [1], [0, 0, 1, 1], [], []>} : vector<64x32xf32>, vector<32x64xf32>, vector<64x64xf32> -> vector<64x64xf32>
    %50 = arith.addf %43, %49 : vector<64x64xf32>
    %c3_55 = arith.constant 3 : index
    %c0_56 = arith.constant 0 : index
    %c0_57 = arith.constant 0 : index
    %c0_58 = arith.constant 0 : index
    %51 = vector.load %arg13[%c3_55, %c0_56, %c0_57, %c0_58] : memref<5x12x16x32xf32, #tpu.memory_space<vmem>>, vector<1x8x8x32xf32>
    %52 = vector.shape_cast %51 : vector<1x8x8x32xf32> to vector<8x8x32xf32>
    %53 = vector.shape_cast %52 : vector<8x8x32xf32> to vector<64x32xf32>
    %c0_59 = arith.constant 0 : index
    %c3_60 = arith.constant 3 : index
    %c0_61 = arith.constant 0 : index
    %c0_62 = arith.constant 0 : index
    %54 = vector.load %arg4[%c0_59, %c3_60, %c0_61, %c0_62] : memref<5x5x32x64xf32, #tpu.memory_space<vmem>>, vector<1x1x32x64xf32>
    %55 = vector.shape_cast %54 : vector<1x1x32x64xf32> to vector<32x64xf32>
    %cst_63 = arith.constant dense<0.000000e+00> : vector<64x64xf32>
    %56 = tpu.matmul %53, %55, %cst_63 {dimension_numbers = #tpu.dot_dimension_numbers<[1], [0], [0], [1], [0, 0, 1, 1], [], []>} : vector<64x32xf32>, vector<32x64xf32>, vector<64x64xf32> -> vector<64x64xf32>
    %57 = arith.addf %50, %56 : vector<64x64xf32>
    %c4_64 = arith.constant 4 : index
    %c0_65 = arith.constant 0 : index
    %c0_66 = arith.constant 0 : index
    %c0_67 = arith.constant 0 : index
    %58 = vector.load %arg13[%c4_64, %c0_65, %c0_66, %c0_67] : memref<5x12x16x32xf32, #tpu.memory_space<vmem>>, vector<1x8x8x32xf32>
    %59 = vector.shape_cast %58 : vector<1x8x8x32xf32> to vector<8x8x32xf32>
    %60 = vector.shape_cast %59 : vector<8x8x32xf32> to vector<64x32xf32>
    %c0_68 = arith.constant 0 : index
    %c4_69 = arith.constant 4 : index
    %c0_70 = arith.constant 0 : index
    %c0_71 = arith.constant 0 : index
    %61 = vector.load %arg4[%c0_68, %c4_69, %c0_70, %c0_71] : memref<5x5x32x64xf32, #tpu.memory_space<vmem>>, vector<1x1x32x64xf32>
    %62 = vector.shape_cast %61 : vector<1x1x32x64xf32> to vector<32x64xf32>
    %cst_72 = arith.constant dense<0.000000e+00> : vector<64x64xf32>
    %63 = tpu.matmul %60, %62, %cst_72 {dimension_numbers = #tpu.dot_dimension_numbers<[1], [0], [0], [1], [0, 0, 1, 1], [], []>} : vector<64x32xf32>, vector<32x64xf32>, vector<64x64xf32> -> vector<64x64xf32>
    %64 = arith.addf %57, %63 : vector<64x64xf32>
    %c0_73 = arith.constant 0 : index
    %c1_74 = arith.constant 1 : index
    %c0_75 = arith.constant 0 : index
    %c0_76 = arith.constant 0 : index
    %65 = vector.load %arg13[%c0_73, %c1_74, %c0_75, %c0_76] : memref<5x12x16x32xf32, #tpu.memory_space<vmem>>, vector<1x8x8x32xf32>
    %66 = vector.shape_cast %65 : vector<1x8x8x32xf32> to vector<8x8x32xf32>
    %67 = vector.shape_cast %66 : vector<8x8x32xf32> to vector<64x32xf32>
    %c1_77 = arith.constant 1 : index
    %c0_78 = arith.constant 0 : index
    %c0_79 = arith.constant 0 : index
    %c0_80 = arith.constant 0 : index
    %68 = vector.load %arg4[%c1_77, %c0_78, %c0_79, %c0_80] : memref<5x5x32x64xf32, #tpu.memory_space<vmem>>, vector<1x1x32x64xf32>
    %69 = vector.shape_cast %68 : vector<1x1x32x64xf32> to vector<32x64xf32>
    %cst_81 = arith.constant dense<0.000000e+00> : vector<64x64xf32>
    %70 = tpu.matmul %67, %69, %cst_81 {dimension_numbers = #tpu.dot_dimension_numbers<[1], [0], [0], [1], [0, 0, 1, 1], [], []>} : vector<64x32xf32>, vector<32x64xf32>, vector<64x64xf32> -> vector<64x64xf32>
    %71 = arith.addf %64, %70 : vector<64x64xf32>
    %c1_82 = arith.constant 1 : index
    %c1_83 = arith.constant 1 : index
    %c0_84 = arith.constant 0 : index
    %c0_85 = arith.constant 0 : index
    %72 = vector.load %arg13[%c1_82, %c1_83, %c0_84, %c0_85] : memref<5x12x16x32xf32, #tpu.memory_space<vmem>>, vector<1x8x8x32xf32>
    %73 = vector.shape_cast %72 : vector<1x8x8x32xf32> to vector<8x8x32xf32>
    %74 = vector.shape_cast %73 : vector<8x8x32xf32> to vector<64x32xf32>
    %c1_86 = arith.constant 1 : index
    %c1_87 = arith.constant 1 : index
    %c0_88 = arith.constant 0 : index
    %c0_89 = arith.constant 0 : index
    %75 = vector.load %arg4[%c1_86, %c1_87, %c0_88, %c0_89] : memref<5x5x32x64xf32, #tpu.memory_space<vmem>>, vector<1x1x32x64xf32>
    %76 = vector.shape_cast %75 : vector<1x1x32x64xf32> to vector<32x64xf32>
    %cst_90 = arith.constant dense<0.000000e+00> : vector<64x64xf32>
    %77 = tpu.matmul %74, %76, %cst_90 {dimension_numbers = #tpu.dot_dimension_numbers<[1], [0], [0], [1], [0, 0, 1, 1], [], []>} : vector<64x32xf32>, vector<32x64xf32>, vector<64x64xf32> -> vector<64x64xf32>
    %78 = arith.addf %71, %77 : vector<64x64xf32>
    %c2_91 = arith.constant 2 : index
    %c1_92 = arith.constant 1 : index
    %c0_93 = arith.constant 0 : index
    %c0_94 = arith.constant 0 : index
    %79 = vector.load %arg13[%c2_91, %c1_92, %c0_93, %c0_94] : memref<5x12x16x32xf32, #tpu.memory_space<vmem>>, vector<1x8x8x32xf32>
    %80 = vector.shape_cast %79 : vector<1x8x8x32xf32> to vector<8x8x32xf32>
    %81 = vector.shape_cast %80 : vector<8x8x32xf32> to vector<64x32xf32>
    %c1_95 = arith.constant 1 : index
    %c2_96 = arith.constant 2 : index
    %c0_97 = arith.constant 0 : index
    %c0_98 = arith.constant 0 : index
    %82 = vector.load %arg4[%c1_95, %c2_96, %c0_97, %c0_98] : memref<5x5x32x64xf32, #tpu.memory_space<vmem>>, vector<1x1x32x64xf32>
    %83 = vector.shape_cast %82 : vector<1x1x32x64xf32> to vector<32x64xf32>
    %cst_99 = arith.constant dense<0.000000e+00> : vector<64x64xf32>
    %84 = tpu.matmul %81, %83, %cst_99 {dimension_numbers = #tpu.dot_dimension_numbers<[1], [0], [0], [1], [0, 0, 1, 1], [], []>} : vector<64x32xf32>, vector<32x64xf32>, vector<64x64xf32> -> vector<64x64xf32>
    %85 = arith.addf %78, %84 : vector<64x64xf32>
    %c3_100 = arith.constant 3 : index
    %c1_101 = arith.constant 1 : index
    %c0_102 = arith.constant 0 : index
    %c0_103 = arith.constant 0 : index
    %86 = vector.load %arg13[%c3_100, %c1_101, %c0_102, %c0_103] : memref<5x12x16x32xf32, #tpu.memory_space<vmem>>, vector<1x8x8x32xf32>
    %87 = vector.shape_cast %86 : vector<1x8x8x32xf32> to vector<8x8x32xf32>
    %88 = vector.shape_cast %87 : vector<8x8x32xf32> to vector<64x32xf32>
    %c1_104 = arith.constant 1 : index
    %c3_105 = arith.constant 3 : index
    %c0_106 = arith.constant 0 : index
    %c0_107 = arith.constant 0 : index
    %89 = vector.load %arg4[%c1_104, %c3_105, %c0_106, %c0_107] : memref<5x5x32x64xf32, #tpu.memory_space<vmem>>, vector<1x1x32x64xf32>
    %90 = vector.shape_cast %89 : vector<1x1x32x64xf32> to vector<32x64xf32>
    %cst_108 = arith.constant dense<0.000000e+00> : vector<64x64xf32>
    %91 = tpu.matmul %88, %90, %cst_108 {dimension_numbers = #tpu.dot_dimension_numbers<[1], [0], [0], [1], [0, 0, 1, 1], [], []>} : vector<64x32xf32>, vector<32x64xf32>, vector<64x64xf32> -> vector<64x64xf32>
    %92 = arith.addf %85, %91 : vector<64x64xf32>
    %c4_109 = arith.constant 4 : index
    %c1_110 = arith.constant 1 : index
    %c0_111 = arith.constant 0 : index
    %c0_112 = arith.constant 0 : index
    %93 = vector.load %arg13[%c4_109, %c1_110, %c0_111, %c0_112] : memref<5x12x16x32xf32, #tpu.memory_space<vmem>>, vector<1x8x8x32xf32>
    %94 = vector.shape_cast %93 : vector<1x8x8x32xf32> to vector<8x8x32xf32>
    %95 = vector.shape_cast %94 : vector<8x8x32xf32> to vector<64x32xf32>
    %c1_113 = arith.constant 1 : index
    %c4_114 = arith.constant 4 : index
    %c0_115 = arith.constant 0 : index
    %c0_116 = arith.constant 0 : index
    %96 = vector.load %arg4[%c1_113, %c4_114, %c0_115, %c0_116] : memref<5x5x32x64xf32, #tpu.memory_space<vmem>>, vector<1x1x32x64xf32>
    %97 = vector.shape_cast %96 : vector<1x1x32x64xf32> to vector<32x64xf32>
    %cst_117 = arith.constant dense<0.000000e+00> : vector<64x64xf32>
    %98 = tpu.matmul %95, %97, %cst_117 {dimension_numbers = #tpu.dot_dimension_numbers<[1], [0], [0], [1], [0, 0, 1, 1], [], []>} : vector<64x32xf32>, vector<32x64xf32>, vector<64x64xf32> -> vector<64x64xf32>
    %99 = arith.addf %92, %98 : vector<64x64xf32>
    %c0_118 = arith.constant 0 : index
    %c2_119 = arith.constant 2 : index
    %c0_120 = arith.constant 0 : index
    %c0_121 = arith.constant 0 : index
    %100 = vector.load %arg13[%c0_118, %c2_119, %c0_120, %c0_121] : memref<5x12x16x32xf32, #tpu.memory_space<vmem>>, vector<1x8x8x32xf32>
    %101 = vector.shape_cast %100 : vector<1x8x8x32xf32> to vector<8x8x32xf32>
    %102 = vector.shape_cast %101 : vector<8x8x32xf32> to vector<64x32xf32>
    %c2_122 = arith.constant 2 : index
    %c0_123 = arith.constant 0 : index
    %c0_124 = arith.constant 0 : index
    %c0_125 = arith.constant 0 : index
    %103 = vector.load %arg4[%c2_122, %c0_123, %c0_124, %c0_125] : memref<5x5x32x64xf32, #tpu.memory_space<vmem>>, vector<1x1x32x64xf32>
    %104 = vector.shape_cast %103 : vector<1x1x32x64xf32> to vector<32x64xf32>
    %cst_126 = arith.constant dense<0.000000e+00> : vector<64x64xf32>
    %105 = tpu.matmul %102, %104, %cst_126 {dimension_numbers = #tpu.dot_dimension_numbers<[1], [0], [0], [1], [0, 0, 1, 1], [], []>} : vector<64x32xf32>, vector<32x64xf32>, vector<64x64xf32> -> vector<64x64xf32>
    %106 = arith.addf %99, %105 : vector<64x64xf32>
    %c1_127 = arith.constant 1 : index
    %c2_128 = arith.constant 2 : index
    %c0_129 = arith.constant 0 : index
    %c0_130 = arith.constant 0 : index
    %107 = vector.load %arg13[%c1_127, %c2_128, %c0_129, %c0_130] : memref<5x12x16x32xf32, #tpu.memory_space<vmem>>, vector<1x8x8x32xf32>
    %108 = vector.shape_cast %107 : vector<1x8x8x32xf32> to vector<8x8x32xf32>
    %109 = vector.shape_cast %108 : vector<8x8x32xf32> to vector<64x32xf32>
    %c2_131 = arith.constant 2 : index
    %c1_132 = arith.constant 1 : index
    %c0_133 = arith.constant 0 : index
    %c0_134 = arith.constant 0 : index
    %110 = vector.load %arg4[%c2_131, %c1_132, %c0_133, %c0_134] : memref<5x5x32x64xf32, #tpu.memory_space<vmem>>, vector<1x1x32x64xf32>
    %111 = vector.shape_cast %110 : vector<1x1x32x64xf32> to vector<32x64xf32>
    %cst_135 = arith.constant dense<0.000000e+00> : vector<64x64xf32>
    %112 = tpu.matmul %109, %111, %cst_135 {dimension_numbers = #tpu.dot_dimension_numbers<[1], [0], [0], [1], [0, 0, 1, 1], [], []>} : vector<64x32xf32>, vector<32x64xf32>, vector<64x64xf32> -> vector<64x64xf32>
    %113 = arith.addf %106, %112 : vector<64x64xf32>
    %c2_136 = arith.constant 2 : index
    %c2_137 = arith.constant 2 : index
    %c0_138 = arith.constant 0 : index
    %c0_139 = arith.constant 0 : index
    %114 = vector.load %arg13[%c2_136, %c2_137, %c0_138, %c0_139] : memref<5x12x16x32xf32, #tpu.memory_space<vmem>>, vector<1x8x8x32xf32>
    %115 = vector.shape_cast %114 : vector<1x8x8x32xf32> to vector<8x8x32xf32>
    %116 = vector.shape_cast %115 : vector<8x8x32xf32> to vector<64x32xf32>
    %c2_140 = arith.constant 2 : index
    %c2_141 = arith.constant 2 : index
    %c0_142 = arith.constant 0 : index
    %c0_143 = arith.constant 0 : index
    %117 = vector.load %arg4[%c2_140, %c2_141, %c0_142, %c0_143] : memref<5x5x32x64xf32, #tpu.memory_space<vmem>>, vector<1x1x32x64xf32>
    %118 = vector.shape_cast %117 : vector<1x1x32x64xf32> to vector<32x64xf32>
    %cst_144 = arith.constant dense<0.000000e+00> : vector<64x64xf32>
    %119 = tpu.matmul %116, %118, %cst_144 {dimension_numbers = #tpu.dot_dimension_numbers<[1], [0], [0], [1], [0, 0, 1, 1], [], []>} : vector<64x32xf32>, vector<32x64xf32>, vector<64x64xf32> -> vector<64x64xf32>
    %120 = arith.addf %113, %119 : vector<64x64xf32>
    %c3_145 = arith.constant 3 : index
    %c2_146 = arith.constant 2 : index
    %c0_147 = arith.constant 0 : index
    %c0_148 = arith.constant 0 : index
    %121 = vector.load %arg13[%c3_145, %c2_146, %c0_147, %c0_148] : memref<5x12x16x32xf32, #tpu.memory_space<vmem>>, vector<1x8x8x32xf32>
    %122 = vector.shape_cast %121 : vector<1x8x8x32xf32> to vector<8x8x32xf32>
    %123 = vector.shape_cast %122 : vector<8x8x32xf32> to vector<64x32xf32>
    %c2_149 = arith.constant 2 : index
    %c3_150 = arith.constant 3 : index
    %c0_151 = arith.constant 0 : index
    %c0_152 = arith.constant 0 : index
    %124 = vector.load %arg4[%c2_149, %c3_150, %c0_151, %c0_152] : memref<5x5x32x64xf32, #tpu.memory_space<vmem>>, vector<1x1x32x64xf32>
    %125 = vector.shape_cast %124 : vector<1x1x32x64xf32> to vector<32x64xf32>
    %cst_153 = arith.constant dense<0.000000e+00> : vector<64x64xf32>
    %126 = tpu.matmul %123, %125, %cst_153 {dimension_numbers = #tpu.dot_dimension_numbers<[1], [0], [0], [1], [0, 0, 1, 1], [], []>} : vector<64x32xf32>, vector<32x64xf32>, vector<64x64xf32> -> vector<64x64xf32>
    %127 = arith.addf %120, %126 : vector<64x64xf32>
    %c4_154 = arith.constant 4 : index
    %c2_155 = arith.constant 2 : index
    %c0_156 = arith.constant 0 : index
    %c0_157 = arith.constant 0 : index
    %128 = vector.load %arg13[%c4_154, %c2_155, %c0_156, %c0_157] : memref<5x12x16x32xf32, #tpu.memory_space<vmem>>, vector<1x8x8x32xf32>
    %129 = vector.shape_cast %128 : vector<1x8x8x32xf32> to vector<8x8x32xf32>
    %130 = vector.shape_cast %129 : vector<8x8x32xf32> to vector<64x32xf32>
    %c2_158 = arith.constant 2 : index
    %c4_159 = arith.constant 4 : index
    %c0_160 = arith.constant 0 : index
    %c0_161 = arith.constant 0 : index
    %131 = vector.load %arg4[%c2_158, %c4_159, %c0_160, %c0_161] : memref<5x5x32x64xf32, #tpu.memory_space<vmem>>, vector<1x1x32x64xf32>
    %132 = vector.shape_cast %131 : vector<1x1x32x64xf32> to vector<32x64xf32>
    %cst_162 = arith.constant dense<0.000000e+00> : vector<64x64xf32>
    %133 = tpu.matmul %130, %132, %cst_162 {dimension_numbers = #tpu.dot_dimension_numbers<[1], [0], [0], [1], [0, 0, 1, 1], [], []>} : vector<64x32xf32>, vector<32x64xf32>, vector<64x64xf32> -> vector<64x64xf32>
    %134 = arith.addf %127, %133 : vector<64x64xf32>
    %c0_163 = arith.constant 0 : index
    %c3_164 = arith.constant 3 : index
    %c0_165 = arith.constant 0 : index
    %c0_166 = arith.constant 0 : index
    %135 = vector.load %arg13[%c0_163, %c3_164, %c0_165, %c0_166] : memref<5x12x16x32xf32, #tpu.memory_space<vmem>>, vector<1x8x8x32xf32>
    %136 = vector.shape_cast %135 : vector<1x8x8x32xf32> to vector<8x8x32xf32>
    %137 = vector.shape_cast %136 : vector<8x8x32xf32> to vector<64x32xf32>
    %c3_167 = arith.constant 3 : index
    %c0_168 = arith.constant 0 : index
    %c0_169 = arith.constant 0 : index
    %c0_170 = arith.constant 0 : index
    %138 = vector.load %arg4[%c3_167, %c0_168, %c0_169, %c0_170] : memref<5x5x32x64xf32, #tpu.memory_space<vmem>>, vector<1x1x32x64xf32>
    %139 = vector.shape_cast %138 : vector<1x1x32x64xf32> to vector<32x64xf32>
    %cst_171 = arith.constant dense<0.000000e+00> : vector<64x64xf32>
    %140 = tpu.matmul %137, %139, %cst_171 {dimension_numbers = #tpu.dot_dimension_numbers<[1], [0], [0], [1], [0, 0, 1, 1], [], []>} : vector<64x32xf32>, vector<32x64xf32>, vector<64x64xf32> -> vector<64x64xf32>
    %141 = arith.addf %134, %140 : vector<64x64xf32>
    %c1_172 = arith.constant 1 : index
    %c3_173 = arith.constant 3 : index
    %c0_174 = arith.constant 0 : index
    %c0_175 = arith.constant 0 : index
    %142 = vector.load %arg13[%c1_172, %c3_173, %c0_174, %c0_175] : memref<5x12x16x32xf32, #tpu.memory_space<vmem>>, vector<1x8x8x32xf32>
    %143 = vector.shape_cast %142 : vector<1x8x8x32xf32> to vector<8x8x32xf32>
    %144 = vector.shape_cast %143 : vector<8x8x32xf32> to vector<64x32xf32>
    %c3_176 = arith.constant 3 : index
    %c1_177 = arith.constant 1 : index
    %c0_178 = arith.constant 0 : index
    %c0_179 = arith.constant 0 : index
    %145 = vector.load %arg4[%c3_176, %c1_177, %c0_178, %c0_179] : memref<5x5x32x64xf32, #tpu.memory_space<vmem>>, vector<1x1x32x64xf32>
    %146 = vector.shape_cast %145 : vector<1x1x32x64xf32> to vector<32x64xf32>
    %cst_180 = arith.constant dense<0.000000e+00> : vector<64x64xf32>
    %147 = tpu.matmul %144, %146, %cst_180 {dimension_numbers = #tpu.dot_dimension_numbers<[1], [0], [0], [1], [0, 0, 1, 1], [], []>} : vector<64x32xf32>, vector<32x64xf32>, vector<64x64xf32> -> vector<64x64xf32>
    %148 = arith.addf %141, %147 : vector<64x64xf32>
    %c2_181 = arith.constant 2 : index
    %c3_182 = arith.constant 3 : index
    %c0_183 = arith.constant 0 : index
    %c0_184 = arith.constant 0 : index
    %149 = vector.load %arg13[%c2_181, %c3_182, %c0_183, %c0_184] : memref<5x12x16x32xf32, #tpu.memory_space<vmem>>, vector<1x8x8x32xf32>
    %150 = vector.shape_cast %149 : vector<1x8x8x32xf32> to vector<8x8x32xf32>
    %151 = vector.shape_cast %150 : vector<8x8x32xf32> to vector<64x32xf32>
    %c3_185 = arith.constant 3 : index
    %c2_186 = arith.constant 2 : index
    %c0_187 = arith.constant 0 : index
    %c0_188 = arith.constant 0 : index
    %152 = vector.load %arg4[%c3_185, %c2_186, %c0_187, %c0_188] : memref<5x5x32x64xf32, #tpu.memory_space<vmem>>, vector<1x1x32x64xf32>
    %153 = vector.shape_cast %152 : vector<1x1x32x64xf32> to vector<32x64xf32>
    %cst_189 = arith.constant dense<0.000000e+00> : vector<64x64xf32>
    %154 = tpu.matmul %151, %153, %cst_189 {dimension_numbers = #tpu.dot_dimension_numbers<[1], [0], [0], [1], [0, 0, 1, 1], [], []>} : vector<64x32xf32>, vector<32x64xf32>, vector<64x64xf32> -> vector<64x64xf32>
    %155 = arith.addf %148, %154 : vector<64x64xf32>
    %c3_190 = arith.constant 3 : index
    %c3_191 = arith.constant 3 : index
    %c0_192 = arith.constant 0 : index
    %c0_193 = arith.constant 0 : index
    %156 = vector.load %arg13[%c3_190, %c3_191, %c0_192, %c0_193] : memref<5x12x16x32xf32, #tpu.memory_space<vmem>>, vector<1x8x8x32xf32>
    %157 = vector.shape_cast %156 : vector<1x8x8x32xf32> to vector<8x8x32xf32>
    %158 = vector.shape_cast %157 : vector<8x8x32xf32> to vector<64x32xf32>
    %c3_194 = arith.constant 3 : index
    %c3_195 = arith.constant 3 : index
    %c0_196 = arith.constant 0 : index
    %c0_197 = arith.constant 0 : index
    %159 = vector.load %arg4[%c3_194, %c3_195, %c0_196, %c0_197] : memref<5x5x32x64xf32, #tpu.memory_space<vmem>>, vector<1x1x32x64xf32>
    %160 = vector.shape_cast %159 : vector<1x1x32x64xf32> to vector<32x64xf32>
    %cst_198 = arith.constant dense<0.000000e+00> : vector<64x64xf32>
    %161 = tpu.matmul %158, %160, %cst_198 {dimension_numbers = #tpu.dot_dimension_numbers<[1], [0], [0], [1], [0, 0, 1, 1], [], []>} : vector<64x32xf32>, vector<32x64xf32>, vector<64x64xf32> -> vector<64x64xf32>
    %162 = arith.addf %155, %161 : vector<64x64xf32>
    %c4_199 = arith.constant 4 : index
    %c3_200 = arith.constant 3 : index
    %c0_201 = arith.constant 0 : index
    %c0_202 = arith.constant 0 : index
    %163 = vector.load %arg13[%c4_199, %c3_200, %c0_201, %c0_202] : memref<5x12x16x32xf32, #tpu.memory_space<vmem>>, vector<1x8x8x32xf32>
    %164 = vector.shape_cast %163 : vector<1x8x8x32xf32> to vector<8x8x32xf32>
    %165 = vector.shape_cast %164 : vector<8x8x32xf32> to vector<64x32xf32>
    %c3_203 = arith.constant 3 : index
    %c4_204 = arith.constant 4 : index
    %c0_205 = arith.constant 0 : index
    %c0_206 = arith.constant 0 : index
    %166 = vector.load %arg4[%c3_203, %c4_204, %c0_205, %c0_206] : memref<5x5x32x64xf32, #tpu.memory_space<vmem>>, vector<1x1x32x64xf32>
    %167 = vector.shape_cast %166 : vector<1x1x32x64xf32> to vector<32x64xf32>
    %cst_207 = arith.constant dense<0.000000e+00> : vector<64x64xf32>
    %168 = tpu.matmul %165, %167, %cst_207 {dimension_numbers = #tpu.dot_dimension_numbers<[1], [0], [0], [1], [0, 0, 1, 1], [], []>} : vector<64x32xf32>, vector<32x64xf32>, vector<64x64xf32> -> vector<64x64xf32>
    %169 = arith.addf %162, %168 : vector<64x64xf32>
    %c0_208 = arith.constant 0 : index
    %c4_209 = arith.constant 4 : index
    %c0_210 = arith.constant 0 : index
    %c0_211 = arith.constant 0 : index
    %170 = vector.load %arg13[%c0_208, %c4_209, %c0_210, %c0_211] : memref<5x12x16x32xf32, #tpu.memory_space<vmem>>, vector<1x8x8x32xf32>
    %171 = vector.shape_cast %170 : vector<1x8x8x32xf32> to vector<8x8x32xf32>
    %172 = vector.shape_cast %171 : vector<8x8x32xf32> to vector<64x32xf32>
    %c4_212 = arith.constant 4 : index
    %c0_213 = arith.constant 0 : index
    %c0_214 = arith.constant 0 : index
    %c0_215 = arith.constant 0 : index
    %173 = vector.load %arg4[%c4_212, %c0_213, %c0_214, %c0_215] : memref<5x5x32x64xf32, #tpu.memory_space<vmem>>, vector<1x1x32x64xf32>
    %174 = vector.shape_cast %173 : vector<1x1x32x64xf32> to vector<32x64xf32>
    %cst_216 = arith.constant dense<0.000000e+00> : vector<64x64xf32>
    %175 = tpu.matmul %172, %174, %cst_216 {dimension_numbers = #tpu.dot_dimension_numbers<[1], [0], [0], [1], [0, 0, 1, 1], [], []>} : vector<64x32xf32>, vector<32x64xf32>, vector<64x64xf32> -> vector<64x64xf32>
    %176 = arith.addf %169, %175 : vector<64x64xf32>
    %c1_217 = arith.constant 1 : index
    %c4_218 = arith.constant 4 : index
    %c0_219 = arith.constant 0 : index
    %c0_220 = arith.constant 0 : index
    %177 = vector.load %arg13[%c1_217, %c4_218, %c0_219, %c0_220] : memref<5x12x16x32xf32, #tpu.memory_space<vmem>>, vector<1x8x8x32xf32>
    %178 = vector.shape_cast %177 : vector<1x8x8x32xf32> to vector<8x8x32xf32>
    %179 = vector.shape_cast %178 : vector<8x8x32xf32> to vector<64x32xf32>
    %c4_221 = arith.constant 4 : index
    %c1_222 = arith.constant 1 : index
    %c0_223 = arith.constant 0 : index
    %c0_224 = arith.constant 0 : index
    %180 = vector.load %arg4[%c4_221, %c1_222, %c0_223, %c0_224] : memref<5x5x32x64xf32, #tpu.memory_space<vmem>>, vector<1x1x32x64xf32>
    %181 = vector.shape_cast %180 : vector<1x1x32x64xf32> to vector<32x64xf32>
    %cst_225 = arith.constant dense<0.000000e+00> : vector<64x64xf32>
    %182 = tpu.matmul %179, %181, %cst_225 {dimension_numbers = #tpu.dot_dimension_numbers<[1], [0], [0], [1], [0, 0, 1, 1], [], []>} : vector<64x32xf32>, vector<32x64xf32>, vector<64x64xf32> -> vector<64x64xf32>
    %183 = arith.addf %176, %182 : vector<64x64xf32>
    %c2_226 = arith.constant 2 : index
    %c4_227 = arith.constant 4 : index
    %c0_228 = arith.constant 0 : index
    %c0_229 = arith.constant 0 : index
    %184 = vector.load %arg13[%c2_226, %c4_227, %c0_228, %c0_229] : memref<5x12x16x32xf32, #tpu.memory_space<vmem>>, vector<1x8x8x32xf32>
    %185 = vector.shape_cast %184 : vector<1x8x8x32xf32> to vector<8x8x32xf32>
    %186 = vector.shape_cast %185 : vector<8x8x32xf32> to vector<64x32xf32>
    %c4_230 = arith.constant 4 : index
    %c2_231 = arith.constant 2 : index
    %c0_232 = arith.constant 0 : index
    %c0_233 = arith.constant 0 : index
    %187 = vector.load %arg4[%c4_230, %c2_231, %c0_232, %c0_233] : memref<5x5x32x64xf32, #tpu.memory_space<vmem>>, vector<1x1x32x64xf32>
    %188 = vector.shape_cast %187 : vector<1x1x32x64xf32> to vector<32x64xf32>
    %cst_234 = arith.constant dense<0.000000e+00> : vector<64x64xf32>
    %189 = tpu.matmul %186, %188, %cst_234 {dimension_numbers = #tpu.dot_dimension_numbers<[1], [0], [0], [1], [0, 0, 1, 1], [], []>} : vector<64x32xf32>, vector<32x64xf32>, vector<64x64xf32> -> vector<64x64xf32>
    %190 = arith.addf %183, %189 : vector<64x64xf32>
    %c3_235 = arith.constant 3 : index
    %c4_236 = arith.constant 4 : index
    %c0_237 = arith.constant 0 : index
    %c0_238 = arith.constant 0 : index
    %191 = vector.load %arg13[%c3_235, %c4_236, %c0_237, %c0_238] : memref<5x12x16x32xf32, #tpu.memory_space<vmem>>, vector<1x8x8x32xf32>
    %192 = vector.shape_cast %191 : vector<1x8x8x32xf32> to vector<8x8x32xf32>
    %193 = vector.shape_cast %192 : vector<8x8x32xf32> to vector<64x32xf32>
    %c4_239 = arith.constant 4 : index
    %c3_240 = arith.constant 3 : index
    %c0_241 = arith.constant 0 : index
    %c0_242 = arith.constant 0 : index
    %194 = vector.load %arg4[%c4_239, %c3_240, %c0_241, %c0_242] : memref<5x5x32x64xf32, #tpu.memory_space<vmem>>, vector<1x1x32x64xf32>
    %195 = vector.shape_cast %194 : vector<1x1x32x64xf32> to vector<32x64xf32>
    %cst_243 = arith.constant dense<0.000000e+00> : vector<64x64xf32>
    %196 = tpu.matmul %193, %195, %cst_243 {dimension_numbers = #tpu.dot_dimension_numbers<[1], [0], [0], [1], [0, 0, 1, 1], [], []>} : vector<64x32xf32>, vector<32x64xf32>, vector<64x64xf32> -> vector<64x64xf32>
    %197 = arith.addf %190, %196 : vector<64x64xf32>
    %c4_244 = arith.constant 4 : index
    %c4_245 = arith.constant 4 : index
    %c0_246 = arith.constant 0 : index
    %c0_247 = arith.constant 0 : index
    %198 = vector.load %arg13[%c4_244, %c4_245, %c0_246, %c0_247] : memref<5x12x16x32xf32, #tpu.memory_space<vmem>>, vector<1x8x8x32xf32>
    %199 = vector.shape_cast %198 : vector<1x8x8x32xf32> to vector<8x8x32xf32>
    %200 = vector.shape_cast %199 : vector<8x8x32xf32> to vector<64x32xf32>
    %c4_248 = arith.constant 4 : index
    %c4_249 = arith.constant 4 : index
    %c0_250 = arith.constant 0 : index
    %c0_251 = arith.constant 0 : index
    %201 = vector.load %arg4[%c4_248, %c4_249, %c0_250, %c0_251] : memref<5x5x32x64xf32, #tpu.memory_space<vmem>>, vector<1x1x32x64xf32>
    %202 = vector.shape_cast %201 : vector<1x1x32x64xf32> to vector<32x64xf32>
    %cst_252 = arith.constant dense<0.000000e+00> : vector<64x64xf32>
    %203 = tpu.matmul %200, %202, %cst_252 {dimension_numbers = #tpu.dot_dimension_numbers<[1], [0], [0], [1], [0, 0, 1, 1], [], []>} : vector<64x32xf32>, vector<32x64xf32>, vector<64x64xf32> -> vector<64x64xf32>
    %204 = arith.addf %197, %203 : vector<64x64xf32>
    %c0_253 = arith.constant 0 : index
    %c0_254 = arith.constant 0 : index
    %205 = vector.load %arg5[%c0_253, %c0_254] : memref<1x64xf32, #tpu.memory_space<vmem>>, vector<1x64xf32>
    %206 = vector.broadcast %205 : vector<1x64xf32> to vector<64x64xf32>
    %207 = arith.addf %204, %206 : vector<64x64xf32>
    %cst_255 = arith.constant dense<0.000000e+00> : vector<64xf32>
    %208 = vector.multi_reduction <add>, %207, %cst_255 [0] : vector<64x64xf32> to vector<64xf32>
    %209 = vector.shape_cast %208 : vector<64xf32> to vector<1x64xf32>
    %210 = vector.extract_strided_slice %209 {offsets = [0, 0], sizes = [1, 32], strides = [1, 1]} : vector<1x64xf32> to vector<1x32xf32>
    %211 = vector.extract_strided_slice %209 {offsets = [0, 32], sizes = [1, 32], strides = [1, 1]} : vector<1x64xf32> to vector<1x32xf32>
    %212 = arith.addf %210, %211 : vector<1x32xf32>
    %cst_256 = arith.constant 1.562500e-02 : f32
    %213 = vector.broadcast %cst_256 : f32 to vector<1x32xf32>
    %214 = arith.mulf %212, %213 : vector<1x32xf32>
    %215 = vector.shape_cast %214 : vector<1x32xf32> to vector<1x32xf32>
    %216 = vector.broadcast %215 : vector<1x32xf32> to vector<8x32xf32>
    %c0_257 = arith.constant 0 : index
    %c0_258 = arith.constant 0 : index
    %217 = vector.load %arg6[%c0_257, %c0_258] : memref<32x8xf32, #tpu.memory_space<vmem>>, vector<32x8xf32>
    %cst_259 = arith.constant dense<0.000000e+00> : vector<8x8xf32>
    %218 = tpu.matmul %216, %217, %cst_259 {dimension_numbers = #tpu.dot_dimension_numbers<[1], [0], [0], [1], [0, 0, 1, 1], [], []>} : vector<8x32xf32>, vector<32x8xf32>, vector<8x8xf32> -> vector<8x8xf32>
    %c0_260 = arith.constant 0 : index
    %c0_261 = arith.constant 0 : index
    %219 = vector.load %arg7[%c0_260, %c0_261] : memref<1x8xf32, #tpu.memory_space<vmem>>, vector<1x8xf32>
    %220 = vector.broadcast %219 : vector<1x8xf32> to vector<8x8xf32>
    %221 = arith.addf %218, %220 : vector<8x8xf32>
    %cst_262 = arith.constant 0.000000e+00 : f32
    %222 = vector.broadcast %cst_262 : f32 to vector<8x8xf32>
    %223 = arith.maximumf %221, %222 : vector<8x8xf32>
    %c0_263 = arith.constant 0 : index
    %c0_264 = arith.constant 0 : index
    %224 = vector.load %arg8[%c0_263, %c0_264] : memref<8x64xf32, #tpu.memory_space<vmem>>, vector<8x64xf32>
    %cst_265 = arith.constant dense<0.000000e+00> : vector<8x64xf32>
    %225 = tpu.matmul %223, %224, %cst_265 {dimension_numbers = #tpu.dot_dimension_numbers<[1], [0], [0], [1], [0, 0, 1, 1], [], []>} : vector<8x8xf32>, vector<8x64xf32>, vector<8x64xf32> -> vector<8x64xf32>
    %c0_266 = arith.constant 0 : index
    %c0_267 = arith.constant 0 : index
    %226 = vector.load %arg9[%c0_266, %c0_267] : memref<1x64xf32, #tpu.memory_space<vmem>>, vector<1x64xf32>
    %227 = vector.broadcast %226 : vector<1x64xf32> to vector<8x64xf32>
    %228 = arith.addf %225, %227 : vector<8x64xf32>
    %cst_268 = arith.constant dense<0xFF800000> : vector<8xf32>
    %229 = vector.multi_reduction <maximumf>, %228, %cst_268 [1] : vector<8x64xf32> to vector<8xf32>
    %230 = vector.shape_cast %229 : vector<8xf32> to vector<8x1xf32>
    %231 = vector.broadcast %230 : vector<8x1xf32> to vector<8x64xf32>
    %232 = arith.subf %228, %231 : vector<8x64xf32>
    %233 = math.exp %232 : vector<8x64xf32>
    %cst_269 = arith.constant dense<0.000000e+00> : vector<8xf32>
    %234 = vector.multi_reduction <add>, %233, %cst_269 [1] : vector<8x64xf32> to vector<8xf32>
    %235 = vector.shape_cast %234 : vector<8xf32> to vector<8x1xf32>
    %236 = vector.broadcast %235 : vector<8x1xf32> to vector<8x64xf32>
    %237 = arith.divf %233, %236 : vector<8x64xf32>
    %238 = vector.extract_strided_slice %237 {offsets = [0, 0], sizes = [1, 32], strides = [1, 1]} : vector<8x64xf32> to vector<1x32xf32>
    %239 = vector.extract_strided_slice %237 {offsets = [0, 32], sizes = [1, 32], strides = [1, 1]} : vector<8x64xf32> to vector<1x32xf32>
    %240 = vector.extract_strided_slice %207 {offsets = [0, 32], sizes = [64, 32], strides = [1, 1]} : vector<64x64xf32> to vector<64x32xf32>
    %241 = vector.broadcast %238 : vector<1x32xf32> to vector<64x32xf32>
    %242 = arith.mulf %240, %241 : vector<64x32xf32>
    %243 = vector.extract_strided_slice %207 {offsets = [0, 0], sizes = [64, 32], strides = [1, 1]} : vector<64x64xf32> to vector<64x32xf32>
    %244 = vector.broadcast %239 : vector<1x32xf32> to vector<64x32xf32>
    %245 = arith.mulf %243, %244 : vector<64x32xf32>
    %246 = arith.addf %242, %245 : vector<64x32xf32>
    %247 = vector.shape_cast %246 : vector<64x32xf32> to vector<8x8x32xf32>
    %c0_270 = arith.constant 0 : index
    %c0_271 = arith.constant 0 : index
    %c0_272 = arith.constant 0 : index
    %c0_273 = arith.constant 0 : index
    %248 = vector.load %arg10[%c0_270, %c0_271, %c0_272, %c0_273] : memref<1x8x8x32xf32, #tpu.memory_space<vmem>>, vector<1x8x8x32xf32>
    %249 = vector.shape_cast %248 : vector<1x8x8x32xf32> to vector<8x8x32xf32>
    %250 = vector.shape_cast %247 : vector<8x8x32xf32> to vector<1x8x8x32xf32>
    tpu.vector_store %arg10[%c0_270, %c0_271, %c0_272, %c0_273], %250 {strides = array<i32>} : memref<1x8x8x32xf32, #tpu.memory_space<vmem>>, vector<1x8x8x32xf32>,
    %cst_274 = arith.constant dense<0.000000e+00> : vector<32xf32>
    %251 = vector.multi_reduction <add>, %246, %cst_274 [0] : vector<64x32xf32> to vector<32xf32>
    %252 = vector.shape_cast %251 : vector<32xf32> to vector<1x32xf32>
    %253 = arith.mulf %246, %246 : vector<64x32xf32>
    %cst_275 = arith.constant dense<0.000000e+00> : vector<32xf32>
    %254 = vector.multi_reduction <add>, %253, %cst_275 [0] : vector<64x32xf32> to vector<32xf32>
    %255 = vector.shape_cast %254 : vector<32xf32> to vector<1x32xf32>
    %256 = vector.shape_cast %252 : vector<1x32xf32> to vector<1x32xf32>
    %257 = vector.broadcast %256 : vector<1x32xf32> to vector<8x32xf32>
    %c0_276 = arith.constant 0 : index
    %c0_277 = arith.constant 0 : index
    %c0_278 = arith.constant 0 : index
    %258 = vector.load %arg11[%c0_276, %c0_277, %c0_278] : memref<1x8x32xf32, #tpu.memory_space<vmem>>, vector<1x8x32xf32>
    %259 = vector.shape_cast %258 : vector<1x8x32xf32> to vector<8x32xf32>
    %260 = vector.shape_cast %257 : vector<8x32xf32> to vector<1x8x32xf32>
    tpu.vector_store %arg11[%c0_276, %c0_277, %c0_278], %260 {strides = array<i32>} : memref<1x8x32xf32, #tpu.memory_space<vmem>>, vector<1x8x32xf32>,
    %261 = vector.shape_cast %255 : vector<1x32xf32> to vector<1x32xf32>
    %262 = vector.broadcast %261 : vector<1x32xf32> to vector<8x32xf32>
    %c0_279 = arith.constant 0 : index
    %c0_280 = arith.constant 0 : index
    %c0_281 = arith.constant 0 : index
    %263 = vector.load %arg12[%c0_279, %c0_280, %c0_281] : memref<1x8x32xf32, #tpu.memory_space<vmem>>, vector<1x8x32xf32>
    %264 = vector.shape_cast %263 : vector<1x8x32xf32> to vector<8x32xf32>
    %265 = vector.shape_cast %262 : vector<8x32xf32> to vector<1x8x32xf32>
    tpu.vector_store %arg12[%c0_279, %c0_280, %c0_281], %265 {strides = array<i32>} : memref<1x8x32xf32, #tpu.memory_space<vmem>>, vector<1x8x32xf32>,
    return
  }
  func.func @transform_0(%arg0: i32) -> (i32, i32, i32, i32) {
    %c0_i32 = arith.constant 0 : i32
    %c0_i32_0 = arith.constant 0 : i32
    %c0_i32_1 = arith.constant 0 : i32
    %c0_i32_2 = arith.constant 0 : i32
    return %arg0, %c0_i32, %c0_i32_0, %c0_i32_1 : i32, i32, i32, i32
  }
  func.func @transform_1(%arg0: i32) -> (i32, i32) {
    %c0_i32 = arith.constant 0 : i32
    %c0_i32_0 = arith.constant 0 : i32
    %c0_i32_1 = arith.constant 0 : i32
    return %c0_i32, %c0_i32_0 : i32, i32
  }
  func.func @transform_2(%arg0: i32) -> (i32, i32) {
    %c0_i32 = arith.constant 0 : i32
    %c0_i32_0 = arith.constant 0 : i32
    %c0_i32_1 = arith.constant 0 : i32
    return %c0_i32, %c0_i32_0 : i32, i32
  }
  func.func @transform_3(%arg0: i32) -> (i32, i32, i32, i32) {
    %c0_i32 = arith.constant 0 : i32
    %c0_i32_0 = arith.constant 0 : i32
    %c0_i32_1 = arith.constant 0 : i32
    %c0_i32_2 = arith.constant 0 : i32
    %c0_i32_3 = arith.constant 0 : i32
    return %c0_i32, %c0_i32_0, %c0_i32_1, %c0_i32_2 : i32, i32, i32, i32
  }
  func.func @transform_4(%arg0: i32) -> (i32, i32) {
    %c0_i32 = arith.constant 0 : i32
    %c0_i32_0 = arith.constant 0 : i32
    %c0_i32_1 = arith.constant 0 : i32
    return %c0_i32, %c0_i32_0 : i32, i32
  }
  func.func @transform_5(%arg0: i32) -> (i32, i32) {
    %c0_i32 = arith.constant 0 : i32
    %c0_i32_0 = arith.constant 0 : i32
    %c0_i32_1 = arith.constant 0 : i32
    return %c0_i32, %c0_i32_0 : i32, i32
  }
  func.func @transform_6(%arg0: i32) -> (i32, i32) {
    %c0_i32 = arith.constant 0 : i32
    %c0_i32_0 = arith.constant 0 : i32
    %c0_i32_1 = arith.constant 0 : i32
    return %c0_i32, %c0_i32_0 : i32, i32
  }
  func.func @transform_7(%arg0: i32) -> (i32, i32) {
    %c0_i32 = arith.constant 0 : i32
    %c0_i32_0 = arith.constant 0 : i32
    %c0_i32_1 = arith.constant 0 : i32
    return %c0_i32, %c0_i32_0 : i32, i32
  }
  func.func @transform_8(%arg0: i32) -> (i32, i32) {
    %c0_i32 = arith.constant 0 : i32
    %c0_i32_0 = arith.constant 0 : i32
    %c0_i32_1 = arith.constant 0 : i32
    return %c0_i32, %c0_i32_0 : i32, i32
  }
  func.func @transform_9(%arg0: i32) -> (i32, i32, i32, i32) {
    %c0_i32 = arith.constant 0 : i32
    %c0_i32_0 = arith.constant 0 : i32
    %c0_i32_1 = arith.constant 0 : i32
    %c0_i32_2 = arith.constant 0 : i32
    return %arg0, %c0_i32, %c0_i32_0, %c0_i32_1 : i32, i32, i32, i32
  }
  func.func @transform_10(%arg0: i32) -> (i32, i32, i32) {
    %c0_i32 = arith.constant 0 : i32
    %c0_i32_0 = arith.constant 0 : i32
    %c0_i32_1 = arith.constant 0 : i32
    return %arg0, %c0_i32, %c0_i32_0 : i32, i32, i32
  }
  func.func @transform_11(%arg0: i32) -> (i32, i32, i32) {
    %c0_i32 = arith.constant 0 : i32
    %c0_i32_0 = arith.constant 0 : i32
    %c0_i32_1 = arith.constant 0 : i32
    return %arg0, %c0_i32, %c0_i32_0 : i32, i32, i32
  }
}

module attributes {stable_mosaic.version = 11 : i64} {
  func.func @_conv2_kernel(%arg0: i32, %arg1: memref<128x32xf32, #tpu.memory_space<vmem>>, %arg2: memref<1x32xf32, #tpu.memory_space<vmem>>, %arg3: memref<1x32xf32, #tpu.memory_space<vmem>>, %arg4: memref<32x64xf32, #tpu.memory_space<vmem>>, %arg5: memref<1x64xf32, #tpu.memory_space<vmem>>, %arg6: memref<128x64xf32, #tpu.memory_space<vmem>>, %arg7: memref<1x8x64xf32, #tpu.memory_space<vmem>>, %arg8: memref<1x8x64xf32, #tpu.memory_space<vmem>>) attributes {dimension_semantics = [#tpu.dimension_semantics<parallel>], iteration_bounds = array<i64: 1>, scalar_prefetch = 0 : i64, scratch_operands = 0 : i64, tpu.core_type = #tpu.core_type<tc>, window_params = [{transform_indices = @transform_0, window_bounds = array<i64: 128, 32>}, {pipeline_mode = #tpu.pipeline_mode<synchronous>, transform_indices = @transform_1, window_bounds = array<i64: 1, 32>}, {pipeline_mode = #tpu.pipeline_mode<synchronous>, transform_indices = @transform_2, window_bounds = array<i64: 1, 32>}, {pipeline_mode = #tpu.pipeline_mode<synchronous>, transform_indices = @transform_3, window_bounds = array<i64: 32, 64>}, {pipeline_mode = #tpu.pipeline_mode<synchronous>, transform_indices = @transform_4, window_bounds = array<i64: 1, 64>}, {transform_indices = @transform_5, window_bounds = array<i64: 128, 64>}, {transform_indices = @transform_6, window_bounds = array<i64: 1, 8, 64>}, {transform_indices = @transform_7, window_bounds = array<i64: 1, 8, 64>}]} {
    %c0 = arith.constant 0 : index
    %c0_0 = arith.constant 0 : index
    %0 = vector.load %arg1[%c0, %c0_0] : memref<128x32xf32, #tpu.memory_space<vmem>>, vector<128x32xf32>
    %c0_1 = arith.constant 0 : index
    %c0_2 = arith.constant 0 : index
    %1 = vector.load %arg2[%c0_1, %c0_2] : memref<1x32xf32, #tpu.memory_space<vmem>>, vector<1x32xf32>
    %2 = vector.broadcast %1 : vector<1x32xf32> to vector<128x32xf32>
    %3 = arith.mulf %0, %2 : vector<128x32xf32>
    %c0_3 = arith.constant 0 : index
    %c0_4 = arith.constant 0 : index
    %4 = vector.load %arg3[%c0_3, %c0_4] : memref<1x32xf32, #tpu.memory_space<vmem>>, vector<1x32xf32>
    %5 = vector.broadcast %4 : vector<1x32xf32> to vector<128x32xf32>
    %6 = arith.addf %3, %5 : vector<128x32xf32>
    %c0_5 = arith.constant 0 : index
    %c0_6 = arith.constant 0 : index
    %7 = vector.load %arg4[%c0_5, %c0_6] : memref<32x64xf32, #tpu.memory_space<vmem>>, vector<32x64xf32>
    %cst = arith.constant dense<0.000000e+00> : vector<128x64xf32>
    %8 = tpu.matmul %6, %7, %cst {dimension_numbers = #tpu.dot_dimension_numbers<[1], [0], [0], [1], [0, 0, 1, 1], [], []>} : vector<128x32xf32>, vector<32x64xf32>, vector<128x64xf32> -> vector<128x64xf32>
    %c0_7 = arith.constant 0 : index
    %c0_8 = arith.constant 0 : index
    %9 = vector.load %arg5[%c0_7, %c0_8] : memref<1x64xf32, #tpu.memory_space<vmem>>, vector<1x64xf32>
    %10 = vector.broadcast %9 : vector<1x64xf32> to vector<128x64xf32>
    %11 = arith.addf %8, %10 : vector<128x64xf32>
    %c0_9 = arith.constant 0 : index
    %c0_10 = arith.constant 0 : index
    %12 = vector.load %arg6[%c0_9, %c0_10] : memref<128x64xf32, #tpu.memory_space<vmem>>, vector<128x64xf32>
    tpu.vector_store %arg6[%c0_9, %c0_10], %11 {strides = array<i32>} : memref<128x64xf32, #tpu.memory_space<vmem>>, vector<128x64xf32>,
    %cst_11 = arith.constant dense<0.000000e+00> : vector<64xf32>
    %13 = vector.multi_reduction <add>, %11, %cst_11 [0] : vector<128x64xf32> to vector<64xf32>
    %14 = vector.shape_cast %13 : vector<64xf32> to vector<1x64xf32>
    %15 = arith.mulf %11, %11 : vector<128x64xf32>
    %cst_12 = arith.constant dense<0.000000e+00> : vector<64xf32>
    %16 = vector.multi_reduction <add>, %15, %cst_12 [0] : vector<128x64xf32> to vector<64xf32>
    %17 = vector.shape_cast %16 : vector<64xf32> to vector<1x64xf32>
    %18 = vector.shape_cast %14 : vector<1x64xf32> to vector<1x64xf32>
    %19 = vector.broadcast %18 : vector<1x64xf32> to vector<8x64xf32>
    %c0_13 = arith.constant 0 : index
    %c0_14 = arith.constant 0 : index
    %c0_15 = arith.constant 0 : index
    %20 = vector.load %arg7[%c0_13, %c0_14, %c0_15] : memref<1x8x64xf32, #tpu.memory_space<vmem>>, vector<1x8x64xf32>
    %21 = vector.shape_cast %20 : vector<1x8x64xf32> to vector<8x64xf32>
    %22 = vector.shape_cast %19 : vector<8x64xf32> to vector<1x8x64xf32>
    tpu.vector_store %arg7[%c0_13, %c0_14, %c0_15], %22 {strides = array<i32>} : memref<1x8x64xf32, #tpu.memory_space<vmem>>, vector<1x8x64xf32>,
    %23 = vector.shape_cast %17 : vector<1x64xf32> to vector<1x64xf32>
    %24 = vector.broadcast %23 : vector<1x64xf32> to vector<8x64xf32>
    %c0_16 = arith.constant 0 : index
    %c0_17 = arith.constant 0 : index
    %c0_18 = arith.constant 0 : index
    %25 = vector.load %arg8[%c0_16, %c0_17, %c0_18] : memref<1x8x64xf32, #tpu.memory_space<vmem>>, vector<1x8x64xf32>
    %26 = vector.shape_cast %25 : vector<1x8x64xf32> to vector<8x64xf32>
    %27 = vector.shape_cast %24 : vector<8x64xf32> to vector<1x8x64xf32>
    tpu.vector_store %arg8[%c0_16, %c0_17, %c0_18], %27 {strides = array<i32>} : memref<1x8x64xf32, #tpu.memory_space<vmem>>, vector<1x8x64xf32>,
    return
  }
  func.func @transform_0(%arg0: i32) -> (i32, i32) {
    %c0_i32 = arith.constant 0 : i32
    %c0_i32_0 = arith.constant 0 : i32
    return %arg0, %c0_i32 : i32, i32
  }
  func.func @transform_1(%arg0: i32) -> (i32, i32) {
    %c0_i32 = arith.constant 0 : i32
    %c0_i32_0 = arith.constant 0 : i32
    %c0_i32_1 = arith.constant 0 : i32
    return %c0_i32, %c0_i32_0 : i32, i32
  }
  func.func @transform_2(%arg0: i32) -> (i32, i32) {
    %c0_i32 = arith.constant 0 : i32
    %c0_i32_0 = arith.constant 0 : i32
    %c0_i32_1 = arith.constant 0 : i32
    return %c0_i32, %c0_i32_0 : i32, i32
  }
  func.func @transform_3(%arg0: i32) -> (i32, i32) {
    %c0_i32 = arith.constant 0 : i32
    %c0_i32_0 = arith.constant 0 : i32
    %c0_i32_1 = arith.constant 0 : i32
    return %c0_i32, %c0_i32_0 : i32, i32
  }
  func.func @transform_4(%arg0: i32) -> (i32, i32) {
    %c0_i32 = arith.constant 0 : i32
    %c0_i32_0 = arith.constant 0 : i32
    %c0_i32_1 = arith.constant 0 : i32
    return %c0_i32, %c0_i32_0 : i32, i32
  }
  func.func @transform_5(%arg0: i32) -> (i32, i32) {
    %c0_i32 = arith.constant 0 : i32
    %c0_i32_0 = arith.constant 0 : i32
    return %arg0, %c0_i32 : i32, i32
  }
  func.func @transform_6(%arg0: i32) -> (i32, i32, i32) {
    %c0_i32 = arith.constant 0 : i32
    %c0_i32_0 = arith.constant 0 : i32
    %c0_i32_1 = arith.constant 0 : i32
    return %arg0, %c0_i32, %c0_i32_0 : i32, i32, i32
  }
  func.func @transform_7(%arg0: i32) -> (i32, i32, i32) {
    %c0_i32 = arith.constant 0 : i32
    %c0_i32_0 = arith.constant 0 : i32
    %c0_i32_1 = arith.constant 0 : i32
    return %arg0, %c0_i32, %c0_i32_0 : i32, i32, i32
  }
}

module attributes {stable_mosaic.version = 11 : i64} {
  func.func @_fuse_kernel(%arg0: i32, %arg1: memref<64x128xf32, #tpu.memory_space<vmem>>, %arg2: memref<64x128xf32, #tpu.memory_space<vmem>>, %arg3: memref<1x128xf32, #tpu.memory_space<vmem>>, %arg4: memref<1x128xf32, #tpu.memory_space<vmem>>, %arg5: memref<1x128xf32, #tpu.memory_space<vmem>>, %arg6: memref<1x128xf32, #tpu.memory_space<vmem>>, %arg7: memref<64x128xf32, #tpu.memory_space<vmem>>) attributes {dimension_semantics = [#tpu.dimension_semantics<parallel>], iteration_bounds = array<i64: 1>, scalar_prefetch = 0 : i64, scratch_operands = 0 : i64, tpu.core_type = #tpu.core_type<tc>, window_params = [{transform_indices = @transform_0, window_bounds = array<i64: 64, 128>}, {transform_indices = @transform_1, window_bounds = array<i64: 64, 128>}, {pipeline_mode = #tpu.pipeline_mode<synchronous>, transform_indices = @transform_2, window_bounds = array<i64: 1, 128>}, {pipeline_mode = #tpu.pipeline_mode<synchronous>, transform_indices = @transform_3, window_bounds = array<i64: 1, 128>}, {pipeline_mode = #tpu.pipeline_mode<synchronous>, transform_indices = @transform_4, window_bounds = array<i64: 1, 128>}, {pipeline_mode = #tpu.pipeline_mode<synchronous>, transform_indices = @transform_5, window_bounds = array<i64: 1, 128>}, {transform_indices = @transform_6, window_bounds = array<i64: 64, 128>}]} {
    %c0 = arith.constant 0 : index
    %c0_0 = arith.constant 0 : index
    %0 = vector.load %arg1[%c0, %c0_0] : memref<64x128xf32, #tpu.memory_space<vmem>>, vector<64x128xf32>
    %c0_1 = arith.constant 0 : index
    %c0_2 = arith.constant 0 : index
    %1 = vector.load %arg3[%c0_1, %c0_2] : memref<1x128xf32, #tpu.memory_space<vmem>>, vector<1x128xf32>
    %2 = vector.broadcast %1 : vector<1x128xf32> to vector<64x128xf32>
    %3 = arith.mulf %0, %2 : vector<64x128xf32>
    %c0_3 = arith.constant 0 : index
    %c0_4 = arith.constant 0 : index
    %4 = vector.load %arg4[%c0_3, %c0_4] : memref<1x128xf32, #tpu.memory_space<vmem>>, vector<1x128xf32>
    %5 = vector.broadcast %4 : vector<1x128xf32> to vector<64x128xf32>
    %6 = arith.addf %3, %5 : vector<64x128xf32>
    %c0_5 = arith.constant 0 : index
    %c0_6 = arith.constant 0 : index
    %7 = vector.load %arg2[%c0_5, %c0_6] : memref<64x128xf32, #tpu.memory_space<vmem>>, vector<64x128xf32>
    %c0_7 = arith.constant 0 : index
    %c0_8 = arith.constant 0 : index
    %8 = vector.load %arg5[%c0_7, %c0_8] : memref<1x128xf32, #tpu.memory_space<vmem>>, vector<1x128xf32>
    %9 = vector.broadcast %8 : vector<1x128xf32> to vector<64x128xf32>
    %10 = arith.mulf %7, %9 : vector<64x128xf32>
    %11 = arith.addf %6, %10 : vector<64x128xf32>
    %c0_9 = arith.constant 0 : index
    %c0_10 = arith.constant 0 : index
    %12 = vector.load %arg6[%c0_9, %c0_10] : memref<1x128xf32, #tpu.memory_space<vmem>>, vector<1x128xf32>
    %13 = vector.broadcast %12 : vector<1x128xf32> to vector<64x128xf32>
    %14 = arith.addf %11, %13 : vector<64x128xf32>
    %c0_11 = arith.constant 0 : index
    %c0_12 = arith.constant 0 : index
    %15 = vector.load %arg7[%c0_11, %c0_12] : memref<64x128xf32, #tpu.memory_space<vmem>>, vector<64x128xf32>
    tpu.vector_store %arg7[%c0_11, %c0_12], %14 {strides = array<i32>} : memref<64x128xf32, #tpu.memory_space<vmem>>, vector<64x128xf32>,
    return
  }
  func.func @transform_0(%arg0: i32) -> (i32, i32) {
    %c0_i32 = arith.constant 0 : i32
    %c0_i32_0 = arith.constant 0 : i32
    return %arg0, %c0_i32 : i32, i32
  }
  func.func @transform_1(%arg0: i32) -> (i32, i32) {
    %c0_i32 = arith.constant 0 : i32
    %c0_i32_0 = arith.constant 0 : i32
    return %arg0, %c0_i32 : i32, i32
  }
  func.func @transform_2(%arg0: i32) -> (i32, i32) {
    %c0_i32 = arith.constant 0 : i32
    %c0_i32_0 = arith.constant 0 : i32
    %c0_i32_1 = arith.constant 0 : i32
    return %c0_i32, %c0_i32_0 : i32, i32
  }
  func.func @transform_3(%arg0: i32) -> (i32, i32) {
    %c0_i32 = arith.constant 0 : i32
    %c0_i32_0 = arith.constant 0 : i32
    %c0_i32_1 = arith.constant 0 : i32
    return %c0_i32, %c0_i32_0 : i32, i32
  }
  func.func @transform_4(%arg0: i32) -> (i32, i32) {
    %c0_i32 = arith.constant 0 : i32
    %c0_i32_0 = arith.constant 0 : i32
    %c0_i32_1 = arith.constant 0 : i32
    return %c0_i32, %c0_i32_0 : i32, i32
  }
  func.func @transform_5(%arg0: i32) -> (i32, i32) {
    %c0_i32 = arith.constant 0 : i32
    %c0_i32_0 = arith.constant 0 : i32
    %c0_i32_1 = arith.constant 0 : i32
    return %c0_i32, %c0_i32_0 : i32, i32
  }
  func.func @transform_6(%arg0: i32) -> (i32, i32) {
    %c0_i32 = arith.constant 0 : i32
    %c0_i32_0 = arith.constant 0 : i32
    return %arg0, %c0_i32 : i32, i32
  }
}

</mosaic_0001>

<bundles_post_ra>
// kernel: sk_unit_forward.7
= control target key start
LH: loop header
LB: loop body
LE: loop exit
PB: predicated region body
PF: predicated region fallthrough
CT: control target
= control target key end

     0   :  { %s242_s0 = inlined_call_operand.vmem [shape: f32[64,128], index: 0, kind: input, shape index: {}]   ;;  %s243_s1 = inlined_call_operand.vmem [shape: f32[64,128], index: 1, kind: input, shape index: {}]   ;;  %s244_s2 = inlined_call_operand.vmem [shape: f32[1,128], index: 2, kind: input, shape index: {}]   ;;  %s245_s3 = inlined_call_operand.vmem [shape: f32[1,128], index: 3, kind: input, shape index: {}]   ;;  %s246_s4 = inlined_call_operand.vmem [shape: f32[1,128], index: 4, kind: input, shape index: {}]   ;;  %s247_s5 = inlined_call_operand.vmem [shape: f32[1,128], index: 5, kind: input, shape index: {}]   ;;  %s248_s6 = inlined_call_operand.vmem [shape: f32[64,128], index: 6, kind: output, shape index: {}]  }
   0x1   :  { %v23_v0 = vld [vmem:[%s242_s0] sm:$0xff]  ;;  %v24_v8 = vld [vmem:[%s242_s0 + $0x8] sm:$0xff]  ;;  %v25_v10 = vld [vmem:[%s242_s0 + $0x10] sm:$0xff] }
   0x2   :  { %v119_v1 = vld [vmem:[%s244_s2] ss:$0 sm:$0xff]  ;;  %v62_v9 = vld [vmem:[%s243_s1 + $0x8] sm:$0xff]  ;;  %v63_v15 = vld [vmem:[%s243_s1 + $0x10] sm:$0xff] }
   0x3   :  { %v120_v2 = vld [vmem:[%s245_s3] ss:$0 sm:$0xff]  ;;  %v38_v3 = vmul.f32 %v119_v1, %v23_v0  ;;  %v39_v12 = vmul.f32 %v119_v1, %v24_v8  ;;  %v40_v14 = vmul.f32 %v119_v1, %v25_v10  ;;  %v26_v16 = vld [vmem:[%s242_s0 + $0x18] sm:$0xff]  ;;  %v28_v23 = vld [vmem:[%s242_s0 + $0x28] sm:$0xff] }
   0x4   :  { %v61_v4 = vld [vmem:[%s243_s1] sm:$0xff]  ;;  %v64_v17 = vld [vmem:[%s243_s1 + $0x18] sm:$0xff]  ;;  %v41_v19 = vmul.f32 %v119_v1, %v26_v16  ;;  %v66_v28 = vld [vmem:[%s243_s1 + $0x28] sm:$0xff]  ;;  %v43_v33 = vmul.f32 %v119_v1, %v28_v23 }
   0x5   :  { %v121_v5 = vld [vmem:[%s246_s4] ss:$0 sm:$0xff]  ;;  %v53_v11 = vadd.f32 %v120_v2, %v38_v3  ;;  %v54_v25 = vadd.f32 %v120_v2, %v39_v12  ;;  %v55_v26 = vadd.f32 %v120_v2, %v40_v14  ;;  %v29_v29 = vld [vmem:[%s242_s0 + $0x30] sm:$0xff]  ;;  %v30_v35 = vld [vmem:[%s242_s0 + $0x38] sm:$0xff] }
   0x6   :  { %v76_v6 = vmul.f32 %v121_v5, %v61_v4  ;;  %v122_v7 = vld [vmem:[%s247_s5] ss:$0 sm:$0xff]  ;;  %v77_v13 = vmul.f32 %v121_v5, %v62_v9  ;;  %v78_v18 = vmul.f32 %v121_v5, %v63_v15  ;;  %v79_v20 = vmul.f32 %v121_v5, %v64_v17  ;;  %v67_v30 = vld [vmem:[%s243_s1 + $0x30] sm:$0xff]  ;;  %v68_v40 = vld [vmem:[%s243_s1 + $0x38] sm:$0xff] }
   0x7   :  { %v27_v21 = vld [vmem:[%s242_s0 + $0x20] sm:$0xff]  ;;  %v56_v31 = vadd.f32 %v120_v2, %v41_v19  ;;  %v81_v34 = vmul.f32 %v121_v5, %v66_v28  ;;  %v58_v42 = vadd.f32 %v120_v2, %v43_v33  ;;  %v44_v43 = vmul.f32 %v119_v1, %v29_v29 }
   0x8   :  { %v65_v22 = vld [vmem:[%s243_s1 + $0x20] sm:$0xff]  ;;  %v84_v24 = vadd.f32 %v76_v6, %v53_v11  ;;  %v42_v27 = vmul.f32 %v119_v1, %v27_v21  ;;  %v85_v37 = vadd.f32 %v77_v13, %v54_v25  ;;  %v86_v38 = vadd.f32 %v78_v18, %v55_v26 }
   0x9   :  { %v80_v32 = vmul.f32 %v121_v5, %v65_v22  ;;  %v87_v41 = vadd.f32 %v79_v20, %v56_v31  ;;  %v82_v44 = vmul.f32 %v121_v5, %v67_v30  ;;  %v45_v48 = vmul.f32 %v119_v1, %v30_v35 }
   0xa   :  { %v99_v36 = vadd.f32 %v122_v7, %v84_v24  ;;  %v57_v39 = vadd.f32 %v120_v2, %v42_v27  ;;  %v100_v45 = vadd.f32 %v122_v7, %v85_v37  ;;  %v101_v46 = vadd.f32 %v122_v7, %v86_v38 }
   0xb   :  { %v102_v49 = vadd.f32 %v122_v7, %v87_v41  ;;  %v89_v50 = vadd.f32 %v81_v34, %v58_v42  ;;  %v59_v51 = vadd.f32 %v120_v2, %v44_v43  ;;  %v83_v52 = vmul.f32 %v121_v5, %v68_v40 }
   0xc   :  { %107 = vst [vmem:[%s248_s6] sm:$0xff] %v99_v36  ;;  %v88_v47 = vadd.f32 %v80_v32, %v57_v39  ;;  %108 = vst [vmem:[%s248_s6 + $0x8] sm:$0xff] %v100_v45  ;;  %v60_v54 = vadd.f32 %v120_v2, %v45_v48 }
   0xd   :  { %109 = vst [vmem:[%s248_s6 + $0x10] sm:$0xff] %v101_v46  ;;  %110 = vst [vmem:[%s248_s6 + $0x18] sm:$0xff] %v102_v49  ;;  %v104_v55 = vadd.f32 %v122_v7, %v89_v50  ;;  %v90_v56 = vadd.f32 %v82_v44, %v59_v51 }
   0xe   :  { %v103_v53 = vadd.f32 %v122_v7, %v88_v47  ;;  %v91_v57 = vadd.f32 %v83_v52, %v60_v54 }
   0xf   :  { %112 = vst [vmem:[%s248_s6 + $0x28] sm:$0xff] %v104_v55  ;;  %v105_v58 = vadd.f32 %v122_v7, %v90_v56 }
  0x10   :  { %111 = vst [vmem:[%s248_s6 + $0x20] sm:$0xff] %v103_v53  ;;  %v106_v59 = vadd.f32 %v122_v7, %v91_v57 }
  0x11   :  { %113 = vst [vmem:[%s248_s6 + $0x30] sm:$0xff] %v105_v58 }
  0x12   :  { %114 = vst [vmem:[%s248_s6 + $0x38] sm:$0xff] %v106_v59 }

// kernel: sk_unit_forward.4
= control target key start
LH: loop header
LB: loop body
LE: loop exit
PB: predicated region body
PF: predicated region fallthrough
CT: control target
= control target key end

     0   :  { %vm45_vm0 = vcmask 261120   ;;  %vm336_vm1 = vcmask 785408   ;;  %s527_s15 = smov 96   ;;  %vm319_vm2 = vcmask 523264   ;;  %s879_s1 = inlined_call_operand.vmem [shape: f32[32,96], index: 1, kind: input, shape index: {}]   ;;  %s880_s0 = inlined_call_operand.vmem [shape: f32[128,32], index: 0, kind: input, shape index: {}]   ;;  %s881_s2 = inlined_call_operand.vmem [shape: f32[1,96], index: 2, kind: input, shape index: {}]   ;;  %s882_s3 = inlined_call_operand.vmem [shape: f32[128,32], index: 3, kind: output, shape index: {0}]   ;;  %s883_s5 = inlined_call_operand.vmem [shape: f32[1,8,96], index: 5, kind: output, shape index: {2}]   ;;  %s884_s6 = inlined_call_operand.vmem [shape: f32[1,8,96], index: 6, kind: output, shape index: {3}]   ;;  %s885_s4 = inlined_call_operand.vmem [shape: f32[128,64], index: 4, kind: output, shape index: {1}]  }
   0x1   :  { %v34_v0 = vld [vmem:[%s879_s1] sm:$0xff]  ;;  %v35_v1 = vld [vmem:[%s879_s1 + $0x8] sm:$0xff]  ;;  %v36_v2 = vld [vmem:[%s879_s1 + $0x10] sm:$0xff] }
   0x2   :  { %v514_v3 = vpack.c.bf16 %v35_v1, %v34_v0  ;;  %v37_v4 = vld [vmem:[%s879_s1 + $0x18] sm:$0xff]  ;;  %v18_v5 = vld [vmem:[%s880_s0] sm:$0xff]  ;;  %v19_v8 = vld [vmem:[%s880_s0 + $0x8] sm:$0xff] }
   0x3   :  { %v26_v6 = vld [vmem:[%s880_s0 + $0x40] sm:$0xff]  ;;  %v518_v7 = vpack.c.bf16 %v37_v4, %v36_v2  ;;  %490 = vmatprep.mubr.msk.f32.mxu0 %vm45_vm0, %v18_v5  ;;  %v27_v9 = vld [vmem:[%s880_s0 + $0x48] sm:$0xff]  ;;  %v20_v10 = vld [vmem:[%s880_s0 + $0x10] sm:$0xff] }
   0x4   :  { %502 = vmatprep.mubr.msk.f32.mxu1 %vm45_vm0, %v26_v6  ;;  %515 = vmatprep.subr.bf16.mxu0 %v514_v3  ;;  %v28_v11 = vld [vmem:[%s880_s0 + $0x50] sm:$0xff]  ;;  %v21_v12 = vld [vmem:[%s880_s0 + $0x18] sm:$0xff]  ;;  %v22_v14 = vld [vmem:[%s880_s0 + $0x20] sm:$0xff] }
   0x5   :  { %522 = vmatprep.subr.bf16.mxu1 %v514_v3  ;;  %517 = vmatpush3.bf16.msra.mxu0 %v514_v3  ;;  %v29_v13 = vld [vmem:[%s880_s0 + $0x58] sm:$0xff]  ;;  %v30_v15 = vld [vmem:[%s880_s0 + $0x60] sm:$0xff]  ;;  %v23_v16 = vld [vmem:[%s880_s0 + $0x28] sm:$0xff] }
   0x6   :  { %524 = vmatpush3.bf16.msra.mxu1 %v514_v3  ;;  %519 = vmatprep.subr.bf16.mxu0 %v518_v7  ;;  %v31_v17 = vld [vmem:[%s880_s0 + $0x68] sm:$0xff]  ;;  %v24_v18 = vld [vmem:[%s880_s0 + $0x30] sm:$0xff]  ;;  %v25_v20 = vld [vmem:[%s880_s0 + $0x38] sm:$0xff] }
   0x7   :  { %523 = vmatprep.subr.bf16.mxu1 %v518_v7  ;;  %v32_v19 = vld [vmem:[%s880_s0 + $0x70] sm:$0xff]  ;;  %v33_v21 = vld [vmem:[%s880_s0 + $0x78] sm:$0xff]  ;;  %v642_v22 = vld [vmem:[%s881_s2] ss:$0 sm:$0xff] }
   0x9   :  { %521 = vmatpush3.bf16.msra.mxu0 %v518_v7 }
   0xa   :  { %525 = vmatpush3.bf16.msra.mxu1 %v518_v7 }
   0xc   :  { %491 = vmatmul.mubr.msk.f32.vlgmr.msra.gmra.mrb[0].mxu0 %vm45_vm0, %v19_v8 }
   0xd   :  { %503 = vmatmul.mubr.msk.f32.vlgmr.msra.gmra.mrb[0].mxu1 %vm45_vm0, %v27_v9  ;;  %493 = vmatprep.mubr.msk.f32.mxu0 %vm45_vm0, %v20_v10 }
   0xe   :  { %505 = vmatprep.mubr.msk.f32.mxu1 %vm45_vm0, %v28_v11 }
  0x10   :  { %494 = vmatmul.mubr.msk.f32.gmra.mrb[2].mxu0 %vm45_vm0, %v21_v12 }
  0x11   :  { %506 = vmatmul.mubr.msk.f32.gmra.mrb[2].mxu1 %vm45_vm0, %v29_v13  ;;  %496 = vmatprep.mubr.msk.f32.mxu0 %vm45_vm0, %v22_v14 }
  0x12   :  { %508 = vmatprep.mubr.msk.f32.mxu1 %vm45_vm0, %v30_v15 }
  0x14   :  { %497 = vmatmul.mubr.msk.f32.gmra.mrb[4].mxu0 %vm45_vm0, %v23_v16 }
  0x15   :  { %509 = vmatmul.mubr.msk.f32.gmra.mrb[4].mxu1 %vm45_vm0, %v31_v17  ;;  %499 = vmatprep.mubr.msk.f32.mxu0 %vm45_vm0, %v24_v18 }
  0x16   :  { %511 = vmatprep.mubr.msk.f32.mxu1 %vm45_vm0, %v32_v19 }
  0x18   :  { %500 = vmatmul.mubr.msk.f32.gmra.mrb[6].mxu0 %vm45_vm0, %v25_v20 }
  0x19   :  { %512 = vmatmul.mubr.msk.f32.gmra.mrb[6].mxu1 %vm45_vm0, %v33_v21 }
  0xdf   :  { %v492_v23 = vpop.f32.mrb[0].mxu0 }
  0xe0   :  { %v504_v24 = vpop.f32.mrb[0].mxu1  ;;  %v166_v25 = vadd.f32 %v492_v23, %v642_v22  ;;  %v160_v27 = vpop.f32.mrb[1].mxu0 }
  0xe1   :  { %v646_v26 = vadd.f32 %v504_v24, %v642_v22  ;;  %v200_v28 = vpop.f32.mrb[1].mxu1  ;;  %v161_v29 = vadd.f32 %v642_v22, %v160_v27 }
  0xe2   :  { %v650_v30 = vadd.f32 %v642_v22, %v200_v28  ;;  %240 = vst.msk [vmem:[%s882_s3 + $0x8] sm:$0xff] %vm45_vm0, %v166_v25  ;;  %v338_v31 = vsel %vm336_vm1, %v166_v25, 0.0  ;;  %v375_v32 = vmul.f32 %v166_v25, %v166_v25  ;;  %273 = vrot.lane.b32.xlu0 %v166_v25, %s527_s15 }
  0xe3   :  { %248 = vst.msk [vmem:[%s882_s3 + $0x48] sm:$0xff] %vm45_vm0, %v646_v26  ;;  %289 = vrot.lane.b32.xlu1 %v646_v26, %s527_s15  ;;  %239 = vst.msk [vmem:[%s882_s3] sm:$0xff] %vm45_vm0, %v161_v29  ;;  %v337_v33 = vsel %vm336_vm1, %v161_v29, 0.0  ;;  %v374_v34 = vmul.f32 %v161_v29, %v161_v29  ;;  %v495_v35 = vpop.f32.mrb[2].mxu0 }
  0xe4   :  { %247 = vst.msk [vmem:[%s882_s3 + $0x40] sm:$0xff] %vm45_vm0, %v650_v30  ;;  %v507_v36 = vpop.f32.mrb[2].mxu1  ;;  %v391_v37 = vsel %vm336_vm1, %v375_v32, 0.0  ;;  %v339_v38 = vadd.f32 %v338_v31, %v337_v33  ;;  %v176_v39 = vadd.f32 %v495_v35, %v642_v22  ;;  %v170_v40 = vpop.f32.mrb[3].mxu0  ;;  %v382_v24 = vmul.f32 %v650_v30, %v650_v30 }
  0xe5   :  { %v210_v41 = vpop.f32.mrb[3].mxu1  ;;  %v390_v42 = vsel %vm336_vm1, %v374_v34, 0.0  ;;  %v171_v43 = vadd.f32 %v642_v22, %v170_v40  ;;  %v680_v44 = vadd.f32 %v507_v36, %v642_v22  ;;  %v383_v32 = vmul.f32 %v646_v26, %v646_v26 }
  0xe6   :  { %v392_v45 = vadd.f32 %v391_v37, %v390_v42  ;;  %242 = vst.msk [vmem:[%s882_s3 + $0x18] sm:$0xff] %vm45_vm0, %v176_v39  ;;  %v377_v46 = vmul.f32 %v176_v39, %v176_v39  ;;  %271 = vrot.lane.b32.xlu0 %v161_v29, %s527_s15  ;;  %v689_v47 = vadd.f32 %v642_v22, %v210_v41  ;;  %v342_v56 = vsel %vm336_vm1, %v176_v39, 0.0 }
  0xe7   :  { %277 = vrot.lane.b32.xlu1 %v176_v39, %s527_s15  ;;  %241 = vst.msk [vmem:[%s882_s3 + $0x10] sm:$0xff] %vm45_vm0, %v171_v43  ;;  %v340_v48 = vsel %vm336_vm1, %v171_v43, 0.0  ;;  %v376_v49 = vmul.f32 %v171_v43, %v171_v43  ;;  %250 = vst.msk [vmem:[%s882_s3 + $0x58] sm:$0xff] %vm45_vm0, %v680_v44  ;;  %v498_v50 = vpop.f32.mrb[4].mxu0  ;;  %v352_v33 = vsel %vm336_vm1, %v650_v30, 0.0  ;;  %v354_v35 = vsel %vm336_vm1, %v646_v26, 0.0 }
  0xe8   :  { %v510_v51 = vpop.f32.mrb[4].mxu1  ;;  %v341_v52 = vadd.f32 %v340_v48, %v339_v38  ;;  %v186_v53 = vadd.f32 %v498_v50, %v642_v22  ;;  %249 = vst.msk [vmem:[%s882_s3 + $0x50] sm:$0xff] %vm45_vm0, %v689_v47  ;;  %v180_v54 = vpop.f32.mrb[5].mxu0  ;;  %v395_v59 = vsel %vm336_vm1, %v377_v46, 0.0  ;;  %v405_v36 = vsel %vm336_vm1, %v382_v24, 0.0 }
  0xe9   :  { %v220_v55 = vpop.f32.mrb[5].mxu1  ;;  %v393_v57 = vsel %vm336_vm1, %v376_v49, 0.0  ;;  %v181_v58 = vadd.f32 %v642_v22, %v180_v54  ;;  %v726_v3 = vadd.f32 %v510_v51, %v642_v22  ;;  %v384_v37 = vmul.f32 %v689_v47, %v689_v47 }
  0xea   :  { %v394_v60 = vadd.f32 %v393_v57, %v392_v45  ;;  %244 = vst.msk [vmem:[%s882_s3 + $0x28] sm:$0xff] %vm45_vm0, %v186_v53  ;;  %v379_v61 = vmul.f32 %v186_v53, %v186_v53  ;;  %v343_v62 = vadd.f32 %v342_v56, %v341_v52  ;;  %287 = vrot.lane.b32.xlu0 %v650_v30, %s527_s15  ;;  %v346_v63 = vsel %vm336_vm1, %v186_v53, 0.0 }
  0xeb   :  { %293 = vrot.lane.b32.xlu1 %v680_v44, %s527_s15  ;;  %243 = vst.msk [vmem:[%s882_s3 + $0x20] sm:$0xff] %vm45_vm0, %v181_v58  ;;  %v344_v0 = vsel %vm336_vm1, %v181_v58, 0.0  ;;  %v378_v1 = vmul.f32 %v181_v58, %v181_v58  ;;  %v501_v2 = vpop.f32.mrb[6].mxu0  ;;  %252 = vst.msk [vmem:[%s882_s3 + $0x68] sm:$0xff] %vm45_vm0, %v726_v3  ;;  %v221_v19 = vadd.f32 %v642_v22, %v220_v55  ;;  %v407_v30 = vsel %vm336_vm1, %v383_v32, 0.0 }
  0xec   :  { %v513_v4 = vpop.f32.mrb[6].mxu1  ;;  %v345_v5 = vadd.f32 %v344_v0, %v343_v62  ;;  %v396_v6 = vadd.f32 %v395_v59, %v394_v60  ;;  %v196_v7 = vadd.f32 %v501_v2, %v642_v22  ;;  %v190_v8 = vpop.f32.mrb[7].mxu0  ;;  %v399_v10 = vsel %vm336_vm1, %v379_v61, 0.0 }
  0xed   :  { %v230_v9 = vpop.f32.mrb[7].mxu1  ;;  %v397_v11 = vsel %vm336_vm1, %v378_v1, 0.0  ;;  %v191_v12 = vadd.f32 %v642_v22, %v190_v8  ;;  %v236_v23 = vadd.f32 %v513_v4, %v642_v22  ;;  %251 = vst.msk [vmem:[%s882_s3 + $0x60] sm:$0xff] %vm45_vm0, %v221_v19  ;;  %v385_v40 = vmul.f32 %v680_v44, %v680_v44 }
  0xee   :  { %v398_v13 = vadd.f32 %v397_v11, %v396_v6  ;;  %246 = vst.msk [vmem:[%s882_s3 + $0x38] sm:$0xff] %vm45_vm0, %v196_v7  ;;  %v381_v14 = vmul.f32 %v196_v7, %v196_v7  ;;  %v347_v15 = vadd.f32 %v346_v63, %v345_v5  ;;  %291 = vrot.lane.b32.xlu0 %v689_v47, %s527_s15  ;;  %v350_v16 = vsel %vm336_vm1, %v196_v7, 0.0 }
  0xef   :  { %275 = vrot.lane.b32.xlu1 %v171_v43, %s527_s15  ;;  %245 = vst.msk [vmem:[%s882_s3 + $0x30] sm:$0xff] %vm45_vm0, %v191_v12  ;;  %v348_v17 = vsel %vm336_vm1, %v191_v12, 0.0  ;;  %v380_v18 = vmul.f32 %v191_v12, %v191_v12  ;;  %v231_v28 = vadd.f32 %v642_v22, %v230_v9  ;;  %254 = vst.msk [vmem:[%s882_s3 + $0x78] sm:$0xff] %vm45_vm0, %v236_v23  ;;  %v356_v26 = vsel %vm336_vm1, %v689_v47, 0.0 }
  0xf0   :  { %v349_v20 = vadd.f32 %v348_v17, %v347_v15  ;;  %v400_v21 = vadd.f32 %v399_v10, %v398_v13  ;;  %v403_v25 = vsel %vm336_vm1, %v381_v14, 0.0  ;;  %v358_v43 = vsel %vm336_vm1, %v680_v44, 0.0 }
  0xf1   :  { %v401_v27 = vsel %vm336_vm1, %v380_v18, 0.0  ;;  %253 = vst.msk [vmem:[%s882_s3 + $0x70] sm:$0xff] %vm45_vm0, %v231_v28  ;;  %v409_v45 = vsel %vm336_vm1, %v384_v37, 0.0  ;;  %v386_v46 = vmul.f32 %v221_v19, %v221_v19  ;;  %v411_v50 = vsel %vm336_vm1, %v385_v40, 0.0 }
  0xf2   :  { %v351_v29 = vadd.f32 %v350_v16, %v349_v20  ;;  %v402_v31 = vadd.f32 %v401_v27, %v400_v21  ;;  %279 = vrot.lane.b32.xlu0 %v181_v58, %s527_s15  ;;  %v387_v51 = vmul.f32 %v726_v3, %v726_v3  ;;  %v360_v47 = vsel %vm336_vm1, %v221_v19, 0.0 }
  0xf3   :  { %281 = vrot.lane.b32.xlu1 %v186_v53, %s527_s15  ;;  %v362_v44 = vsel %vm336_vm1, %v726_v3, 0.0  ;;  %v413_v54 = vsel %vm336_vm1, %v386_v46, 0.0  ;;  %v388_v55 = vmul.f32 %v231_v28, %v231_v28  ;;  %v389_v59 = vmul.f32 %v236_v23, %v236_v23 }
  0xf4   :  { %v353_v22 = vadd.f32 %v352_v33, %v351_v29  ;;  %v404_v34 = vadd.f32 %v403_v25, %v402_v31  ;;  %v415_v58 = vsel %vm336_vm1, %v387_v51, 0.0  ;;  %v364_v60 = vsel %vm336_vm1, %v231_v28, 0.0 }
  0xf5   :  { %v366_v63 = vsel %vm336_vm1, %v236_v23, 0.0  ;;  %v417_v0 = vsel %vm336_vm1, %v388_v55, 0.0 }
  0xf6   :  { %v406_v38 = vadd.f32 %v405_v36, %v404_v34  ;;  %v355_v39 = vadd.f32 %v354_v35, %v353_v22  ;;  %295 = vrot.lane.b32.xlu0 %v221_v19, %s527_s15 }
  0xf7   :  { %297 = vrot.lane.b32.xlu1 %v726_v3, %s527_s15  ;;  %v419_v3 = vsel %vm336_vm1, %v389_v59, 0.0 }
  0xf8   :  { %v357_v41 = vadd.f32 %v356_v26, %v355_v39  ;;  %v408_v42 = vadd.f32 %v407_v30, %v406_v38 }
  0xfa   :  { %v359_v48 = vadd.f32 %v358_v43, %v357_v41  ;;  %v410_v49 = vadd.f32 %v409_v45, %v408_v42  ;;  %283 = vrot.lane.b32.xlu0 %v191_v12, %s527_s15 }
  0xfb   :  { %285 = vrot.lane.b32.xlu1 %v196_v7, %s527_s15 }
  0xfc   :  { %v361_v52 = vadd.f32 %v360_v47, %v359_v48  ;;  %v412_v53 = vadd.f32 %v411_v50, %v410_v49 }
  0xfe   :  { %v414_v56 = vadd.f32 %v413_v54, %v412_v53  ;;  %v363_v57 = vadd.f32 %v362_v44, %v361_v52  ;;  %299 = vrot.lane.b32.xlu0 %v231_v28, %s527_s15 }
  0xff   :  { %301 = vrot.lane.b32.xlu1 %v236_v23, %s527_s15 }
 0x100   :  { %v365_v61 = vadd.f32 %v364_v60, %v363_v57  ;;  %v416_v62 = vadd.f32 %v415_v58, %v414_v56 }
 0x102   :  { %v367_v1 = vadd.f32 %v366_v63, %v365_v61  ;;  %v418_v2 = vadd.f32 %v417_v0, %v416_v62 }
 0x104   :  { %v368_v4 = vrot.slane %v367_v1, 4  ;;  %v420_v5 = vadd.f32 %v419_v3, %v418_v2 }
 0x106   :  { %v369_v6 = vadd.f32 %v368_v4, %v367_v1  ;;  %v421_v7 = vrot.slane %v420_v5, 4 }
 0x108   :  { %v370_v8 = vrot.slane %v369_v6, 2  ;;  %v422_v9 = vadd.f32 %v421_v7, %v420_v5 }
 0x10a   :  { %v371_v10 = vadd.f32 %v370_v8, %v369_v6  ;;  %v423_v11 = vrot.slane %v422_v9, 2 }
 0x10c   :  { %v372_v12 = vrot.slane %v371_v10, 1  ;;  %v424_v13 = vadd.f32 %v423_v11, %v422_v9 }
 0x10e   :  { %v373_v14 = vadd.f32 %v372_v12, %v371_v10  ;;  %v425_v15 = vrot.slane %v424_v13, 1 }
 0x110   :  { %v426_v16 = vadd.f32 %v425_v15, %v424_v13  ;;  %427 = vst.msk [vmem:[%s883_s5] sm:$0xff] %vm336_vm1, %v373_v14 }
 0x112   :  { %428 = vst.msk [vmem:[%s884_s6] sm:$0xff] %vm336_vm1, %v426_v16 }
 0x154   :  { %v274_v18 = vpop.permute.xlu0 %273 }
 0x155   :  { %v290_v17 = vpop.permute.xlu1 %289  ;;  %321 = vst.msk [vmem:[%s885_s4 + $0x8] sm:$0xff] %vm319_vm2, %v274_v18 }
 0x156   :  { %329 = vst.msk [vmem:[%s885_s4 + $0x48] sm:$0xff] %vm319_vm2, %v290_v17 }
 0x158   :  { %v272_v20 = vpop.permute.xlu0 %271 }
 0x159   :  { %v278_v19 = vpop.permute.xlu1 %277  ;;  %320 = vst.msk [vmem:[%s885_s4] sm:$0xff] %vm319_vm2, %v272_v20 }
 0x15a   :  { %323 = vst.msk [vmem:[%s885_s4 + $0x18] sm:$0xff] %vm319_vm2, %v278_v19 }
 0x15c   :  { %v288_v23 = vpop.permute.xlu0 %287 }
 0x15d   :  { %v294_v21 = vpop.permute.xlu1 %293  ;;  %328 = vst.msk [vmem:[%s885_s4 + $0x40] sm:$0xff] %vm319_vm2, %v288_v23 }
 0x15e   :  { %331 = vst.msk [vmem:[%s885_s4 + $0x58] sm:$0xff] %vm319_vm2, %v294_v21 }
 0x160   :  { %v292_v25 = vpop.permute.xlu0 %291 }
 0x161   :  { %v276_v24 = vpop.permute.xlu1 %275  ;;  %330 = vst.msk [vmem:[%s885_s4 + $0x50] sm:$0xff] %vm319_vm2, %v292_v25 }
 0x162   :  { %322 = vst.msk [vmem:[%s885_s4 + $0x10] sm:$0xff] %vm319_vm2, %v276_v24 }
 0x164   :  { %v280_v28 = vpop.permute.xlu0 %279 }
 0x165   :  { %v282_v27 = vpop.permute.xlu1 %281  ;;  %324 = vst.msk [vmem:[%s885_s4 + $0x20] sm:$0xff] %vm319_vm2, %v280_v28 }
 0x166   :  { %325 = vst.msk [vmem:[%s885_s4 + $0x28] sm:$0xff] %vm319_vm2, %v282_v27 }
 0x168   :  { %v296_v31 = vpop.permute.xlu0 %295 }
 0x169   :  { %v298_v29 = vpop.permute.xlu1 %297  ;;  %332 = vst.msk [vmem:[%s885_s4 + $0x60] sm:$0xff] %vm319_vm2, %v296_v31 }
 0x16a   :  { %333 = vst.msk [vmem:[%s885_s4 + $0x68] sm:$0xff] %vm319_vm2, %v298_v29 }
 0x16c   :  { %v284_v33 = vpop.permute.xlu0 %283 }
 0x16d   :  { %v286_v32 = vpop.permute.xlu1 %285  ;;  %326 = vst.msk [vmem:[%s885_s4 + $0x30] sm:$0xff] %vm319_vm2, %v284_v33 }
 0x16e   :  { %327 = vst.msk [vmem:[%s885_s4 + $0x38] sm:$0xff] %vm319_vm2, %v286_v32 }
 0x170   :  { %v300_v34 = vpop.permute.xlu0 %299 }
 0x171   :  { %v302_v22 = vpop.permute.xlu1 %301  ;;  %334 = vst.msk [vmem:[%s885_s4 + $0x70] sm:$0xff] %vm319_vm2, %v300_v34 }
 0x172   :  { %335 = vst.msk [vmem:[%s885_s4 + $0x78] sm:$0xff] %vm319_vm2, %v302_v22 }

// kernel: sk_unit_forward.6
= control target key start
LH: loop header
LB: loop body
LE: loop exit
PB: predicated region body
PF: predicated region fallthrough
CT: control target
= control target key end

     0   :  { %vm96_vm0 = vcmask 261120   ;;  %vm290_vm1 = vcmask 523264   ;;  %s795_s3 = inlined_call_operand.vmem [shape: f32[32,64], index: 3, kind: input, shape index: {}]   ;;  %s796_s0 = inlined_call_operand.vmem [shape: f32[128,32], index: 0, kind: input, shape index: {}]   ;;  %s797_s1 = inlined_call_operand.vmem [shape: f32[1,32], index: 1, kind: input, shape index: {}]   ;;  %s798_s2 = inlined_call_operand.vmem [shape: f32[1,32], index: 2, kind: input, shape index: {}]   ;;  %s799_s4 = inlined_call_operand.vmem [shape: f32[1,64], index: 4, kind: input, shape index: {}]   ;;  %s800_s5 = inlined_call_operand.vmem [shape: f32[128,64], index: 5, kind: output, shape index: {0}]   ;;  %s801_s6 = inlined_call_operand.vmem [shape: f32[1,8,64], index: 6, kind: output, shape index: {1}]   ;;  %s802_s7 = inlined_call_operand.vmem [shape: f32[1,8,64], index: 7, kind: output, shape index: {2}]  }
   0x1   :  { %v85_v0 = vld [vmem:[%s795_s3] sm:$0xff]  ;;  %v86_v1 = vld [vmem:[%s795_s3 + $0x8] sm:$0xff]  ;;  %v87_v2 = vld [vmem:[%s795_s3 + $0x10] sm:$0xff] }
   0x2   :  { %v482_v3 = vpack.c.bf16 %v86_v1, %v85_v0  ;;  %v88_v4 = vld [vmem:[%s795_s3 + $0x18] sm:$0xff]  ;;  %v23_v5 = vld [vmem:[%s796_s0] sm:$0xff]  ;;  %v24_v10 = vld [vmem:[%s796_s0 + $0x8] sm:$0xff] }
   0x3   :  { %v552_v6 = vld [vmem:[%s797_s1] ss:$0 sm:$0xff]  ;;  %v486_v7 = vpack.c.bf16 %v88_v4, %v87_v2  ;;  %v25_v11 = vld [vmem:[%s796_s0 + $0x10] sm:$0xff]  ;;  %v26_v13 = vld [vmem:[%s796_s0 + $0x18] sm:$0xff] }
   0x4   :  { %v46_v8 = vmul.f32 %v552_v6, %v23_v5  ;;  %v558_v9 = vld [vmem:[%s798_s2] ss:$0 sm:$0xff]  ;;  %483 = vmatprep.subr.bf16.mxu0 %v482_v3  ;;  %v47_v12 = vmul.f32 %v552_v6, %v24_v10  ;;  %490 = vmatprep.subr.bf16.mxu1 %v482_v3  ;;  %v48_v16 = vmul.f32 %v552_v6, %v25_v11  ;;  %v32_v18 = vld [vmem:[%s796_s0 + $0x48] sm:$0xff]  ;;  %v33_v19 = vld [vmem:[%s796_s0 + $0x50] sm:$0xff] }
   0x5   :  { %v27_v14 = vld [vmem:[%s796_s0 + $0x20] sm:$0xff]  ;;  %485 = vmatpush3.bf16.msra.mxu0 %v482_v3  ;;  %492 = vmatpush3.bf16.msra.mxu1 %v482_v3  ;;  %v34_v20 = vld [vmem:[%s796_s0 + $0x58] sm:$0xff]  ;;  %v49_v21 = vmul.f32 %v552_v6, %v26_v13  ;;  %v55_v26 = vmul.f32 %v552_v6, %v32_v18  ;;  %v56_v27 = vmul.f32 %v552_v6, %v33_v19  ;;  %v28_v29 = vld [vmem:[%s796_s0 + $0x28] sm:$0xff] }
   0x6   :  { %v69_v15 = vadd.f32 %v558_v9, %v46_v8  ;;  %v31_v17 = vld [vmem:[%s796_s0 + $0x40] sm:$0xff]  ;;  %487 = vmatprep.subr.bf16.mxu0 %v486_v7  ;;  %491 = vmatprep.subr.bf16.mxu1 %v486_v7  ;;  %v50_v22 = vmul.f32 %v552_v6, %v27_v14  ;;  %v70_v24 = vadd.f32 %v558_v9, %v47_v12  ;;  %v29_v31 = vld [vmem:[%s796_s0 + $0x30] sm:$0xff]  ;;  %v36_v36 = vld [vmem:[%s796_s0 + $0x68] sm:$0xff] }
   0x7   :  { %v35_v23 = vld [vmem:[%s796_s0 + $0x60] sm:$0xff]  ;;  %v54_v25 = vmul.f32 %v552_v6, %v31_v17  ;;  %v71_v28 = vadd.f32 %v558_v9, %v48_v16  ;;  %v57_v30 = vmul.f32 %v552_v6, %v34_v20  ;;  %v78_v33 = vadd.f32 %v558_v9, %v55_v26  ;;  %v37_v37 = vld [vmem:[%s796_s0 + $0x70] sm:$0xff]  ;;  %v30_v42 = vld [vmem:[%s796_s0 + $0x38] sm:$0xff] }
   0x8   :  { %458 = vmatprep.mubr.msk.f32.mxu0 %vm96_vm0, %v69_v15  ;;  %v79_v34 = vadd.f32 %v558_v9, %v56_v27  ;;  %v58_v35 = vmul.f32 %v552_v6, %v35_v23  ;;  %v72_v38 = vadd.f32 %v558_v9, %v49_v21  ;;  %v73_v39 = vadd.f32 %v558_v9, %v50_v22  ;;  %v38_v47 = vld [vmem:[%s796_s0 + $0x78] sm:$0xff]  ;;  %v655_v56 = vld [vmem:[%s799_s4] ss:$0 sm:$0xff] }
   0x9   :  { %489 = vmatpush3.bf16.msra.mxu0 %v486_v7  ;;  %493 = vmatpush3.bf16.msra.mxu1 %v486_v7  ;;  %v77_v32 = vadd.f32 %v558_v9, %v54_v25  ;;  %v51_v40 = vmul.f32 %v552_v6, %v28_v29  ;;  %v52_v41 = vmul.f32 %v552_v6, %v29_v31 }
   0xa   :  { %v80_v43 = vadd.f32 %v558_v9, %v57_v30  ;;  %v59_v44 = vmul.f32 %v552_v6, %v36_v36  ;;  %v81_v45 = vadd.f32 %v558_v9, %v58_v35  ;;  %v60_v46 = vmul.f32 %v552_v6, %v37_v37 }
   0xb   :  { %470 = vmatprep.mubr.msk.f32.mxu1 %vm96_vm0, %v77_v32  ;;  %v74_v48 = vadd.f32 %v558_v9, %v51_v40  ;;  %v53_v49 = vmul.f32 %v552_v6, %v30_v42  ;;  %v75_v50 = vadd.f32 %v558_v9, %v52_v41  ;;  %v61_v52 = vmul.f32 %v552_v6, %v38_v47 }
   0xc   :  { %459 = vmatmul.mubr.msk.f32.vlgmr.msra.gmra.mrb[0].mxu0 %vm96_vm0, %v70_v24  ;;  %471 = vmatmul.mubr.msk.f32.vlgmr.msra.gmra.mrb[0].mxu1 %vm96_vm0, %v78_v33  ;;  %v82_v51 = vadd.f32 %v558_v9, %v59_v44  ;;  %v83_v53 = vadd.f32 %v558_v9, %v60_v46 }
   0xd   :  { %461 = vmatprep.mubr.msk.f32.mxu0 %vm96_vm0, %v71_v28  ;;  %473 = vmatprep.mubr.msk.f32.mxu1 %vm96_vm0, %v79_v34  ;;  %v76_v54 = vadd.f32 %v558_v9, %v53_v49  ;;  %v84_v55 = vadd.f32 %v558_v9, %v61_v52 }
  0x10   :  { %462 = vmatmul.mubr.msk.f32.gmra.mrb[2].mxu0 %vm96_vm0, %v72_v38  ;;  %474 = vmatmul.mubr.msk.f32.gmra.mrb[2].mxu1 %vm96_vm0, %v80_v43 }
  0x11   :  { %464 = vmatprep.mubr.msk.f32.mxu0 %vm96_vm0, %v73_v39  ;;  %476 = vmatprep.mubr.msk.f32.mxu1 %vm96_vm0, %v81_v45 }
  0x14   :  { %465 = vmatmul.mubr.msk.f32.gmra.mrb[4].mxu0 %vm96_vm0, %v74_v48  ;;  %477 = vmatmul.mubr.msk.f32.gmra.mrb[4].mxu1 %vm96_vm0, %v82_v51 }
  0x15   :  { %467 = vmatprep.mubr.msk.f32.mxu0 %vm96_vm0, %v75_v50  ;;  %479 = vmatprep.mubr.msk.f32.mxu1 %vm96_vm0, %v83_v53 }
  0x18   :  { %468 = vmatmul.mubr.msk.f32.gmra.mrb[6].mxu0 %vm96_vm0, %v76_v54  ;;  %480 = vmatmul.mubr.msk.f32.gmra.mrb[6].mxu1 %vm96_vm0, %v84_v55 }
  0xdf   :  { %v460_v57 = vpop.f32.mrb[0].mxu0  ;;  %v472_v60 = vpop.f32.mrb[0].mxu1 }
  0xe0   :  { %v217_v58 = vadd.f32 %v460_v57, %v655_v56  ;;  %v211_v59 = vpop.f32.mrb[1].mxu0  ;;  %v660_v62 = vadd.f32 %v472_v60, %v655_v56  ;;  %v251_v63 = vpop.f32.mrb[1].mxu1 }
  0xe1   :  { %v212_v61 = vadd.f32 %v655_v56, %v211_v59  ;;  %v668_v2 = vadd.f32 %v655_v56, %v251_v63 }
  0xe2   :  { %292 = vst.msk [vmem:[%s800_s5 + $0x8] sm:$0xff] %vm290_vm1, %v217_v58  ;;  %v308_v0 = vsel %vm290_vm1, %v217_v58, 0.0  ;;  %v345_v1 = vmul.f32 %v217_v58, %v217_v58  ;;  %300 = vst.msk [vmem:[%s800_s5 + $0x48] sm:$0xff] %vm290_vm1, %v660_v62 }
  0xe3   :  { %291 = vst.msk [vmem:[%s800_s5] sm:$0xff] %vm290_vm1, %v212_v61  ;;  %v307_v3 = vsel %vm290_vm1, %v212_v61, 0.0  ;;  %v344_v4 = vmul.f32 %v212_v61, %v212_v61  ;;  %v463_v5 = vpop.f32.mrb[2].mxu0  ;;  %299 = vst.msk [vmem:[%s800_s5 + $0x40] sm:$0xff] %vm290_vm1, %v668_v2  ;;  %v475_v10 = vpop.f32.mrb[2].mxu1  ;;  %v352_v48 = vmul.f32 %v668_v2, %v668_v2  ;;  %v322_v55 = vsel %vm290_vm1, %v668_v2, 0.0 }
  0xe4   :  { %v361_v6 = vsel %vm290_vm1, %v345_v1, 0.0  ;;  %v309_v7 = vadd.f32 %v308_v0, %v307_v3  ;;  %v227_v8 = vadd.f32 %v463_v5, %v655_v56  ;;  %v221_v9 = vpop.f32.mrb[3].mxu0  ;;  %v261_v13 = vpop.f32.mrb[3].mxu1  ;;  %v694_v15 = vadd.f32 %v475_v10, %v655_v56 }
  0xe5   :  { %v360_v11 = vsel %vm290_vm1, %v344_v4, 0.0  ;;  %v222_v12 = vadd.f32 %v655_v56, %v221_v9  ;;  %v262_v20 = vadd.f32 %v655_v56, %v261_v13  ;;  %v353_v2 = vmul.f32 %v660_v62, %v660_v62 }
  0xe6   :  { %v362_v14 = vadd.f32 %v361_v6, %v360_v11  ;;  %294 = vst.msk [vmem:[%s800_s5 + $0x18] sm:$0xff] %vm290_vm1, %v227_v8  ;;  %v347_v16 = vmul.f32 %v227_v8, %v227_v8  ;;  %302 = vst.msk [vmem:[%s800_s5 + $0x58] sm:$0xff] %vm290_vm1, %v694_v15  ;;  %v312_v25 = vsel %vm290_vm1, %v227_v8, 0.0  ;;  %v375_v3 = vsel %vm290_vm1, %v352_v48, 0.0 }
  0xe7   :  { %293 = vst.msk [vmem:[%s800_s5 + $0x10] sm:$0xff] %vm290_vm1, %v222_v12  ;;  %v310_v17 = vsel %vm290_vm1, %v222_v12, 0.0  ;;  %v346_v18 = vmul.f32 %v222_v12, %v222_v12  ;;  %v466_v19 = vpop.f32.mrb[4].mxu0  ;;  %v478_v24 = vpop.f32.mrb[4].mxu1  ;;  %301 = vst.msk [vmem:[%s800_s5 + $0x50] sm:$0xff] %vm290_vm1, %v262_v20  ;;  %v354_v4 = vmul.f32 %v262_v20, %v262_v20  ;;  %v324_v6 = vsel %vm290_vm1, %v660_v62, 0.0 }
  0xe8   :  { %v311_v21 = vadd.f32 %v310_v17, %v309_v7  ;;  %v237_v22 = vadd.f32 %v466_v19, %v655_v56  ;;  %v231_v23 = vpop.f32.mrb[5].mxu0  ;;  %v271_v28 = vpop.f32.mrb[5].mxu1  ;;  %v365_v31 = vsel %vm290_vm1, %v347_v16, 0.0  ;;  %v277_v44 = vadd.f32 %v478_v24, %v655_v56 }
  0xe9   :  { %v363_v26 = vsel %vm290_vm1, %v346_v18, 0.0  ;;  %v232_v27 = vadd.f32 %v655_v56, %v231_v23  ;;  %v272_v57 = vadd.f32 %v655_v56, %v271_v28  ;;  %v326_v7 = vsel %vm290_vm1, %v262_v20, 0.0 }
  0xea   :  { %v364_v29 = vadd.f32 %v363_v26, %v362_v14  ;;  %296 = vst.msk [vmem:[%s800_s5 + $0x28] sm:$0xff] %vm290_vm1, %v237_v22  ;;  %v313_v30 = vadd.f32 %v312_v25, %v311_v21  ;;  %v349_v32 = vmul.f32 %v237_v22, %v237_v22  ;;  %v316_v41 = vsel %vm290_vm1, %v237_v22, 0.0  ;;  %304 = vst.msk [vmem:[%s800_s5 + $0x68] sm:$0xff] %vm290_vm1, %v277_v44 }
  0xeb   :  { %295 = vst.msk [vmem:[%s800_s5 + $0x20] sm:$0xff] %vm290_vm1, %v232_v27  ;;  %v314_v33 = vsel %vm290_vm1, %v232_v27, 0.0  ;;  %v348_v34 = vmul.f32 %v232_v27, %v232_v27  ;;  %v469_v35 = vpop.f32.mrb[6].mxu0  ;;  %v481_v40 = vpop.f32.mrb[6].mxu1  ;;  %303 = vst.msk [vmem:[%s800_s5 + $0x60] sm:$0xff] %vm290_vm1, %v272_v57  ;;  %v377_v10 = vsel %vm290_vm1, %v353_v2, 0.0  ;;  %v355_v11 = vmul.f32 %v694_v15, %v694_v15 }
  0xec   :  { %v315_v36 = vadd.f32 %v314_v33, %v313_v30  ;;  %v366_v37 = vadd.f32 %v365_v31, %v364_v29  ;;  %v247_v38 = vadd.f32 %v469_v35, %v655_v56  ;;  %v241_v39 = vpop.f32.mrb[7].mxu0  ;;  %v281_v45 = vpop.f32.mrb[7].mxu1  ;;  %v369_v49 = vsel %vm290_vm1, %v349_v32, 0.0 }
  0xed   :  { %v367_v42 = vsel %vm290_vm1, %v348_v34, 0.0  ;;  %v242_v43 = vadd.f32 %v655_v56, %v241_v39  ;;  %v287_v60 = vadd.f32 %v481_v40, %v655_v56  ;;  %v282_v61 = vadd.f32 %v655_v56, %v281_v45 }
  0xee   :  { %v368_v46 = vadd.f32 %v367_v42, %v366_v37  ;;  %298 = vst.msk [vmem:[%s800_s5 + $0x38] sm:$0xff] %vm290_vm1, %v247_v38  ;;  %v317_v47 = vadd.f32 %v316_v41, %v315_v36  ;;  %v351_v50 = vmul.f32 %v247_v38, %v247_v38  ;;  %v320_v58 = vsel %vm290_vm1, %v247_v38, 0.0 }
  0xef   :  { %297 = vst.msk [vmem:[%s800_s5 + $0x30] sm:$0xff] %vm290_vm1, %v242_v43  ;;  %v318_v51 = vsel %vm290_vm1, %v242_v43, 0.0  ;;  %v350_v52 = vmul.f32 %v242_v43, %v242_v43  ;;  %306 = vst.msk [vmem:[%s800_s5 + $0x78] sm:$0xff] %vm290_vm1, %v287_v60  ;;  %v379_v12 = vsel %vm290_vm1, %v354_v4, 0.0  ;;  %v356_v13 = vmul.f32 %v272_v57, %v272_v57 }
  0xf0   :  { %v319_v53 = vadd.f32 %v318_v51, %v317_v47  ;;  %v370_v54 = vadd.f32 %v369_v49, %v368_v46  ;;  %v373_v1 = vsel %vm290_vm1, %v351_v50, 0.0  ;;  %305 = vst.msk [vmem:[%s800_s5 + $0x70] sm:$0xff] %vm290_vm1, %v282_v61  ;;  %v328_v17 = vsel %vm290_vm1, %v694_v15, 0.0 }
  0xf1   :  { %v371_v59 = vsel %vm290_vm1, %v350_v52, 0.0  ;;  %v330_v18 = vsel %vm290_vm1, %v272_v57, 0.0  ;;  %v381_v20 = vsel %vm290_vm1, %v355_v11, 0.0  ;;  %v357_v21 = vmul.f32 %v277_v44, %v277_v44 }
  0xf2   :  { %v372_v63 = vadd.f32 %v371_v59, %v370_v54  ;;  %v321_v0 = vadd.f32 %v320_v58, %v319_v53  ;;  %v383_v22 = vsel %vm290_vm1, %v356_v13, 0.0  ;;  %v358_v23 = vmul.f32 %v282_v61, %v282_v61 }
  0xf3   :  { %v332_v26 = vsel %vm290_vm1, %v277_v44, 0.0  ;;  %v334_v27 = vsel %vm290_vm1, %v282_v61, 0.0  ;;  %v385_v15 = vsel %vm290_vm1, %v357_v21, 0.0  ;;  %v359_v30 = vmul.f32 %v287_v60, %v287_v60 }
  0xf4   :  { %v323_v56 = vadd.f32 %v322_v55, %v321_v0  ;;  %v374_v5 = vadd.f32 %v373_v1, %v372_v63  ;;  %v387_v31 = vsel %vm290_vm1, %v358_v23, 0.0  ;;  %v336_v34 = vsel %vm290_vm1, %v287_v60, 0.0 }
  0xf5   :  { %v389_v37 = vsel %vm290_vm1, %v359_v30, 0.0 }
  0xf6   :  { %v376_v8 = vadd.f32 %v375_v3, %v374_v5  ;;  %v325_v9 = vadd.f32 %v324_v6, %v323_v56 }
  0xf8   :  { %v327_v14 = vadd.f32 %v326_v7, %v325_v9  ;;  %v378_v16 = vadd.f32 %v377_v10, %v376_v8 }
  0xfa   :  { %v380_v62 = vadd.f32 %v379_v12, %v378_v16  ;;  %v329_v19 = vadd.f32 %v328_v17, %v327_v14 }
  0xfc   :  { %v331_v24 = vadd.f32 %v330_v18, %v329_v19  ;;  %v382_v25 = vadd.f32 %v381_v20, %v380_v62 }
  0xfe   :  { %v384_v28 = vadd.f32 %v383_v22, %v382_v25  ;;  %v333_v29 = vadd.f32 %v332_v26, %v331_v24 }
 0x100   :  { %v335_v32 = vadd.f32 %v334_v27, %v333_v29  ;;  %v386_v33 = vadd.f32 %v385_v15, %v384_v28 }
 0x102   :  { %v337_v35 = vadd.f32 %v336_v34, %v335_v32  ;;  %v388_v36 = vadd.f32 %v387_v31, %v386_v33 }
 0x104   :  { %v338_v38 = vrot.slane %v337_v35, 4  ;;  %v390_v39 = vadd.f32 %v389_v37, %v388_v36 }
 0x106   :  { %v339_v40 = vadd.f32 %v338_v38, %v337_v35  ;;  %v391_v41 = vrot.slane %v390_v39, 4 }
 0x108   :  { %v340_v42 = vrot.slane %v339_v40, 2  ;;  %v392_v43 = vadd.f32 %v391_v41, %v390_v39 }
 0x10a   :  { %v341_v44 = vadd.f32 %v340_v42, %v339_v40  ;;  %v393_v45 = vrot.slane %v392_v43, 2 }
 0x10c   :  { %v342_v46 = vrot.slane %v341_v44, 1  ;;  %v394_v47 = vadd.f32 %v393_v45, %v392_v43 }
 0x10e   :  { %v343_v48 = vadd.f32 %v342_v46, %v341_v44  ;;  %v395_v49 = vrot.slane %v394_v47, 1 }
 0x110   :  { %v396_v50 = vadd.f32 %v395_v49, %v394_v47  ;;  %397 = vst.msk [vmem:[%s801_s6] sm:$0xff] %vm290_vm1, %v343_v48 }
 0x112   :  { %398 = vst.msk [vmem:[%s802_s7] sm:$0xff] %vm290_vm1, %v396_v50 }

// kernel: sk_unit_forward.5
= control target key start
LH: loop header
LB: loop body
LE: loop exit
PB: predicated region body
PF: predicated region fallthrough
CT: control target
= control target key end

     0   :  { %17 = vsyncpa [#allocation4], 0  ;;  %s6486_s17 = smov 0   ;;  %s7339_s0 = inlined_call_operand.vmem [shape: f32[2,8,8,32], index: 0, kind: input, shape index: {}]   ;;  %s7340_s1 = inlined_call_operand.vmem [shape: f32[1,32], index: 1, kind: input, shape index: {}]   ;;  %s7341_s2 = inlined_call_operand.vmem [shape: f32[1,32], index: 2, kind: input, shape index: {}]   ;;  %s7342_s3 = inlined_call_operand.hbm [shape: f32[5,5,32,64], index: 3, kind: input, shape index: {}]   ;;  %s7343_s4 = inlined_call_operand.vmem [shape: f32[1,64], index: 4, kind: input, shape index: {}]   ;;  %s7344_s5 = inlined_call_operand.vmem [shape: f32[32,8], index: 5, kind: input, shape index: {}]   ;;  %s7345_s6 = inlined_call_operand.vmem [shape: f32[1,8], index: 6, kind: input, shape index: {}]   ;;  %s7346_s7 = inlined_call_operand.vmem [shape: f32[8,64], index: 7, kind: input, shape index: {}]   ;;  %s7347_s8 = inlined_call_operand.vmem [shape: f32[1,64], index: 8, kind: input, shape index: {}]   ;;  %s7348_s9 = inlined_call_operand.vmem [shape: f32[2,8,8,32], index: 9, kind: output, shape index: {0}]   ;;  %s7349_s10 = inlined_call_operand.vmem [shape: f32[2,8,32], index: 10, kind: output, shape index: {1}]   ;;  %s7350_s11 = inlined_call_operand.vmem [shape: f32[2,8,32], index: 11, kind: output, shape index: {2}]  }
   0x1 LB: > { %s6492_s18 = sadd.s32 4294967295, %s6416_s17   ;;  %p4905_p0 = scmp.ge.s32.totalorder %s6416_s17, 1  ;;  %s6416_s17 = sphi %s6486_s17, %s23_s17  }
   0x2   : > { %p300_p1 = scmp.lt.s32.totalorder %s6416_s17, 3  ;;  %s6418_s19 = smov [#allocation3]  }
   0x3   : > { %s318_s20 = sshll.u32 %s6418_s19, 4  ;;  %p7351_p3 = scmp.eq.s32.totalorder %s6492_s18, 0  ;;  %s319_s20 = int_to_ptr.vmem [resolvable:$true] %s318_s20 }
   0x4   : > { %p6496_p2 = pnand %p4905_p0, %p300_p1  ;;  %s6378_s25 = scalar_lea.hbm %s7342_s3, 12800 }
   0x5   : > { %p6379_p6 = scmp.ne.s32.totalorder %s7342_s3, %s6378_s25  ;;  %p6385_p10 = scmp.lt.u32.totalorder %s6378_s25, %s7342_s3 }
   0x6   : > { %s7353_s21 = scalar_select %p6496_p2, 1, 0 }
   0x7   : > { %p6352_p4 = pneg %p6496_p2 }
   0x9   : > { %p6505_p5 = pnand %p7351_p3, %p6352_p4 }
   0xb   : > { %p6380_p7 = pneg %p6505_p5 }
   0xd   : > { %p6381_p8 = pnand %p6380_p7, %p6379_p6 }
   0xf   : > { %p6382_p9 = pneg %p6381_p8 }
  0x11   : > { %p6387_p11 = pnand %p6385_p10, %p6382_p9 }
  0x13   : > { %6390 = shalt.err (!%p6387_p11)
}
  0x14   : > { %s6391_s30 = scalar_lea.vmem %s319_s20, 12800  ;;  %p6399_p1 = scmp.lt.s32.totalorder %s319_s20, %s319_s20 }
  0x15   : > { %p6392_p12 = scmp.ne.s32.totalorder %s319_s20, %s6391_s30  ;;  %p6400_p4 = scmp.lt.s32.totalorder %s6391_s30, %s6391_s30 }
  0x17   : > { %p6394_p13 = pnand %p6392_p12, %p6380_p7  ;;  %p6401_p3 = por %p6400_p4, %p6399_p1 }
  0x19   : > { %p6395_p0 = pneg %p6394_p13 }
  0x1b   : > { %p6402_p2 = pnand %p6401_p3, %p6395_p0 }
  0x1d   : > { %6405 = shalt.err (!%p6402_p2)
}
  0x1e   : > { %s6419_s12 = smov 128   ;;  %s6420_s13 = smov 8  }
  0x1f   : > { %6355 = dma.hbm_to_vmem [thread:$0]  (!%p6505_p5), %s7342_s3, 12800, %s319_s20, [#allocation4], %s6419_s12, %s6419_s12, %s6420_s13  }
  0x20   : > { %p7355_p6 = scmp.ne.s32.totalorder %s7353_s21, 0 }
  0x21   : > { %p7356_p8 = scmp.eq.s32.totalorder (!%p7355_p6), %s6492_s18, 0 }
  0x22   : > { %357 = sbr.rel (%p7355_p6) target bundleno = 1783 (0x6f7), region = 56 }
  0x29   : > { %6411 = dma.done.wait (%p7356_p8), [#allocation4], 12800   ;;  %p7357_p7 = pmov %p7356_p8 }
  0x2a   : > { %vm461_vm0 = vcmask 261120   ;;  %p405_p2 = scmp.lt.s32.totalorder %s6492_s18, 1  ;;  %v6421_v0 = vmov 0.0   ;;  %v651_v1 = vld [vmem:[#allocation3 + $0x20] sm:$0xff]  ;;  %v652_v2 = vld [vmem:[#allocation3 + $0x28] sm:$0xff]  ;;  %v653_v6 = vld [vmem:[#allocation3 + $0x30] sm:$0xff] }
  0x2b   : > { %6413 = vsyncadd (%p7357_p7), [#allocation4], 4294954496  ;;  %462 = vst.msk [vmem:[#allocation2] sm:$0xff] %vm461_vm0, %v6421_v0  ;;  %v2430_v3 = vld [vmem:[#allocation3 + $0x180] sm:$0xff]  ;;  %v5950_v4 = vpack.c.bf16 %v652_v2, %v651_v1  ;;  %v2431_v5 = vld [vmem:[#allocation3 + $0x188] sm:$0xff]  ;;  %vm610_vm1 = vcmask 261121  }
  0x2c   : > { %464 = vst.msk [vmem:[#allocation2 + $0x10] sm:$0xff] %vm461_vm0, %v6421_v0  ;;  %466 = vst.msk [vmem:[#allocation2 + $0x20] sm:$0xff] %vm461_vm0, %v6421_v0  ;;  %s7359_s18 = smov (!%p405_p2, %s6492_s18), 1  ;;  %v654_v7 = vld [vmem:[#allocation3 + $0x38] sm:$0xff]  ;;  %v6046_v8 = vpack.c.bf16 %v2431_v5, %v2430_v3  ;;  %v2432_v10 = vld [vmem:[#allocation3 + $0x190] sm:$0xff]  ;;  %vm620_vm2 = vcmask 261122  }
  0x2d   : > { %468 = vst.msk [vmem:[#allocation2 + $0x30] sm:$0xff] %vm461_vm0, %v6421_v0  ;;  %470 = vst.msk [vmem:[#allocation2 + $0x40] sm:$0xff] %vm461_vm0, %v6421_v0  ;;  %s5125_s16 = sshll.u32 %s7359_s18, 6  ;;  %v5954_v9 = vpack.c.bf16 %v654_v7, %v653_v6  ;;  %v2433_v11 = vld [vmem:[#allocation3 + $0x198] sm:$0xff]  ;;  %5951 = vmatprep.subr.bf16.mxu1 %v5950_v4  ;;  %v4916_v15 = vld [vmem:[%s7340_s1] ss:$0 sm:$0xff] }
  0x2e   : > { %472 = vst.msk [vmem:[#allocation2 + $0x50] sm:$0xff] %vm461_vm0, %v6421_v0  ;;  %474 = vst.msk [vmem:[#allocation2 + $0x60] sm:$0xff] %vm461_vm0, %v6421_v0  ;;  %s6663_s21 = scalar_lea.vmem %s7339_s0, %s5125_s16  ;;  %v6050_v13 = vpack.c.bf16 %v2433_v11, %v2432_v10  ;;  %5953 = vmatpush3.bf16.msra.mxu1 %v5950_v4  ;;  %6047 = vmatprep.subr.bf16.mxu0 %v6046_v8  ;;  %v6673_v17 = vld [vmem:[%s7341_s2] ss:$0 sm:$0xff]  ;;  %v2581_v19 = vld [vmem:[#allocation3 + $0x1a8] sm:$0xff]  ;;  %vm4396_vm3 = vcmask 523264   ;;  %s414_s30 = scalar_lea.vmem %s7348_s9, %s5125_s16 }
  0x2f   : > { %476 = vst.msk [vmem:[#allocation2 + $0x70] sm:$0xff] %vm461_vm0, %v6421_v0  ;;  %478 = vst.msk [vmem:[#allocation2 + $0x80] sm:$0xff] %vm461_vm0, %v6421_v0  ;;  %v423_v14 = vld [vmem:[%s6663_s21] sm:$0xff]  ;;  %6049 = vmatpush3.bf16.msra.mxu0 %v6046_v8  ;;  %5955 = vmatprep.subr.bf16.mxu1 %v5954_v9  ;;  %v424_v21 = vld [vmem:[%s6663_s21 + $0x8] sm:$0xff]  ;;  %vm6423_vm4 = vmmov 0   ;;  %s6424_s20 = smov 96  }
  0x30   : > { %480 = vst.msk [vmem:[#allocation2 + $0x90] sm:$0xff] %vm461_vm0, %v6421_v0  ;;  %482 = vst.msk [vmem:[#allocation2 + $0xa0] sm:$0xff] %vm461_vm0, %v6421_v0  ;;  %v438_v16 = vmul.f32 %v4916_v15, %v423_v14  ;;  %v2580_v18 = vld [vmem:[#allocation3 + $0x1a0] sm:$0xff]  ;;  %v425_v22 = vld [vmem:[%s6663_s21 + $0x10] sm:$0xff]  ;;  %6051 = vmatprep.subr.bf16.mxu0 %v6050_v13  ;;  %v439_v25 = vmul.f32 %v4916_v15, %v424_v21  ;;  %vm4521_vm5 = vcmask 64512   ;;  %s6425_s27 = smov 32  }
  0x31   : > { %484 = vst.msk [vmem:[#allocation2 + $0xb0] sm:$0xff] %vm461_vm0, %v6421_v0  ;;  %486 = vst.msk [vmem:[#allocation2 + $0xc0] sm:$0xff] %vm461_vm0, %v6421_v0  ;;  %v6675_v20 = vpack.c.bf16 %v2581_v19, %v2580_v18  ;;  %v426_v23 = vld [vmem:[%s6663_s21 + $0x18] sm:$0xff]  ;;  %v440_v26 = vmul.f32 %v4916_v15, %v425_v22  ;;  %v637_v28 = vld [vmem:[#allocation3] sm:$0xff]  ;;  %vm4713_vm6 = vcmask 523520   ;;  %s4914_s16 = sshll.u32 %s7359_s18, 3 }
  0x32   : > { %488 = vst.msk [vmem:[#allocation2 + $0xd0] sm:$0xff] %vm461_vm0, %v6421_v0  ;;  %490 = vst.msk [vmem:[#allocation2 + $0xe0] sm:$0xff] %vm461_vm0, %v6421_v0  ;;  %v453_v24 = vadd.f32 %v6673_v17, %v438_v16  ;;  %v441_v27 = vmul.f32 %v4916_v15, %v426_v23  ;;  %v638_v29 = vld [vmem:[#allocation3 + $0x8] sm:$0xff]  ;;  %v427_v30 = vld [vmem:[%s6663_s21 + $0x20] sm:$0xff]  ;;  %5957 = vmatpush3.bf16.msra.mxu1 %v5954_v9  ;;  %v454_v35 = vadd.f32 %v6673_v17, %v439_v25  ;;  %s418_s14 = scalar_lea.vmem %s7349_s10, %s4914_s16 }
  0x33   : > { %492 = vst.msk [vmem:[#allocation2 + $0xf0] sm:$0xff] %vm461_vm0, %v6421_v0  ;;  %494 = vst.msk [vmem:[#allocation2 + $0x100] sm:$0xff] %vm461_vm0, %v6421_v0  ;;  %v5958_v32 = vpack.c.bf16 %v638_v29, %v637_v28  ;;  %v442_v33 = vmul.f32 %v4916_v15, %v427_v30  ;;  %v428_v34 = vld [vmem:[%s6663_s21 + $0x28] sm:$0xff]  ;;  %v455_v36 = vadd.f32 %v6673_v17, %v440_v26  ;;  %v639_v38 = vld [vmem:[#allocation3 + $0x10] sm:$0xff]  ;;  %6053 = vmatpush3.bf16.msra.mxu0 %v6050_v13 }
  0x34   : > { %496 = vst.msk [vmem:[#allocation2 + $0x110] sm:$0xff] %vm461_vm0, %v6421_v0  ;;  %498 = vst.msk [vmem:[#allocation2 + $0x120] sm:$0xff] %vm461_vm0, %v6421_v0  ;;  %v456_v37 = vadd.f32 %v6673_v17, %v441_v27  ;;  %v640_v39 = vld [vmem:[#allocation3 + $0x18] sm:$0xff]  ;;  %v429_v40 = vld [vmem:[%s6663_s21 + $0x30] sm:$0xff]  ;;  %v443_v42 = vmul.f32 %v4916_v15, %v428_v34  ;;  %6055 = vmatprep.subr.bf16.mxu0 %v6675_v20 }
  0x35   : > { %500 = vst.msk [vmem:[#allocation2 + $0x130] sm:$0xff] %vm461_vm0, %v6421_v0  ;;  %502 = vst.msk [vmem:[#allocation2 + $0x140] sm:$0xff] %vm461_vm0, %v6421_v0  ;;  %5959 = vmatprep.subr.bf16.mxu1 %v5958_v32  ;;  %v457_v41 = vadd.f32 %v6673_v17, %v442_v33  ;;  %v5962_v43 = vpack.c.bf16 %v640_v39, %v639_v38  ;;  %v430_v44 = vld [vmem:[%s6663_s21 + $0x38] sm:$0xff]  ;;  %v444_v45 = vmul.f32 %v4916_v15, %v429_v40  ;;  %v2582_v50 = vld [vmem:[#allocation3 + $0x1b0] sm:$0xff] }
  0x36   : > { %504 = vst.msk [vmem:[#allocation2 + $0x150] sm:$0xff] %vm461_vm0, %v6421_v0  ;;  %506 = vst.msk [vmem:[#allocation2 + $0x160] sm:$0xff] %vm461_vm0, %v6421_v0  ;;  %v445_v46 = vmul.f32 %v4916_v15, %v430_v44  ;;  %v458_v47 = vadd.f32 %v6673_v17, %v443_v42  ;;  %v2583_v51 = vld [vmem:[#allocation3 + $0x1b8] sm:$0xff]  ;;  %v923_v52 = vld [vmem:[#allocation3 + $0x40] sm:$0xff] }
  0x37   : > { %508 = vst.msk [vmem:[#allocation2 + $0x170] sm:$0xff] %vm461_vm0, %v6421_v0  ;;  %510 = vst.msk [vmem:[#allocation2 + $0x180] sm:$0xff] %vm461_vm0, %v6421_v0  ;;  %v459_v48 = vadd.f32 %v6673_v17, %v444_v45  ;;  %v924_v53 = vld [vmem:[#allocation3 + $0x48] sm:$0xff]  ;;  %v6058_v56 = vpack.c.bf16 %v2583_v51, %v2582_v50  ;;  %v2730_v62 = vld [vmem:[#allocation3 + $0x1c0] sm:$0xff] }
  0x38   : > { %512 = vst.msk [vmem:[#allocation2 + $0x190] sm:$0xff] %vm461_vm0, %v6421_v0  ;;  %514 = vst.msk [vmem:[#allocation2 + $0x1a0] sm:$0xff] %vm461_vm0, %v6421_v0  ;;  %v642_v12 = vld [vmem:[#allocation2 + $0xc0] sm:$0xff]  ;;  %v460_v49 = vadd.f32 %v6673_v17, %v445_v46  ;;  %v5966_v60 = vpack.c.bf16 %v924_v53, %v923_v52  ;;  %v2731_v63 = vld [vmem:[#allocation3 + $0x1c8] sm:$0xff] }
  0x39   : > { %516 = vst.msk [vmem:[#allocation2 + $0x1b0] sm:$0xff] %vm461_vm0, %v6421_v0  ;;  %518 = vst.msk [vmem:[#allocation2 + $0x1c0] sm:$0xff] %vm461_vm0, %v6421_v0  ;;  %5442 = vmatprep.mubr.msk.f32.mxu1 %vm461_vm0, %v642_v12  ;;  %v6682_v31 = vld [vmem:[#allocation2 + $0xd0] sm:$0xff]  ;;  %v6062_v5 = vpack.c.bf16 %v2731_v63, %v2730_v62  ;;  %v629_v9 = vld [vmem:[#allocation2] sm:$0xff] }
  0x3a   : > { %520 = vst.msk [vmem:[#allocation2 + $0x1d0] sm:$0xff] %vm461_vm0, %v6421_v0  ;;  %522 = vst.msk [vmem:[#allocation2 + $0x1e0] sm:$0xff] %vm461_vm0, %v6421_v0  ;;  %5443 = vmatmul.mubr.msk.f32.vlgmr.msra.gmra.mrb[0].mxu1 %vm461_vm0, %v6682_v31  ;;  %v925_v10 = vld [vmem:[#allocation3 + $0x50] sm:$0xff]  ;;  %v926_v11 = vld [vmem:[#allocation3 + $0x58] sm:$0xff] }
  0x3b   : > { %524 = vst.msk [vmem:[#allocation2 + $0x1f0] sm:$0xff] %vm461_vm0, %v6421_v0  ;;  %526 = vst.msk [vmem:[#allocation2 + $0x200] sm:$0xff] %vm461_vm0, %v6421_v0  ;;  %5961 = vmatpush3.bf16.msra.mxu1 %v5958_v32  ;;  %v6793_v13 = vld [vmem:[#allocation2 + $0x10] sm:$0xff]  ;;  %v2733_v17 = vld [vmem:[#allocation3 + $0x1d8] sm:$0xff]  ;;  %v5970_v18 = vpack.c.bf16 %v926_v11, %v925_v10 }
  0x3c   : > { %528 = vst.msk [vmem:[#allocation2 + $0x210] sm:$0xff] %vm461_vm0, %v6421_v0  ;;  %530 = vst.msk [vmem:[#allocation2 + $0x220] sm:$0xff] %vm461_vm0, %v6421_v0  ;;  %5963 = vmatprep.subr.bf16.mxu1 %v5962_v43  ;;  %v2732_v16 = vld [vmem:[#allocation3 + $0x1d0] sm:$0xff]  ;;  %v1075_v25 = vld [vmem:[#allocation3 + $0x68] sm:$0xff] }
  0x3d   : > { %532 = vst.msk [vmem:[#allocation2 + $0x230] sm:$0xff] %vm461_vm0, %v6421_v0  ;;  %534 = vst.msk [vmem:[#allocation2 + $0x240] sm:$0xff] %vm461_vm0, %v6421_v0  ;;  %v6066_v22 = vpack.c.bf16 %v2733_v17, %v2732_v16  ;;  %v2881_v26 = vld [vmem:[#allocation3 + $0x1e0] sm:$0xff]  ;;  %v2882_v27 = vld [vmem:[#allocation3 + $0x1e8] sm:$0xff] }
  0x3e   : > { %536 = vst.msk [vmem:[#allocation2 + $0x250] sm:$0xff] %vm461_vm0, %v6421_v0  ;;  %538 = vst.msk [vmem:[#allocation2 + $0x260] sm:$0xff] %vm461_vm0, %v6421_v0  ;;  %v6070_v34 = vpack.c.bf16 %v2882_v27, %v2881_v26  ;;  %v914_v38 = vld [vmem:[#allocation2 + $0x180] sm:$0xff]  ;;  %v1076_v39 = vld [vmem:[#allocation3 + $0x70] sm:$0xff] }
  0x3f   : > { %540 = vst.msk [vmem:[#allocation2 + $0x270] sm:$0xff] %vm461_vm0, %v6421_v0  ;;  %542 = vst.msk [vmem:[#allocation2 + $0x280] sm:$0xff] %vm461_vm0, %v6421_v0  ;;  %5965 = vmatpush3.bf16.msra.mxu1 %v5962_v43  ;;  %v1077_v40 = vld [vmem:[#allocation3 + $0x78] sm:$0xff]  ;;  %v6854_v42 = vld [vmem:[#allocation2 + $0x190] sm:$0xff] }
  0x40   : > { %544 = vst.msk [vmem:[#allocation2 + $0x290] sm:$0xff] %vm461_vm0, %v6421_v0  ;;  %546 = vst.msk [vmem:[#allocation2 + $0x2a0] sm:$0xff] %vm461_vm0, %v6421_v0  ;;  %5967 = vmatprep.subr.bf16.mxu1 %v5966_v60  ;;  %v2883_v44 = vld [vmem:[#allocation3 + $0x1f0] sm:$0xff]  ;;  %v2884_v45 = vld [vmem:[#allocation3 + $0x1f8] sm:$0xff]  ;;  %v5978_v46 = vpack.c.bf16 %v1077_v40, %v1076_v39 }
  0x41   : > { %548 = vst.msk [vmem:[#allocation2 + $0x2b0] sm:$0xff] %vm461_vm0, %v6421_v0  ;;  %550 = vst.msk [vmem:[#allocation2 + $0x2c0] sm:$0xff] %vm461_vm0, %v6421_v0  ;;  %v1225_v50 = vld [vmem:[#allocation3 + $0x80] sm:$0xff]  ;;  %v1226_v51 = vld [vmem:[#allocation3 + $0x88] sm:$0xff] }
  0x42   : > { %552 = vst.msk [vmem:[#allocation2 + $0x2d0] sm:$0xff] %vm461_vm0, %v6421_v0  ;;  %554 = vst.msk [vmem:[#allocation2 + $0x2e0] sm:$0xff] %vm461_vm0, %v6421_v0  ;;  %v3032_v52 = vld [vmem:[#allocation3 + $0x200] sm:$0xff]  ;;  %v3033_v53 = vld [vmem:[#allocation3 + $0x208] sm:$0xff]  ;;  %v5982_v62 = vpack.c.bf16 %v1226_v51, %v1225_v50 }
  0x43   : > { %556 = vst.msk [vmem:[#allocation2 + $0x2f0] sm:$0xff] %vm461_vm0, %v6421_v0  ;;  %558 = vst.msk [vmem:[#allocation2 + $0x300] sm:$0xff] %vm461_vm0, %v6421_v0  ;;  %v6078_v63 = vpack.c.bf16 %v3033_v53, %v3032_v52  ;;  %v1227_v11 = vld [vmem:[#allocation3 + $0x90] sm:$0xff]  ;;  %v1228_v16 = vld [vmem:[#allocation3 + $0x98] sm:$0xff] }
  0x44   : > { %560 = vst.msk [vmem:[#allocation2 + $0x310] sm:$0xff] %vm461_vm0, %v6421_v0  ;;  %562 = vst.msk [vmem:[#allocation2 + $0x320] sm:$0xff] %vm461_vm0, %v6421_v0  ;;  %v1065_v10 = vld [vmem:[#allocation2 + $0x240] sm:$0xff]  ;;  %v1379_v50 = vld [vmem:[#allocation3 + $0xb8] sm:$0xff] }
  0x45   : > { %564 = vst.msk [vmem:[#allocation2 + $0x330] sm:$0xff] %vm461_vm0, %v6421_v0  ;;  %566 = vst.msk [vmem:[#allocation2 + $0x340] sm:$0xff] %vm461_vm0, %v6421_v0  ;;  %v1376_v27 = vld [vmem:[#allocation3 + $0xa0] sm:$0xff]  ;;  %v3185_v53 = vld [vmem:[#allocation3 + $0x230] sm:$0xff] }
  0x46   : > { %568 = vst.msk [vmem:[#allocation2 + $0x350] sm:$0xff] %vm461_vm0, %v6421_v0  ;;  %570 = vst.msk [vmem:[#allocation2 + $0x360] sm:$0xff] %vm461_vm0, %v6421_v0  ;;  %v6940_v51 = vld [vmem:[#allocation2 + $0xa0] sm:$0xff] }
  0x47   : > { %572 = vst.msk [vmem:[#allocation2 + $0x370] sm:$0xff] %vm461_vm0, %v6421_v0  ;;  %574 = vst.msk [vmem:[#allocation2 + $0x380] sm:$0xff] %vm461_vm0, %v6421_v0 }
  0x48   : > { %576 = vst.msk [vmem:[#allocation2 + $0x390] sm:$0xff] %vm461_vm0, %v6421_v0  ;;  %578 = vst.msk [vmem:[#allocation2 + $0x3a0] sm:$0xff] %vm461_vm0, %v6421_v0 }
  0x49   : > { %580 = vst.msk [vmem:[#allocation2 + $0x3b0] sm:$0xff] %vm461_vm0, %v6421_v0  ;;  %601 = vst.msk [vmem:[#allocation2 + $0x1a0] sm:$0xff] %vm461_vm0, %v453_v24 }
  0x4a   : > { %583 = vst.msk [vmem:[#allocation2 + $0x22] sm:$0xff] %vm461_vm0, %v453_v24  ;;  %592 = vst.msk [vmem:[#allocation2 + $0xe1] sm:$0xff] %vm461_vm0, %v453_v24 }
  0x4b   : > { %611 = vst.msk [vmem:[#allocation2 + $0x25f] sm:$0xfe] %vm610_vm1, %v453_v24  ;;  %612 = vst.msk [vmem:[#allocation2 + $0x26f] sm:$0xfe] %vm610_vm1, %v454_v35  ;;  %v6942_v52 = vld [vmem:[#allocation2 + $0x310] sm:$0xff] }
  0x4c   : > { %621 = vst.msk [vmem:[#allocation2 + $0x31e] sm:$0xfc] %vm620_vm2, %v453_v24  ;;  %622 = vst.msk [vmem:[#allocation2 + $0x32e] sm:$0xfc] %vm620_vm2, %v454_v35  ;;  %v1074_v24 = vld [vmem:[#allocation3 + $0x60] sm:$0xff] }
  0x4d   : > { %602 = vst.msk [vmem:[#allocation2 + $0x1b0] sm:$0xff] %vm461_vm0, %v454_v35  ;;  %584 = vst.msk [vmem:[#allocation2 + $0x32] sm:$0xff] %vm461_vm0, %v454_v35  ;;  %v5974_v33 = vpack.c.bf16 %v1075_v25, %v1074_v24  ;;  %v3035_v24 = vld [vmem:[#allocation3 + $0x218] sm:$0xff]  ;;  %v5986_v25 = vpack.c.bf16 %v1228_v16, %v1227_v11  ;;  %v1527_v11 = vld [vmem:[#allocation3 + $0xc0] sm:$0xff] }
  0x4e   : > { %593 = vst.msk [vmem:[#allocation2 + $0xf1] sm:$0xff] %vm461_vm0, %v454_v35  ;;  %603 = vst.msk [vmem:[#allocation2 + $0x1c0] sm:$0xff] %vm461_vm0, %v455_v36  ;;  %v1528_v16 = vld [vmem:[#allocation3 + $0xc8] sm:$0xff] }
  0x4f   : > { %585 = vst.msk [vmem:[#allocation2 + $0x42] sm:$0xff] %vm461_vm0, %v455_v36  ;;  %594 = vst.msk [vmem:[#allocation2 + $0x101] sm:$0xff] %vm461_vm0, %v455_v36 }
  0x50   : > { %604 = vst.msk [vmem:[#allocation2 + $0x1d0] sm:$0xff] %vm461_vm0, %v456_v37  ;;  %586 = vst.msk [vmem:[#allocation2 + $0x52] sm:$0xff] %vm461_vm0, %v456_v37  ;;  %v6737_v54 = vld [vmem:[#allocation2 + $0x1a0] sm:$0xff] }
  0x51   : > { %595 = vst.msk [vmem:[#allocation2 + $0x111] sm:$0xff] %vm461_vm0, %v456_v37  ;;  %605 = vst.msk [vmem:[#allocation2 + $0x1e0] sm:$0xff] %vm461_vm0, %v457_v41  ;;  %v6739_v55 = vld [vmem:[#allocation2 + $0xe0] sm:$0xff]  ;;  %5682 = vmatprep.mubr.msk.f32.mxu0 %vm461_vm0, %v6737_v54 }
  0x52   : > { %613 = vst.msk [vmem:[#allocation2 + $0x27f] sm:$0xfe] %vm610_vm1, %v455_v36  ;;  %614 = vst.msk [vmem:[#allocation2 + $0x28f] sm:$0xfe] %vm610_vm1, %v456_v37  ;;  %5445 = vmatprep.mubr.msk.f32.mxu1 %vm461_vm0, %v6739_v55  ;;  %v6795_v14 = vld [vmem:[#allocation2 + $0x260] sm:$0xff]  ;;  %v6807_v19 = vld [vmem:[#allocation2 + $0x270] sm:$0xff] }
  0x53   : > { %623 = vst.msk [vmem:[#allocation2 + $0x33e] sm:$0xfc] %vm620_vm2, %v455_v36  ;;  %624 = vst.msk [vmem:[#allocation2 + $0x34e] sm:$0xfc] %vm620_vm2, %v456_v37  ;;  %v6797_v15 = vld [vmem:[#allocation2 + $0x20] sm:$0xff] }
  0x54   : > { %587 = vst.msk [vmem:[#allocation2 + $0x62] sm:$0xff] %vm461_vm0, %v457_v41  ;;  %596 = vst.msk [vmem:[#allocation2 + $0x121] sm:$0xff] %vm461_vm0, %v457_v41  ;;  %v6745_v57 = vld [vmem:[#allocation2 + $0x1b0] sm:$0xff]  ;;  %v6856_v43 = vld [vmem:[#allocation2 + $0x320] sm:$0xff] }
  0x55   : > { %615 = vst.msk [vmem:[#allocation2 + $0x29f] sm:$0xfe] %vm610_vm1, %v457_v41  ;;  %616 = vst.msk [vmem:[#allocation2 + $0x2af] sm:$0xfe] %vm610_vm1, %v458_v47  ;;  %v6747_v58 = vld [vmem:[#allocation2 + $0xf0] sm:$0xff]  ;;  %v6749_v59 = vld [vmem:[#allocation2 + $0x1c0] sm:$0xff]  ;;  %5683 = vmatmul.mubr.msk.f32.vlgmr.msra.gmra.mrb[0].mxu0 %vm461_vm0, %v6745_v57 }
  0x56   : > { %625 = vst.msk [vmem:[#allocation2 + $0x35e] sm:$0xfc] %vm620_vm2, %v457_v41  ;;  %626 = vst.msk [vmem:[#allocation2 + $0x36e] sm:$0xfc] %vm620_vm2, %v458_v47  ;;  %5446 = vmatmul.mubr.msk.f32.gmra.mrb[2].mxu1 %vm461_vm0, %v6747_v58  ;;  %v6755_v61 = vld [vmem:[#allocation2 + $0x100] sm:$0xff]  ;;  %6057 = vmatpush3.bf16.msra.mxu0 %v6675_v20  ;;  %v6809_v20 = vld [vmem:[#allocation2 + $0x30] sm:$0xff] }
  0x57   : > { %606 = vst.msk [vmem:[#allocation2 + $0x1f0] sm:$0xff] %vm461_vm0, %v458_v47  ;;  %588 = vst.msk [vmem:[#allocation2 + $0x72] sm:$0xff] %vm461_vm0, %v458_v47  ;;  %5685 = vmatprep.mubr.msk.f32.mxu0 %vm461_vm0, %v6749_v59  ;;  %v6760_v1 = vld [vmem:[#allocation2 + $0x1d0] sm:$0xff]  ;;  %5448 = vmatprep.mubr.msk.f32.mxu1 %vm461_vm0, %v6755_v61  ;;  %v6813_v23 = vld [vmem:[#allocation2 + $0x40] sm:$0xff] }
  0x58   : > { %597 = vst.msk [vmem:[#allocation2 + $0x131] sm:$0xff] %vm461_vm0, %v458_v47  ;;  %607 = vst.msk [vmem:[#allocation2 + $0x200] sm:$0xff] %vm461_vm0, %v459_v48  ;;  %v6762_v2 = vld [vmem:[#allocation2 + $0x110] sm:$0xff]  ;;  %v6766_v3 = vld [vmem:[#allocation2 + $0x1e0] sm:$0xff]  ;;  %6059 = vmatprep.subr.bf16.mxu0 %v6058_v56 }
  0x59   : > { %589 = vst.msk [vmem:[#allocation2 + $0x82] sm:$0xff] %vm461_vm0, %v459_v48  ;;  %598 = vst.msk [vmem:[#allocation2 + $0x141] sm:$0xff] %vm461_vm0, %v459_v48  ;;  %5686 = vmatmul.mubr.msk.f32.gmra.mrb[2].mxu0 %vm461_vm0, %v6760_v1  ;;  %v6811_v21 = vld [vmem:[#allocation2 + $0x280] sm:$0xff]  ;;  %v6821_v28 = vld [vmem:[#allocation2 + $0x290] sm:$0xff] }
  0x5a   : > { %608 = vst.msk [vmem:[#allocation2 + $0x210] sm:$0xff] %vm461_vm0, %v460_v49  ;;  %590 = vst.msk [vmem:[#allocation2 + $0x92] sm:$0xff] %vm461_vm0, %v460_v49  ;;  %5449 = vmatmul.mubr.msk.f32.gmra.mrb[4].mxu1 %vm461_vm0, %v6762_v2  ;;  %5688 = vmatprep.mubr.msk.f32.mxu0 %vm461_vm0, %v6766_v3  ;;  %v6823_v29 = vld [vmem:[#allocation2 + $0x50] sm:$0xff] }
  0x5b   : > { %599 = vst.msk [vmem:[#allocation2 + $0x151] sm:$0xff] %vm461_vm0, %v460_v49  ;;  %v6768_v4 = vld [vmem:[#allocation2 + $0x120] sm:$0xff]  ;;  %6061 = vmatpush3.bf16.msra.mxu0 %v6058_v56  ;;  %v6866_v47 = vld [vmem:[#allocation2 + $0x330] sm:$0xff] }
  0x5c   : > { %617 = vst.msk [vmem:[#allocation2 + $0x2bf] sm:$0xfe] %vm610_vm1, %v459_v48  ;;  %618 = vst.msk [vmem:[#allocation2 + $0x2cf] sm:$0xfe] %vm610_vm1, %v460_v49  ;;  %5451 = vmatprep.mubr.msk.f32.mxu1 %vm461_vm0, %v6768_v4  ;;  %6063 = vmatprep.subr.bf16.mxu0 %v6062_v5  ;;  %v6827_v30 = vld [vmem:[#allocation2 + $0x2a0] sm:$0xff]  ;;  %v6839_v35 = vld [vmem:[#allocation2 + $0x2b0] sm:$0xff] }
  0x5d   : > { %627 = vst.msk [vmem:[#allocation2 + $0x37e] sm:$0xfc] %vm620_vm2, %v459_v48  ;;  %628 = vst.msk [vmem:[#allocation2 + $0x38e] sm:$0xfc] %vm620_vm2, %v460_v49  ;;  %v6829_v32 = vld [vmem:[#allocation2 + $0x60] sm:$0xff]  ;;  %v6074_v49 = vpack.c.bf16 %v2884_v45, %v2883_v44  ;;  %v6876_v56 = vld [vmem:[#allocation2 + $0x350] sm:$0xff] }
  0x5e   : > { %v6778_v6 = vld [vmem:[#allocation2 + $0x1f0] sm:$0xff]  ;;  %v6868_v48 = vld [vmem:[#allocation2 + $0x340] sm:$0xff] }
  0x5f   : > { %v6780_v7 = vld [vmem:[#allocation2 + $0x130] sm:$0xff]  ;;  %v6782_v8 = vld [vmem:[#allocation2 + $0x200] sm:$0xff]  ;;  %5689 = vmatmul.mubr.msk.f32.gmra.mrb[4].mxu0 %vm461_vm0, %v6778_v6 }
  0x60   : > { %5452 = vmatmul.mubr.msk.f32.gmra.mrb[6].mxu1 %vm461_vm0, %v6780_v7  ;;  %5691 = vmatprep.mubr.msk.f32.mxu0 %vm461_vm0, %v6782_v8  ;;  %v6841_v36 = vld [vmem:[#allocation2 + $0x70] sm:$0xff]  ;;  %v6929_v44 = vld [vmem:[#allocation2 + $0x80] sm:$0xff] }
  0x61   : > { %5462 = vmatprep.mubr.msk.f32.mxu1 %vm461_vm0, %v629_v9  ;;  %v6791_v12 = vld [vmem:[#allocation2 + $0x210] sm:$0xff] }
  0x62   : > { %v6931_v45 = vld [vmem:[#allocation2 + $0x90] sm:$0xff] }
  0x63   : > { %5692 = vmatmul.mubr.msk.f32.gmra.mrb[6].mxu0 %vm461_vm0, %v6791_v12  ;;  %v6843_v37 = vld [vmem:[#allocation2 + $0x2c0] sm:$0xff]  ;;  %v6852_v41 = vld [vmem:[#allocation2 + $0x2d0] sm:$0xff] }
  0x64   : > { %5463 = vmatmul.mubr.msk.f32.vlgmr.msra.gmra.mrb[0].mxu1 %vm461_vm0, %v6793_v13  ;;  %5702 = vmatprep.mubr.msk.f32.mxu0 %vm461_vm0, %v6795_v14  ;;  %v6892_v9 = vld [vmem:[#allocation2 + $0x380] sm:$0xff]  ;;  %v6901_v17 = vld [vmem:[#allocation2 + $0x390] sm:$0xff] }
  0x65   : > { %5465 = vmatprep.mubr.msk.f32.mxu1 %vm461_vm0, %v6797_v15  ;;  %5969 = vmatpush3.bf16.msra.mxu1 %v5966_v60  ;;  %v6880_v60 = vld [vmem:[#allocation2 + $0x360] sm:$0xff] }
  0x66   : > { %5971 = vmatprep.subr.bf16.mxu1 %v5970_v18 }
  0x67   : > { %5703 = vmatmul.mubr.msk.f32.vlgmr.msra.gmra.mrb[0].mxu0 %vm461_vm0, %v6807_v19 }
  0x68   : > { %5466 = vmatmul.mubr.msk.f32.gmra.mrb[2].mxu1 %vm461_vm0, %v6809_v20  ;;  %6065 = vmatpush3.bf16.msra.mxu0 %v6062_v5  ;;  %v6890_v5 = vld [vmem:[#allocation2 + $0x370] sm:$0xff] }
  0x69   : > { %5705 = vmatprep.mubr.msk.f32.mxu0 %vm461_vm0, %v6811_v21  ;;  %5468 = vmatprep.mubr.msk.f32.mxu1 %vm461_vm0, %v6813_v23 }
  0x6a   : > { %6067 = vmatprep.subr.bf16.mxu0 %v6066_v22  ;;  %5973 = vmatpush3.bf16.msra.mxu1 %v5970_v18  ;;  %v6903_v18 = vld [vmem:[#allocation2 + $0x250] sm:$0xff] }
  0x6b   : > { %5706 = vmatmul.mubr.msk.f32.gmra.mrb[2].mxu0 %vm461_vm0, %v6821_v28  ;;  %5975 = vmatprep.subr.bf16.mxu1 %v5974_v33 }
  0x6c   : > { %5469 = vmatmul.mubr.msk.f32.gmra.mrb[4].mxu1 %vm461_vm0, %v6823_v29  ;;  %5708 = vmatprep.mubr.msk.f32.mxu0 %vm461_vm0, %v6827_v30 }
  0x6d   : > { %5471 = vmatprep.mubr.msk.f32.mxu1 %vm461_vm0, %v6829_v32  ;;  %6069 = vmatpush3.bf16.msra.mxu0 %v6066_v22  ;;  %v3034_v22 = vld [vmem:[#allocation3 + $0x210] sm:$0xff] }
  0x6e   : > { %6071 = vmatprep.subr.bf16.mxu0 %v6070_v34  ;;  %v6082_v26 = vpack.c.bf16 %v3035_v24, %v3034_v22  ;;  %v3334_v22 = vld [vmem:[#allocation3 + $0x240] sm:$0xff]  ;;  %v3335_v24 = vld [vmem:[#allocation3 + $0x248] sm:$0xff] }
  0x6f   : > { %5709 = vmatmul.mubr.msk.f32.gmra.mrb[4].mxu0 %vm461_vm0, %v6839_v35 }
  0x70   : > { %5472 = vmatmul.mubr.msk.f32.gmra.mrb[6].mxu1 %vm461_vm0, %v6841_v36  ;;  %5711 = vmatprep.mubr.msk.f32.mxu0 %vm461_vm0, %v6843_v37 }
  0x71   : > { %5482 = vmatprep.mubr.msk.f32.mxu1 %vm461_vm0, %v914_v38  ;;  %v3184_v38 = vld [vmem:[#allocation3 + $0x228] sm:$0xff] }
  0x73   : > { %5712 = vmatmul.mubr.msk.f32.gmra.mrb[6].mxu0 %vm461_vm0, %v6852_v41 }
  0x74   : > { %5483 = vmatmul.mubr.msk.f32.vlgmr.msra.gmra.mrb[0].mxu1 %vm461_vm0, %v6854_v42  ;;  %5722 = vmatprep.mubr.msk.f32.mxu0 %vm461_vm0, %v6856_v43 }
  0x75   : > { %5485 = vmatprep.mubr.msk.f32.mxu1 %vm461_vm0, %v6737_v54  ;;  %5977 = vmatpush3.bf16.msra.mxu1 %v5974_v33  ;;  %v1377_v33 = vld [vmem:[#allocation3 + $0xa8] sm:$0xff] }
  0x76   : > { %5979 = vmatprep.subr.bf16.mxu1 %v5978_v46  ;;  %v5990_v39 = vpack.c.bf16 %v1377_v33, %v1376_v27  ;;  %v6968_v27 = vld [vmem:[#allocation2 + $0x140] sm:$0xff]  ;;  %v6970_v33 = vld [vmem:[#allocation2 + $0x150] sm:$0xff] }
  0x77   : > { %5723 = vmatmul.mubr.msk.f32.vlgmr.msra.gmra.mrb[0].mxu0 %vm461_vm0, %v6866_v47 }
  0x78   : > { %5486 = vmatmul.mubr.msk.f32.gmra.mrb[2].mxu1 %vm461_vm0, %v6745_v57  ;;  %6073 = vmatpush3.bf16.msra.mxu0 %v6070_v34  ;;  %v3183_v34 = vld [vmem:[#allocation3 + $0x220] sm:$0xff] }
  0x79   : > { %5725 = vmatprep.mubr.msk.f32.mxu0 %vm461_vm0, %v6868_v48  ;;  %5488 = vmatprep.mubr.msk.f32.mxu1 %vm461_vm0, %v6749_v59  ;;  %v6086_v40 = vpack.c.bf16 %v3184_v38, %v3183_v34  ;;  %v1529_v34 = vld [vmem:[#allocation3 + $0xd0] sm:$0xff]  ;;  %v1530_v38 = vld [vmem:[#allocation3 + $0xd8] sm:$0xff] }
  0x7a   : > { %6075 = vmatprep.subr.bf16.mxu0 %v6074_v49  ;;  %5981 = vmatpush3.bf16.msra.mxu1 %v5978_v46  ;;  %v1216_v46 = vld [vmem:[#allocation2 + $0x300] sm:$0xff] }
  0x7b   : > { %5726 = vmatmul.mubr.msk.f32.gmra.mrb[2].mxu0 %vm461_vm0, %v6876_v56  ;;  %5983 = vmatprep.subr.bf16.mxu1 %v5982_v62 }
  0x7c   : > { %5489 = vmatmul.mubr.msk.f32.gmra.mrb[4].mxu1 %vm461_vm0, %v6760_v1  ;;  %5728 = vmatprep.mubr.msk.f32.mxu0 %vm461_vm0, %v6880_v60 }
  0x7d   : > { %5491 = vmatprep.mubr.msk.f32.mxu1 %vm461_vm0, %v6766_v3  ;;  %6077 = vmatpush3.bf16.msra.mxu0 %v6074_v49  ;;  %v1378_v49 = vld [vmem:[#allocation3 + $0xb0] sm:$0xff] }
  0x7e   : > { %6079 = vmatprep.subr.bf16.mxu0 %v6078_v63 }
  0x7f   : > { %5729 = vmatmul.mubr.msk.f32.gmra.mrb[4].mxu0 %vm461_vm0, %v6890_v5 }
  0x80   : > { %5492 = vmatmul.mubr.msk.f32.gmra.mrb[6].mxu1 %vm461_vm0, %v6778_v6  ;;  %5731 = vmatprep.mubr.msk.f32.mxu0 %vm461_vm0, %v6892_v9 }
  0x81   : > { %5502 = vmatprep.mubr.msk.f32.mxu1 %vm461_vm0, %v1065_v10 }
  0x83   : > { %5732 = vmatmul.mubr.msk.f32.gmra.mrb[6].mxu0 %vm461_vm0, %v6901_v17 }
  0x84   : > { %5503 = vmatmul.mubr.msk.f32.vlgmr.msra.gmra.mrb[0].mxu1 %vm461_vm0, %v6903_v18  ;;  %5742 = vmatprep.mubr.msk.f32.mxu0 %vm461_vm0, %v6809_v20 }
  0x85   : > { %5505 = vmatprep.mubr.msk.f32.mxu1 %vm461_vm0, %v6795_v14  ;;  %5985 = vmatpush3.bf16.msra.mxu1 %v5982_v62  ;;  %v3186_v62 = vld [vmem:[#allocation3 + $0x238] sm:$0xff] }
  0x86   : > { %5987 = vmatprep.subr.bf16.mxu1 %v5986_v25  ;;  %v6090_v10 = vpack.c.bf16 %v3186_v62, %v3185_v53  ;;  %v1679_v53 = vld [vmem:[#allocation3 + $0xe8] sm:$0xff]  ;;  %v3485_v62 = vld [vmem:[#allocation3 + $0x260] sm:$0xff] }
  0x87   : > { %5743 = vmatmul.mubr.msk.f32.vlgmr.msra.gmra.mrb[0].mxu0 %vm461_vm0, %v6813_v23 }
  0x88   : > { %5506 = vmatmul.mubr.msk.f32.gmra.mrb[2].mxu1 %vm461_vm0, %v6807_v19  ;;  %6081 = vmatpush3.bf16.msra.mxu0 %v6078_v63  ;;  %v5994_v63 = vpack.c.bf16 %v1379_v50, %v1378_v49  ;;  %v6002_v49 = vpack.c.bf16 %v1530_v38, %v1529_v34  ;;  %v1830_v38 = vld [vmem:[#allocation3 + $0x108] sm:$0xff] }
  0x89   : > { %5745 = vmatprep.mubr.msk.f32.mxu0 %vm461_vm0, %v6823_v29  ;;  %5508 = vmatprep.mubr.msk.f32.mxu1 %vm461_vm0, %v6811_v21 }
  0x8a   : > { %6083 = vmatprep.subr.bf16.mxu0 %v6082_v26  ;;  %5989 = vmatpush3.bf16.msra.mxu1 %v5986_v25  ;;  %v5998_v25 = vpack.c.bf16 %v1528_v16, %v1527_v11  ;;  %v1680_v16 = vld [vmem:[#allocation3 + $0xf0] sm:$0xff] }
  0x8b   : > { %5746 = vmatmul.mubr.msk.f32.gmra.mrb[2].mxu0 %vm461_vm0, %v6829_v32  ;;  %5991 = vmatprep.subr.bf16.mxu1 %v5990_v39 }
  0x8c   : > { %5509 = vmatmul.mubr.msk.f32.gmra.mrb[4].mxu1 %vm461_vm0, %v6821_v28  ;;  %5748 = vmatprep.mubr.msk.f32.mxu0 %vm461_vm0, %v6841_v36 }
  0x8d   : > { %5511 = vmatprep.mubr.msk.f32.mxu1 %vm461_vm0, %v6827_v30  ;;  %6085 = vmatpush3.bf16.msra.mxu0 %v6082_v26  ;;  %v6094_v26 = vpack.c.bf16 %v3335_v24, %v3334_v22  ;;  %v1681_v22 = vld [vmem:[#allocation3 + $0xf8] sm:$0xff]  ;;  %v7014_v24 = vld [vmem:[#allocation2 + $0x220] sm:$0xff] }
  0x8e   : > { %6087 = vmatprep.subr.bf16.mxu0 %v6086_v40  ;;  %v6010_v34 = vpack.c.bf16 %v1681_v22, %v1680_v16  ;;  %v3787_v16 = vld [vmem:[#allocation3 + $0x2a0] sm:$0xff]  ;;  %v3788_v22 = vld [vmem:[#allocation3 + $0x2a8] sm:$0xff] }
  0x8f   : > { %5749 = vmatmul.mubr.msk.f32.gmra.mrb[4].mxu0 %vm461_vm0, %v6929_v44 }
  0x90   : > { %5512 = vmatmul.mubr.msk.f32.gmra.mrb[6].mxu1 %vm461_vm0, %v6839_v35  ;;  %5751 = vmatprep.mubr.msk.f32.mxu0 %vm461_vm0, %v6931_v45 }
  0x91   : > { %5522 = vmatprep.mubr.msk.f32.mxu1 %vm461_vm0, %v1216_v46  ;;  %v3337_v46 = vld [vmem:[#allocation3 + $0x258] sm:$0xff] }
  0x93   : > { %5752 = vmatmul.mubr.msk.f32.gmra.mrb[6].mxu0 %vm461_vm0, %v6940_v51 }
  0x94   : > { %5523 = vmatmul.mubr.msk.f32.vlgmr.msra.gmra.mrb[0].mxu1 %vm461_vm0, %v6942_v52  ;;  %5762 = vmatprep.mubr.msk.f32.mxu0 %vm461_vm0, %v6747_v58 }
  0x95   : > { %5525 = vmatprep.mubr.msk.f32.mxu1 %vm461_vm0, %v6856_v43  ;;  %5993 = vmatpush3.bf16.msra.mxu1 %v5990_v39  ;;  %v6980_v39 = vld [vmem:[#allocation2 + $0x160] sm:$0xff] }
  0x96   : > { %5995 = vmatprep.subr.bf16.mxu1 %v5994_v63 }
  0x97   : > { %5763 = vmatmul.mubr.msk.f32.vlgmr.msra.gmra.mrb[0].mxu0 %vm461_vm0, %v6755_v61 }
  0x98   : > { %5526 = vmatmul.mubr.msk.f32.gmra.mrb[2].mxu1 %vm461_vm0, %v6866_v47  ;;  %6089 = vmatpush3.bf16.msra.mxu0 %v6086_v40  ;;  %v3336_v40 = vld [vmem:[#allocation3 + $0x250] sm:$0xff] }
  0x99   : > { %5765 = vmatprep.mubr.msk.f32.mxu0 %vm461_vm0, %v6762_v2  ;;  %5528 = vmatprep.mubr.msk.f32.mxu1 %vm461_vm0, %v6868_v48  ;;  %v6098_v50 = vpack.c.bf16 %v3337_v46, %v3336_v40  ;;  %v3636_v40 = vld [vmem:[#allocation3 + $0x280] sm:$0xff]  ;;  %v3637_v46 = vld [vmem:[#allocation3 + $0x288] sm:$0xff] }
  0x9a   : > { %6091 = vmatprep.subr.bf16.mxu0 %v6090_v10  ;;  %5997 = vmatpush3.bf16.msra.mxu1 %v5994_v63  ;;  %v3486_v63 = vld [vmem:[#allocation3 + $0x268] sm:$0xff] }
  0x9b   : > { %5766 = vmatmul.mubr.msk.f32.gmra.mrb[2].mxu0 %vm461_vm0, %v6768_v4  ;;  %5999 = vmatprep.subr.bf16.mxu1 %v5998_v25  ;;  %v6102_v11 = vpack.c.bf16 %v3486_v63, %v3485_v62  ;;  %v3639_v62 = vld [vmem:[#allocation3 + $0x298] sm:$0xff] }
  0x9c   : > { %5529 = vmatmul.mubr.msk.f32.gmra.mrb[4].mxu1 %vm461_vm0, %v6876_v56  ;;  %5768 = vmatprep.mubr.msk.f32.mxu0 %vm461_vm0, %v6780_v7 }
  0x9d   : > { %5531 = vmatprep.mubr.msk.f32.mxu1 %vm461_vm0, %v6880_v60  ;;  %6093 = vmatpush3.bf16.msra.mxu0 %v6090_v10 }
  0x9e   : > { %6095 = vmatprep.subr.bf16.mxu0 %v6094_v26 }
  0x9f   : > { %5769 = vmatmul.mubr.msk.f32.gmra.mrb[4].mxu0 %vm461_vm0, %v6968_v27 }
  0xa0   : > { %5532 = vmatmul.mubr.msk.f32.gmra.mrb[6].mxu1 %vm461_vm0, %v6890_v5  ;;  %5771 = vmatprep.mubr.msk.f32.mxu0 %vm461_vm0, %v6970_v33 }
  0xa1   : > { %5542 = vmatprep.mubr.msk.f32.mxu1 %vm461_vm0, %v6793_v13  ;;  %v1678_v13 = vld [vmem:[#allocation3 + $0xe0] sm:$0xff] }
  0xa2   : > { %v6006_v10 = vpack.c.bf16 %v1679_v53, %v1678_v13  ;;  %v7048_v13 = vld [vmem:[#allocation2 + $0x2e0] sm:$0xff]  ;;  %v3638_v53 = vld [vmem:[#allocation3 + $0x290] sm:$0xff] }
  0xa3   : > { %5772 = vmatmul.mubr.msk.f32.gmra.mrb[6].mxu0 %vm461_vm0, %v6980_v39 }
  0xa4   : > { %5543 = vmatmul.mubr.msk.f32.vlgmr.msra.gmra.mrb[0].mxu1 %vm461_vm0, %v6797_v15  ;;  %5782 = vmatprep.mubr.msk.f32.mxu0 %vm461_vm0, %v6745_v57 }
  0xa5   : > { %5545 = vmatprep.mubr.msk.f32.mxu1 %vm461_vm0, %v6809_v20  ;;  %6001 = vmatpush3.bf16.msra.mxu1 %v5998_v25  ;;  %v3487_v25 = vld [vmem:[#allocation3 + $0x270] sm:$0xff] }
  0xa6   : > { %6003 = vmatprep.subr.bf16.mxu1 %v6002_v49 }
  0xa7   : > { %5783 = vmatmul.mubr.msk.f32.vlgmr.msra.gmra.mrb[0].mxu0 %vm461_vm0, %v6749_v59 }
  0xa8   : > { %5546 = vmatmul.mubr.msk.f32.gmra.mrb[2].mxu1 %vm461_vm0, %v6813_v23  ;;  %6097 = vmatpush3.bf16.msra.mxu0 %v6094_v26  ;;  %v3488_v26 = vld [vmem:[#allocation3 + $0x278] sm:$0xff] }
  0xa9   : > { %5785 = vmatprep.mubr.msk.f32.mxu0 %vm461_vm0, %v6760_v1  ;;  %5548 = vmatprep.mubr.msk.f32.mxu1 %vm461_vm0, %v6823_v29 }
  0xaa   : > { %6099 = vmatprep.subr.bf16.mxu0 %v6098_v50  ;;  %6005 = vmatpush3.bf16.msra.mxu1 %v6002_v49  ;;  %v1831_v49 = vld [vmem:[#allocation3 + $0x110] sm:$0xff] }
  0xab   : > { %5786 = vmatmul.mubr.msk.f32.gmra.mrb[2].mxu0 %vm461_vm0, %v6766_v3  ;;  %6007 = vmatprep.subr.bf16.mxu1 %v6006_v10 }
  0xac   : > { %5549 = vmatmul.mubr.msk.f32.gmra.mrb[4].mxu1 %vm461_vm0, %v6829_v32  ;;  %5788 = vmatprep.mubr.msk.f32.mxu0 %vm461_vm0, %v6778_v6 }
  0xad   : > { %5551 = vmatprep.mubr.msk.f32.mxu1 %vm461_vm0, %v6841_v36  ;;  %6101 = vmatpush3.bf16.msra.mxu0 %v6098_v50  ;;  %v1832_v50 = vld [vmem:[#allocation3 + $0x118] sm:$0xff] }
  0xae   : > { %6103 = vmatprep.subr.bf16.mxu0 %v6102_v11  ;;  %v6018_v63 = vpack.c.bf16 %v1832_v50, %v1831_v49  ;;  %v4090_v49 = vld [vmem:[#allocation3 + $0x2e8] sm:$0xff]  ;;  %v4091_v50 = vld [vmem:[#allocation3 + $0x2f0] sm:$0xff] }
  0xaf   : > { %5789 = vmatmul.mubr.msk.f32.gmra.mrb[4].mxu0 %vm461_vm0, %v6782_v8 }
  0xb0   : > { %5552 = vmatmul.mubr.msk.f32.gmra.mrb[6].mxu1 %vm461_vm0, %v6929_v44  ;;  %5791 = vmatprep.mubr.msk.f32.mxu0 %vm461_vm0, %v6791_v12  ;;  %v6106_v12 = vpack.c.bf16 %v3488_v26, %v3487_v25  ;;  %v3790_v25 = vld [vmem:[#allocation3 + $0x2b8] sm:$0xff] }
  0xb1   : > { %5562 = vmatprep.mubr.msk.f32.mxu1 %vm461_vm0, %v6682_v31  ;;  %v1829_v31 = vld [vmem:[#allocation3 + $0x100] sm:$0xff] }
  0xb3   : > { %5792 = vmatmul.mubr.msk.f32.gmra.mrb[6].mxu0 %vm461_vm0, %v7014_v24 }
  0xb4   : > { %5563 = vmatmul.mubr.msk.f32.vlgmr.msra.gmra.mrb[0].mxu1 %vm461_vm0, %v6739_v55  ;;  %5802 = vmatprep.mubr.msk.f32.mxu0 %vm461_vm0, %v6807_v19  ;;  %v6014_v55 = vpack.c.bf16 %v1830_v38, %v1829_v31  ;;  %v3939_v31 = vld [vmem:[#allocation3 + $0x2c8] sm:$0xff]  ;;  %v3940_v38 = vld [vmem:[#allocation3 + $0x2d0] sm:$0xff] }
  0xb5   : > { %5565 = vmatprep.mubr.msk.f32.mxu1 %vm461_vm0, %v6747_v58  ;;  %6009 = vmatpush3.bf16.msra.mxu1 %v6006_v10  ;;  %v6110_v58 = vpack.c.bf16 %v3637_v46, %v3636_v40  ;;  %v6114_v10 = vpack.c.bf16 %v3639_v62, %v3638_v53  ;;  %v3941_v40 = vld [vmem:[#allocation3 + $0x2d8] sm:$0xff] }
  0xb6   : > { %6011 = vmatprep.subr.bf16.mxu1 %v6010_v34  ;;  %v4092_v53 = vld [vmem:[#allocation3 + $0x2f8] sm:$0xff] }
  0xb7   : > { %5803 = vmatmul.mubr.msk.f32.vlgmr.msra.gmra.mrb[0].mxu0 %vm461_vm0, %v6811_v21 }
  0xb8   : > { %5566 = vmatmul.mubr.msk.f32.gmra.mrb[2].mxu1 %vm461_vm0, %v6755_v61  ;;  %6105 = vmatpush3.bf16.msra.mxu0 %v6102_v11  ;;  %v1981_v11 = vld [vmem:[#allocation3 + $0x128] sm:$0xff] }
  0xb9   : > { %5805 = vmatprep.mubr.msk.f32.mxu0 %vm461_vm0, %v6821_v28  ;;  %5568 = vmatprep.mubr.msk.f32.mxu1 %vm461_vm0, %v6762_v2 }
  0xba   : > { %6107 = vmatprep.subr.bf16.mxu0 %v6106_v12  ;;  %6013 = vmatpush3.bf16.msra.mxu1 %v6010_v34  ;;  %v2131_v34 = vld [vmem:[#allocation3 + $0x148] sm:$0xff] }
  0xbb   : > { %5806 = vmatmul.mubr.msk.f32.gmra.mrb[2].mxu0 %vm461_vm0, %v6827_v30  ;;  %6015 = vmatprep.subr.bf16.mxu1 %v6014_v55 }
  0xbc   : > { %5569 = vmatmul.mubr.msk.f32.gmra.mrb[4].mxu1 %vm461_vm0, %v6768_v4  ;;  %5808 = vmatprep.mubr.msk.f32.mxu0 %vm461_vm0, %v6839_v35 }
  0xbd   : > { %5571 = vmatprep.mubr.msk.f32.mxu1 %vm461_vm0, %v6780_v7  ;;  %6109 = vmatpush3.bf16.msra.mxu0 %v6106_v12  ;;  %v3938_v12 = vld [vmem:[#allocation3 + $0x2c0] sm:$0xff] }
  0xbe   : > { %6111 = vmatprep.subr.bf16.mxu0 %v6110_v58 }
  0xbf   : > { %5809 = vmatmul.mubr.msk.f32.gmra.mrb[4].mxu0 %vm461_vm0, %v6843_v37 }
  0xc0   : > { %5572 = vmatmul.mubr.msk.f32.gmra.mrb[6].mxu1 %vm461_vm0, %v6968_v27  ;;  %5811 = vmatprep.mubr.msk.f32.mxu0 %vm461_vm0, %v6852_v41 }
  0xc1   : > { %5582 = vmatprep.mubr.msk.f32.mxu1 %vm461_vm0, %v6854_v42  ;;  %v1980_v42 = vld [vmem:[#allocation3 + $0x120] sm:$0xff] }
  0xc3   : > { %5812 = vmatmul.mubr.msk.f32.gmra.mrb[6].mxu0 %vm461_vm0, %v7048_v13 }
  0xc4   : > { %5583 = vmatmul.mubr.msk.f32.vlgmr.msra.gmra.mrb[0].mxu1 %vm461_vm0, %v6737_v54  ;;  %5822 = vmatprep.mubr.msk.f32.mxu0 %vm461_vm0, %v6866_v47  ;;  %v6022_v54 = vpack.c.bf16 %v1981_v11, %v1980_v42  ;;  %v4241_v42 = vld [vmem:[#allocation3 + $0x308] sm:$0xff] }
  0xc5   : > { %5585 = vmatprep.mubr.msk.f32.mxu1 %vm461_vm0, %v6745_v57  ;;  %6017 = vmatpush3.bf16.msra.mxu1 %v6014_v55  ;;  %v6118_v57 = vpack.c.bf16 %v3788_v22, %v3787_v16  ;;  %v2280_v55 = vld [vmem:[#allocation3 + $0x160] sm:$0xff] }
  0xc6   : > { %6019 = vmatprep.subr.bf16.mxu1 %v6018_v63  ;;  %v2271_v16 = vld [vmem:[#allocation2 + $0xe0] sm:$0xff] }
  0xc7   : > { %5823 = vmatmul.mubr.msk.f32.vlgmr.msra.gmra.mrb[0].mxu0 %vm461_vm0, %v6868_v48  ;;  %v4080_v22 = vld [vmem:[#allocation2 + $0x280] sm:$0xff] }
  0xc8   : > { %5586 = vmatmul.mubr.msk.f32.gmra.mrb[2].mxu1 %vm461_vm0, %v6749_v59  ;;  %6113 = vmatpush3.bf16.msra.mxu0 %v6110_v58  ;;  %v1982_v59 = vld [vmem:[#allocation3 + $0x130] sm:$0xff]  ;;  %v4089_v58 = vld [vmem:[#allocation3 + $0x2e0] sm:$0xff] }
  0xc9   : > { %5825 = vmatprep.mubr.msk.f32.mxu0 %vm461_vm0, %v6876_v56  ;;  %5588 = vmatprep.mubr.msk.f32.mxu1 %vm461_vm0, %v6760_v1  ;;  %v1983_v1 = vld [vmem:[#allocation3 + $0x138] sm:$0xff] }
  0xca   : > { %6115 = vmatprep.subr.bf16.mxu0 %v6114_v10  ;;  %6021 = vmatpush3.bf16.msra.mxu1 %v6018_v63  ;;  %v6026_v26 = vpack.c.bf16 %v1983_v1, %v1982_v59  ;;  %v3930_v63 = vld [vmem:[#allocation2 + $0x1d0] sm:$0xff]  ;;  %v4082_v1 = vld [vmem:[#allocation2 + $0x2a0] sm:$0xff] }
  0xcb   : > { %5826 = vmatmul.mubr.msk.f32.gmra.mrb[2].mxu0 %vm461_vm0, %v6880_v60  ;;  %6023 = vmatprep.subr.bf16.mxu1 %v6022_v54  ;;  %v2274_v59 = vld [vmem:[#allocation2 + $0x110] sm:$0xff] }
  0xcc   : > { %5589 = vmatmul.mubr.msk.f32.gmra.mrb[4].mxu1 %vm461_vm0, %v6766_v3  ;;  %5828 = vmatprep.mubr.msk.f32.mxu0 %vm461_vm0, %v6890_v5  ;;  %v7082_v3 = vld [vmem:[#allocation2 + $0x3a0] sm:$0xff] }
  0xcd   : > { %5591 = vmatprep.mubr.msk.f32.mxu1 %vm461_vm0, %v6778_v6  ;;  %6117 = vmatpush3.bf16.msra.mxu0 %v6114_v10  ;;  %v3789_v6 = vld [vmem:[#allocation3 + $0x2b0] sm:$0xff]  ;;  %v6138_v10 = vpack.c.bf16 %v4092_v53, %v4091_v50 }
  0xce   : > { %6119 = vmatprep.subr.bf16.mxu0 %v6118_v57 }
  0xcf   : > { %5829 = vmatmul.mubr.msk.f32.gmra.mrb[4].mxu0 %vm461_vm0, %v6892_v9 }
  0xd0   : > { %5592 = vmatmul.mubr.msk.f32.gmra.mrb[6].mxu1 %vm461_vm0, %v6782_v8  ;;  %5831 = vmatprep.mubr.msk.f32.mxu0 %vm461_vm0, %v6901_v17  ;;  %v6122_v8 = vpack.c.bf16 %v3790_v25, %v3789_v6  ;;  %v2275_v6 = vld [vmem:[#allocation2 + $0x120] sm:$0xff]  ;;  %v2276_v25 = vld [vmem:[#allocation2 + $0x130] sm:$0xff] }
  0xd1   : > { %5602 = vmatprep.mubr.msk.f32.mxu1 %vm461_vm0, %v6903_v18  ;;  %v2130_v18 = vld [vmem:[#allocation3 + $0x140] sm:$0xff] }
  0xd3   : > { %5832 = vmatmul.mubr.msk.f32.gmra.mrb[6].mxu0 %vm461_vm0, %v7082_v3 }
  0xd4   : > { %5603 = vmatmul.mubr.msk.f32.vlgmr.msra.gmra.mrb[0].mxu1 %vm461_vm0, %v6795_v14  ;;  %5842 = vmatprep.mubr.msk.f32.mxu0 %vm461_vm0, %v6813_v23  ;;  %v6030_v14 = vpack.c.bf16 %v2131_v34, %v2130_v18 }
  0xd5   : > { %5605 = vmatprep.mubr.msk.f32.mxu1 %vm461_vm0, %v6807_v19  ;;  %6025 = vmatpush3.bf16.msra.mxu1 %v6022_v54  ;;  %v6126_v19 = vpack.c.bf16 %v3939_v31, %v3938_v12  ;;  %v2273_v54 = vld [vmem:[#allocation2 + $0x100] sm:$0xff] }
  0xd6   : > { %6027 = vmatprep.subr.bf16.mxu1 %v6026_v26  ;;  %v5118_v31 = vld [vmem:[%s7343_s4] ss:$0 sm:$0xff] }
  0xd7   : > { %5843 = vmatmul.mubr.msk.f32.vlgmr.msra.gmra.mrb[0].mxu0 %vm461_vm0, %v6823_v29 }
  0xd8   : > { %5606 = vmatmul.mubr.msk.f32.gmra.mrb[2].mxu1 %vm461_vm0, %v6811_v21  ;;  %6121 = vmatpush3.bf16.msra.mxu0 %v6118_v57  ;;  %v2132_v21 = vld [vmem:[#allocation3 + $0x150] sm:$0xff] }
  0xd9   : > { %5845 = vmatprep.mubr.msk.f32.mxu0 %vm461_vm0, %v6829_v32  ;;  %5608 = vmatprep.mubr.msk.f32.mxu1 %vm461_vm0, %v6821_v28  ;;  %v2133_v28 = vld [vmem:[#allocation3 + $0x158] sm:$0xff]  ;;  %v4242_v57 = vld [vmem:[#allocation3 + $0x310] sm:$0xff] }
  0xda   : > { %6123 = vmatprep.subr.bf16.mxu0 %v6122_v8  ;;  %6029 = vmatpush3.bf16.msra.mxu1 %v6026_v26  ;;  %v6034_v46 = vpack.c.bf16 %v2133_v28, %v2132_v21  ;;  %v4087_v26 = vld [vmem:[#allocation2 + $0x2f0] sm:$0xff] }
  0xdb   : > { %5846 = vmatmul.mubr.msk.f32.gmra.mrb[2].mxu0 %vm461_vm0, %v6841_v36  ;;  %6031 = vmatprep.subr.bf16.mxu1 %v6030_v14 }
  0xdc   : > { %5609 = vmatmul.mubr.msk.f32.gmra.mrb[4].mxu1 %vm461_vm0, %v6827_v30  ;;  %5848 = vmatprep.mubr.msk.f32.mxu0 %vm461_vm0, %v6929_v44  ;;  %v3634_v30 = vld [vmem:[#allocation2 + $0xb0] sm:$0xff] }
  0xdd   : > { %5611 = vmatprep.mubr.msk.f32.mxu1 %vm461_vm0, %v6839_v35  ;;  %6125 = vmatpush3.bf16.msra.mxu0 %v6122_v8 }
  0xde   : > { %6127 = vmatprep.subr.bf16.mxu0 %v6126_v19 }
  0xdf   : > { %5849 = vmatmul.mubr.msk.f32.gmra.mrb[4].mxu0 %vm461_vm0, %v6931_v45 }
  0xe0   : > { %5612 = vmatmul.mubr.msk.f32.gmra.mrb[6].mxu1 %vm461_vm0, %v6843_v37  ;;  %5851 = vmatprep.mubr.msk.f32.mxu0 %vm461_vm0, %v6940_v51  ;;  %v6130_v51 = vpack.c.bf16 %v3941_v40, %v3940_v38 }
  0xe1   : > { %5622 = vmatprep.mubr.msk.f32.mxu1 %vm461_vm0, %v6942_v52  ;;  %v2281_v52 = vld [vmem:[#allocation3 + $0x168] sm:$0xff] }
  0xe3   : > { %5852 = vmatmul.mubr.msk.f32.gmra.mrb[6].mxu0 %vm461_vm0, %v3634_v30 }
  0xe4   : > { %5623 = vmatmul.mubr.msk.f32.vlgmr.msra.gmra.mrb[0].mxu1 %vm461_vm0, %v6856_v43  ;;  %5862 = vmatprep.mubr.msk.f32.mxu0 %vm461_vm0, %v6755_v61  ;;  %v6038_v61 = vpack.c.bf16 %v2281_v52, %v2280_v55  ;;  %v6134_v43 = vpack.c.bf16 %v4090_v49, %v4089_v58 }
  0xe5   : > { %5625 = vmatprep.mubr.msk.f32.mxu1 %vm461_vm0, %v6866_v47  ;;  %6033 = vmatpush3.bf16.msra.mxu1 %v6030_v14  ;;  %v3929_v47 = vld [vmem:[#allocation2 + $0x1c0] sm:$0xff] }
  0xe6   : > { %6035 = vmatprep.subr.bf16.mxu1 %v6034_v46 }
  0xe7   : > { %5863 = vmatmul.mubr.msk.f32.vlgmr.msra.gmra.mrb[0].mxu0 %vm461_vm0, %v6762_v2  ;;  %v2282_v2 = vld [vmem:[#allocation3 + $0x170] sm:$0xff] }
  0xe8   : > { %5626 = vmatmul.mubr.msk.f32.gmra.mrb[2].mxu1 %vm461_vm0, %v6868_v48  ;;  %6129 = vmatpush3.bf16.msra.mxu0 %v6126_v19 }
  0xe9   : > { %5865 = vmatprep.mubr.msk.f32.mxu0 %vm461_vm0, %v6768_v4  ;;  %5628 = vmatprep.mubr.msk.f32.mxu1 %vm461_vm0, %v6876_v56  ;;  %v2283_v4 = vld [vmem:[#allocation3 + $0x178] sm:$0xff] }
  0xea   : > { %6131 = vmatprep.subr.bf16.mxu0 %v6130_v51  ;;  %6037 = vmatpush3.bf16.msra.mxu1 %v6034_v46  ;;  %v6042_v62 = vpack.c.bf16 %v2283_v4, %v2282_v2 }
  0xeb   : > { %5866 = vmatmul.mubr.msk.f32.gmra.mrb[2].mxu0 %vm461_vm0, %v6780_v7  ;;  %6039 = vmatprep.subr.bf16.mxu1 %v6038_v61  ;;  %v3785_v7 = vld [vmem:[#allocation2 + $0x170] sm:$0xff] }
  0xec   : > { %5629 = vmatmul.mubr.msk.f32.gmra.mrb[4].mxu1 %vm461_vm0, %v6880_v60  ;;  %5868 = vmatprep.mubr.msk.f32.mxu0 %vm461_vm0, %v6968_v27 }
  0xed   : > { %5631 = vmatprep.mubr.msk.f32.mxu1 %vm461_vm0, %v6890_v5  ;;  %6133 = vmatpush3.bf16.msra.mxu0 %v6130_v51 }
  0xee   : > { %6135 = vmatprep.subr.bf16.mxu0 %v6134_v43 }
  0xef   : > { %5869 = vmatmul.mubr.msk.f32.gmra.mrb[4].mxu0 %vm461_vm0, %v6970_v33 }
  0xf0   : > { %5632 = vmatmul.mubr.msk.f32.gmra.mrb[6].mxu1 %vm461_vm0, %v6892_v9  ;;  %5871 = vmatprep.mubr.msk.f32.mxu0 %vm461_vm0, %v6980_v39  ;;  %v3931_v39 = vld [vmem:[#allocation2 + $0x1e0] sm:$0xff] }
  0xf1   : > { %5642 = vmatprep.mubr.msk.f32.mxu1 %vm461_vm0, %v6797_v15  ;;  %v4240_v15 = vld [vmem:[#allocation3 + $0x300] sm:$0xff] }
  0xf2   : > { %v6142_v11 = vpack.c.bf16 %v4241_v42, %v4240_v15 }
  0xf3   : > { %5872 = vmatmul.mubr.msk.f32.gmra.mrb[6].mxu0 %vm461_vm0, %v3785_v7 }
  0xf4   : > { %5643 = vmatmul.mubr.msk.f32.vlgmr.msra.gmra.mrb[0].mxu1 %vm461_vm0, %v6809_v20  ;;  %5882 = vmatprep.mubr.msk.f32.mxu0 %vm461_vm0, %v3929_v47  ;;  %v3932_v20 = vld [vmem:[#allocation2 + $0x1f0] sm:$0xff] }
  0xf5   : > { %5645 = vmatprep.mubr.msk.f32.mxu1 %vm461_vm0, %v6813_v23  ;;  %6041 = vmatpush3.bf16.msra.mxu1 %v6038_v61  ;;  %v3933_v23 = vld [vmem:[#allocation2 + $0x200] sm:$0xff] }
  0xf6   : > { %6043 = vmatprep.subr.bf16.mxu1 %v6042_v62 }
  0xf7   : > { %5883 = vmatmul.mubr.msk.f32.vlgmr.msra.gmra.mrb[0].mxu0 %vm461_vm0, %v3930_v63 }
  0xf8   : > { %5646 = vmatmul.mubr.msk.f32.gmra.mrb[2].mxu1 %vm461_vm0, %v6823_v29  ;;  %6137 = vmatpush3.bf16.msra.mxu0 %v6134_v43  ;;  %v3934_v29 = vld [vmem:[#allocation2 + $0x210] sm:$0xff] }
  0xf9   : > { %5885 = vmatprep.mubr.msk.f32.mxu0 %vm461_vm0, %v3931_v39  ;;  %5648 = vmatprep.mubr.msk.f32.mxu1 %vm461_vm0, %v6829_v32  ;;  %v3936_v32 = vld [vmem:[#allocation2 + $0x230] sm:$0xff] }
  0xfa   : > { %6139 = vmatprep.subr.bf16.mxu0 %v6138_v10  ;;  %6045 = vmatpush3.bf16.msra.mxu1 %v6042_v62 }
  0xfb   : > { %5886 = vmatmul.mubr.msk.f32.gmra.mrb[2].mxu0 %vm461_vm0, %v3932_v20 }
  0xfc   : > { %5649 = vmatmul.mubr.msk.f32.gmra.mrb[4].mxu1 %vm461_vm0, %v6841_v36  ;;  %5888 = vmatprep.mubr.msk.f32.mxu0 %vm461_vm0, %v3933_v23  ;;  %v2272_v36 = vld [vmem:[#allocation2 + $0xf0] sm:$0xff] }
  0xfd   : > { %5651 = vmatprep.mubr.msk.f32.mxu1 %vm461_vm0, %v6929_v44  ;;  %6141 = vmatpush3.bf16.msra.mxu0 %v6138_v10  ;;  %v4243_v44 = vld [vmem:[#allocation3 + $0x318] sm:$0xff] }
  0xfe   : > { %6143 = vmatprep.subr.bf16.mxu0 %v6142_v11 }
  0xff   : > { %5889 = vmatmul.mubr.msk.f32.gmra.mrb[4].mxu0 %vm461_vm0, %v3934_v29 }
 0x100   : > { %5652 = vmatmul.mubr.msk.f32.gmra.mrb[6].mxu1 %vm461_vm0, %v6931_v45  ;;  %5891 = vmatprep.mubr.msk.f32.mxu0 %vm461_vm0, %v7014_v24  ;;  %v4081_v45 = vld [vmem:[#allocation2 + $0x290] sm:$0xff]  ;;  %v6146_v24 = vpack.c.bf16 %v4243_v44, %v4242_v57 }
 0x101   : > { %5662 = vmatprep.mubr.msk.f32.mxu1 %vm461_vm0, %v2271_v16 }
 0x103   : > { %5892 = vmatmul.mubr.msk.f32.gmra.mrb[6].mxu0 %vm461_vm0, %v3936_v32 }
 0x104   : > { %5663 = vmatmul.mubr.msk.f32.vlgmr.msra.gmra.mrb[0].mxu1 %vm461_vm0, %v2272_v36  ;;  %5902 = vmatprep.mubr.msk.f32.mxu0 %vm461_vm0, %v4080_v22 }
 0x105   : > { %5665 = vmatprep.mubr.msk.f32.mxu1 %vm461_vm0, %v2273_v54 }
 0x107   : > { %5903 = vmatmul.mubr.msk.f32.vlgmr.msra.gmra.mrb[0].mxu0 %vm461_vm0, %v4081_v45 }
 0x108   : > { %5666 = vmatmul.mubr.msk.f32.gmra.mrb[2].mxu1 %vm461_vm0, %v2274_v59  ;;  %6145 = vmatpush3.bf16.msra.mxu0 %v6142_v11 }
 0x109   : > { %5905 = vmatprep.mubr.msk.f32.mxu0 %vm461_vm0, %v4082_v1  ;;  %5668 = vmatprep.mubr.msk.f32.mxu1 %vm461_vm0, %v2275_v6 }
 0x10a   : > { %6147 = vmatprep.subr.bf16.mxu0 %v6146_v24 }
 0x10b   : > { %5906 = vmatmul.mubr.msk.f32.gmra.mrb[2].mxu0 %vm461_vm0, %v6839_v35  ;;  %v4238_v35 = vld [vmem:[#allocation2 + $0x3b0] sm:$0xff] }
 0x10c   : > { %5669 = vmatmul.mubr.msk.f32.gmra.mrb[4].mxu1 %vm461_vm0, %v2276_v25  ;;  %5908 = vmatprep.mubr.msk.f32.mxu0 %vm461_vm0, %v6843_v37  ;;  %v4428_v37 = vld [vmem:[%s7344_s5] sm:$0xff] }
 0x10d   : > { %5671 = vmatprep.mubr.msk.f32.mxu1 %vm461_vm0, %v6968_v27  ;;  %6149 = vmatpush3.bf16.msra.mxu0 %v6146_v24 }
 0x10f   : > { %5909 = vmatmul.mubr.msk.f32.gmra.mrb[4].mxu0 %vm461_vm0, %v6852_v41  ;;  %v4429_v41 = vld [vmem:[%s7344_s5 + $0x8] sm:$0xff] }
 0x110   : > { %5672 = vmatmul.mubr.msk.f32.gmra.mrb[6].mxu1 %vm461_vm0, %v6970_v33  ;;  %5911 = vmatprep.mubr.msk.f32.mxu0 %vm461_vm0, %v7048_v13 }
 0x111   : > { %5942 = vmatprep.mubr.msk.f32.mxu1 %vm6423_vm4, %v6421_v0 }
 0x113   : > { %5912 = vmatmul.mubr.msk.f32.gmra.mrb[6].mxu0 %vm461_vm0, %v4087_v26  ;;  %v4424_v26 = vlaneseq }
 0x114   : > { %5922 = vmatprep.mubr.msk.f32.mxu0 %vm461_vm0, %v6868_v48  ;;  %v4430_v48 = vld [vmem:[%s7344_s5 + $0x10] sm:$0xff] }
 0x117   : > { %5923 = vmatmul.mubr.msk.f32.vlgmr.msra.gmra.mrb[0].mxu0 %vm461_vm0, %v6876_v56  ;;  %v6422_v56 = vmov 0.0|0.0  }
 0x118   : > { %5925 = vmatprep.mubr.msk.f32.mxu0 %vm461_vm0, %v6880_v60  ;;  %6150 = vmatprep.subr.bf16.mxu1 %v6422_v56  ;;  %v6151_v60 = vpack.c.bf16 %v4429_v41, %v4428_v37 }
 0x11a   : > { %6152 = vmatpush3.bf16.msra.mxu1 %v6151_v60 }
 0x11b   : > { %5926 = vmatmul.mubr.msk.f32.gmra.mrb[2].mxu0 %vm461_vm0, %v6890_v5  ;;  %v4431_v5 = vld [vmem:[%s7344_s5 + $0x18] sm:$0xff]  ;;  %6153 = vmatprep.subr.bf16.mxu1 %v6422_v56 }
 0x11c   : > { %5928 = vmatprep.mubr.msk.f32.mxu0 %vm461_vm0, %v6892_v9  ;;  %v6154_v9 = vpack.c.bf16 %v4431_v5, %v4430_v48  ;;  %v4513_v5 = vld [vmem:[%s7346_s7] sm:$0xff] }
 0x11e   : > { %6155 = vmatpush3.bf16.msra.mxu1 %v6154_v9  ;;  %v5119_v9 = vld [vmem:[%s7345_s6] ss:$0 sm:$0xff] }
 0x11f   : > { %5929 = vmatmul.mubr.msk.f32.gmra.mrb[4].mxu0 %vm461_vm0, %v6901_v17  ;;  %5945 = vmatprep.subr.mxu1 %v6421_v0 }
 0x120   : > { %5931 = vmatprep.mubr.msk.f32.mxu0 %vm461_vm0, %v7082_v3 }
 0x123   : > { %5932 = vmatmul.mubr.msk.f32.gmra.mrb[6].mxu0 %vm461_vm0, %v4238_v35  ;;  %v4425_v35 = vshrl.u32 %v4424_v26, 7 }
 0x125   : > { %v4426_v41 = vsub.s32 0, %v4425_v35 }
 0x1d7   : > { %v5664_v17 = vpop.f32.mrb[0].mxu1 }
 0x1d8   : > { %v2374_v27 = vpop.f32.mrb[1].mxu1 }
 0x1db   : > { %v5667_v33 = vpop.f32.mrb[2].mxu1 }
 0x1dc   : > { %v2384_v13 = vpop.f32.mrb[3].mxu1 }
 0x1df   : > { %v5670_v3 = vpop.f32.mrb[4].mxu1 }
 0x1e0   : > { %v2394_v8 = vpop.f32.mrb[5].mxu1 }
 0x1e3   : > { %v5673_v18 = vpop.f32.mrb[6].mxu1 }
 0x1e4   : > { %v2404_v34 = vpop.f32.mrb[7].mxu1 }
 0x1ea   : > { %v5924_v12 = vpop.f32.mrb[0].mxu0 }
 0x1eb   : > { %v6156_v14 = vadd.f32 %v5924_v12, %v5664_v17  ;;  %v4334_v19 = vpop.f32.mrb[1].mxu0 }
 0x1ec   : > { %v6157_v21 = vadd.f32 %v4334_v19, %v2374_v27 }
 0x1ed   : > { %v7224_v28 = vadd.f32 %v6156_v14, %v5118_v31 }
 0x1ee   : > { %v7226_v30 = vadd.f32 %v6157_v21, %v5118_v31  ;;  %v5927_v38 = vpop.f32.mrb[2].mxu0 }
 0x1ef   : > { %v6158_v40 = vadd.f32 %v5927_v38, %v5667_v33  ;;  %v4344_v46 = vpop.f32.mrb[3].mxu0  ;;  %v4398_v51 = vsel %vm4396_vm3, %v7224_v28, 0.0 }
 0x1f0   : > { %v4397_v55 = vsel %vm4396_vm3, %v7226_v30, 0.0  ;;  %v6159_v52 = vadd.f32 %v4344_v46, %v2384_v13 }
 0x1f1   : > { %v7232_v58 = vadd.f32 %v6158_v40, %v5118_v31  ;;  %v4399_v43 = vadd.f32 %v4398_v51, %v4397_v55 }
 0x1f2   : > { %v7234_v49 = vadd.f32 %v6159_v52, %v5118_v31  ;;  %v5930_v61 = vpop.f32.mrb[4].mxu0 }
 0x1f3   : > { %v6160_v2 = vadd.f32 %v5930_v61, %v5670_v3  ;;  %v4354_v4 = vpop.f32.mrb[5].mxu0  ;;  %v4402_v53 = vsel %vm4396_vm3, %v7232_v58, 0.0  ;;  %v5121_v3 = vld [vmem:[%s7347_s8] ss:$0 sm:$0xff] }
 0x1f4   : > { %v4400_v7 = vsel %vm4396_vm3, %v7234_v49, 0.0  ;;  %v6161_v47 = vadd.f32 %v4354_v4, %v2394_v8 }
 0x1f5   : > { %v4401_v50 = vadd.f32 %v4400_v7, %v4399_v43  ;;  %v7240_v62 = vadd.f32 %v6160_v2, %v5118_v31 }
 0x1f6   : > { %v7242_v63 = vadd.f32 %v6161_v47, %v5118_v31  ;;  %v5933_v39 = vpop.f32.mrb[6].mxu0 }
 0x1f7   : > { %v4403_v10 = vadd.f32 %v4402_v53, %v4401_v50  ;;  %v6162_v15 = vadd.f32 %v5933_v39, %v5673_v18  ;;  %v4364_v42 = vpop.f32.mrb[7].mxu0  ;;  %v4406_v29 = vsel %vm4396_vm3, %v7240_v62, 0.0 }
 0x1f8   : > { %v4404_v20 = vsel %vm4396_vm3, %v7242_v63, 0.0  ;;  %v6163_v23 = vadd.f32 %v4364_v42, %v2404_v34 }
 0x1f9   : > { %v4405_v11 = vadd.f32 %v4404_v20, %v4403_v10  ;;  %v7248_v16 = vadd.f32 %v6162_v15, %v5118_v31 }
 0x1fa   : > { %v7250_v32 = vadd.f32 %v6163_v23, %v5118_v31 }
 0x1fb   : > { %v4407_v36 = vadd.f32 %v4406_v29, %v4405_v11  ;;  %v4410_v57 = vsel %vm4396_vm3, %v7248_v16, 0.0 }
 0x1fc   : > { %v4408_v22 = vsel %vm4396_vm3, %v7250_v32, 0.0 }
 0x1fd   : > { %v4409_v54 = vadd.f32 %v4408_v22, %v4407_v36 }
 0x1ff   : > { %v4411_v44 = vadd.f32 %v4410_v57, %v4409_v54 }
 0x201   : > { %v4412_v45 = vrot.slane %v4411_v44, 4 }
 0x203   : > { %v4413_v59 = vadd.f32 %v4412_v45, %v4411_v44 }
 0x205   : > { %v4414_v1 = vrot.slane %v4413_v59, 2 }
 0x207   : > { %v4415_v24 = vadd.f32 %v4414_v1, %v4413_v59 }
 0x209   : > { %v4416_v6 = vrot.slane %v4415_v24, 1 }
 0x20b   : > { %v4417_v25 = vadd.f32 %v4416_v6, %v4415_v24 }
 0x20d   : > { %4419 = vrot.lane.b32.xlu0 %v4417_v25, %s6424_s20 }
 0x27f   : > { %v4420_v37 = vpop.permute.xlu0 %4419 }
 0x280   : > { %v4422_v48 = vadd.f32 %v4420_v37, %v4417_v25 }
 0x282   : > { %v4423_v56 = vmul.f32 0.015625, %v4422_v48 }
 0x284   : > { %v4427_v60 = vrot.slane %v4423_v56, %v4426_v41 }
 0x286   : > { %5943 = vmatmul.mubr.msk.f32.vlgmr.msra.gmra.mrb[8].mxu1 %vm461_vm0, %v4427_v60 }
 0x287   : > { %5947 = vmatprep.mubr.msk.f32.mxu1 %vm6423_vm4, %v6421_v0  ;;  %5946 = vmatpush3.msra.mxu1 %v4513_v5 }
 0x359   : > { %v4508_v17 = vpop.f32.mrb[8].mxu1 }
 0x35a   : > { %v4509_v27 = vadd.f32 %v5119_v9, %v4508_v17  ;;  %v5944_v33 = vpop.f32.mrb[9].mxu1 }
 0x35c   : > { %v4512_v13 = vmax.f32 %v4509_v27, 0.0 }
 0x35e   : > { %5948 = vmatmul.mubr.msk.f32.vlgmr.msra.gmra.mrb[10].mxu1 %vm4521_vm5, %v4512_v13 }
 0x431   : > { %v4591_v0 = vpop.f32.mrb[10].mxu1 }
 0x432   : > { %v4592_v8 = vadd.f32 %v5121_v3, %v4591_v0  ;;  %v5949_v18 = vpop.f32.mrb[11].mxu1 }
 0x434   : > { %v4595_v34 = vsel %vm4396_vm3, %v4592_v8, -inf }
 0x435   : > { %4596 = vmax.xlane.f32.xlu0 %v4595_v34 }
 0x4c2   : > { %v4597_v12 = vpop.xlane.xlu0 %4596 }
 0x4c3   : > { %v4598_v31 = vsub.f32 %v4592_v8, %v4597_v12 }
 0x4c5   : > { %v4599_v14 = vmul.f32 1.442695, %v4598_v31 }
 0x4c7   : > { %6374 = vpow2.f32 %v4599_v14 }
 0x4d1   : > { %v6375_v19 = vpop.eup %6374 }
 0x4d2   : > { %v4601_v21 = vsel %vm4396_vm3, %v6375_v19, 0.0 }
 0x4d3   : > { %4602 = vadd.xlane.f32.xlu1 %v4601_v21 }
 0x560   : > { %v4603_v38 = vpop.xlane.xlu1 %4602 }
 0x561   : > { %6376 = vrcp.f32 %v4603_v38 }
 0x56b   : > { %v6377_v40 = vpop.eup %6376 }
 0x56c   : > { %v4605_v46 = vmul.f32 %v6377_v40, %v6375_v19 }
 0x56e   : > { %v4609_v51 = vrot.slane %v4605_v46, %v4426_v41 }
 0x570   : > { %4622 = vrot.lane.b32.xlu1 %v4609_v51, %s6424_s20 }
 0x574   : > { %4611 = vrot.lane.b32.xlu1 %v4609_v51, %s6425_s27 }
 0x5e2   : > { %v4623_v55 = vpop.permute.xlu1 %4622 }
 0x5e3   : > { %v4628_v52 = vmul.f32 %v4623_v55, %v7232_v58  ;;  %v4625_v61 = vmul.f32 %v4623_v55, %v7226_v30  ;;  %v4626_v43 = vmul.f32 %v4623_v55, %v7224_v28  ;;  %v4627_v2 = vmul.f32 %v4623_v55, %v7234_v49 }
 0x5e4   : > { %v4629_v4 = vmul.f32 %v4623_v55, %v7242_v63  ;;  %v4630_v7 = vmul.f32 %v4623_v55, %v7240_v62  ;;  %v4631_v47 = vmul.f32 %v4623_v55, %v7250_v32  ;;  %v4632_v50 = vmul.f32 %v4623_v55, %v7248_v16 }
 0x5e5   : > { %4647 = vrot.lane.b32.xlu0 %v4628_v52, %s6425_s27  ;;  %4641 = vrot.lane.b32.xlu1 %v4625_v61, %s6425_s27 }
 0x5e6   : > { %v4612_v53 = vpop.permute.xlu1 %4611 }
 0x5e7   : > { %v4614_v39 = vmul.f32 %v4612_v53, %v7226_v30  ;;  %v4615_v42 = vmul.f32 %v4612_v53, %v7224_v28  ;;  %v4617_v29 = vmul.f32 %v4612_v53, %v7232_v58  ;;  %v4616_v22 = vmul.f32 %v4612_v53, %v7234_v49 }
 0x5e8   : > { %v4618_v59 = vmul.f32 %v4612_v53, %v7242_v63  ;;  %v4619_v48 = vmul.f32 %v4612_v53, %v7240_v62  ;;  %v4620_v0 = vmul.f32 %v4612_v53, %v7250_v32  ;;  %v4621_v38 = vmul.f32 %v4612_v53, %v7248_v16 }
 0x5e9   : > { %4643 = vrot.lane.b32.xlu1 %v4626_v43, %s6425_s27 }
 0x5ed   : > { %4645 = vrot.lane.b32.xlu1 %v4627_v2, %s6425_s27 }
 0x5f1   : > { %4649 = vrot.lane.b32.xlu1 %v4629_v4, %s6425_s27 }
 0x5f5   : > { %4651 = vrot.lane.b32.xlu1 %v4630_v7, %s6425_s27 }
 0x5f9   : > { %4653 = vrot.lane.b32.xlu1 %v4631_v47, %s6425_s27 }
 0x5fd   : > { %4655 = vrot.lane.b32.xlu1 %v4632_v50, %s6425_s27 }
 0x657   : > { %v4642_v10 = vpop.permute.xlu1 %4641  ;;  %v4648_v11 = vpop.permute.xlu0 %4647 }
 0x658   : > { %v4665_v15 = vadd.f32 %v4642_v10, %v4614_v39  ;;  %v4668_v57 = vadd.f32 %v4648_v11, %v4617_v29 }
 0x65a   : > { %4681 = vrot.lane.b32.xlu1 %v4665_v15, %s6424_s20  ;;  %v4735_v30 = vmul.f32 %v4665_v15, %v4665_v15  ;;  %v4714_v28 = vsel %vm4713_vm6, %v4665_v15, 0.0  ;;  %v4738_v41 = vmul.f32 %v4668_v57, %v4668_v57  ;;  %v4719_v5 = vsel %vm4713_vm6, %v4668_v57, 0.0 }
 0x65b   : > { %v4644_v20 = vpop.permute.xlu1 %4643 }
 0x65c   : > { %v4666_v23 = vadd.f32 %v4644_v20, %v4615_v42  ;;  %v4743_v25 = vsel %vm4713_vm6, %v4735_v30, 0.0  ;;  %v4748_v33 = vsel %vm4713_vm6, %v4738_v41, 0.0 }
 0x65e   : > { %v4736_v36 = vmul.f32 %v4666_v23, %v4666_v23  ;;  %4683 = vrot.lane.b32.xlu0 %v4666_v23, %s6424_s20  ;;  %v4715_v44 = vsel %vm4713_vm6, %v4666_v23, 0.0 }
 0x65f   : > { %v4646_v54 = vpop.permute.xlu1 %4645  ;;  %v4716_v49 = vadd.f32 %v4715_v44, %v4714_v28 }
 0x660   : > { %v4667_v45 = vadd.f32 %v4646_v54, %v4616_v22  ;;  %v4744_v1 = vsel %vm4713_vm6, %v4736_v36, 0.0 }
 0x661   : > { %v4745_v37 = vadd.f32 %v4744_v1, %v4743_v25 }
 0x662   : > { %v4717_v58 = vsel %vm4713_vm6, %v4667_v45, 0.0  ;;  %v4737_v24 = vmul.f32 %v4667_v45, %v4667_v45  ;;  %4687 = vrot.lane.b32.xlu0 %v4668_v57, %s6424_s20  ;;  %4685 = vrot.lane.b32.xlu1 %v4667_v45, %s6424_s20 }
 0x663   : > { %v4650_v6 = vpop.permute.xlu1 %4649  ;;  %v4718_v63 = vadd.f32 %v4717_v58, %v4716_v49 }
 0x664   : > { %v4746_v26 = vsel %vm4713_vm6, %v4737_v24, 0.0  ;;  %v4669_v35 = vadd.f32 %v4650_v6, %v4618_v59 }
 0x665   : > { %v4747_v56 = vadd.f32 %v4746_v26, %v4745_v37  ;;  %v4720_v27 = vadd.f32 %v4719_v5, %v4718_v63 }
 0x666   : > { %4689 = vrot.lane.b32.xlu1 %v4669_v35, %s6424_s20  ;;  %v4739_v9 = vmul.f32 %v4669_v35, %v4669_v35  ;;  %v4721_v13 = vsel %vm4713_vm6, %v4669_v35, 0.0 }
 0x667   : > { %v4652_v60 = vpop.permute.xlu1 %4651  ;;  %v4749_v8 = vadd.f32 %v4748_v33, %v4747_v56  ;;  %v4722_v31 = vadd.f32 %v4721_v13, %v4720_v27 }
 0x668   : > { %v4670_v17 = vadd.f32 %v4652_v60, %v4619_v48  ;;  %v4750_v62 = vsel %vm4713_vm6, %v4739_v9, 0.0 }
 0x669   : > { %v4751_v40 = vadd.f32 %v4750_v62, %v4749_v8 }
 0x66a   : > { %v4740_v3 = vmul.f32 %v4670_v17, %v4670_v17  ;;  %4691 = vrot.lane.b32.xlu0 %v4670_v17, %s6424_s20  ;;  %v4723_v34 = vsel %vm4713_vm6, %v4670_v17, 0.0 }
 0x66b   : > { %v4654_v18 = vpop.permute.xlu1 %4653  ;;  %v4724_v46 = vadd.f32 %v4723_v34, %v4722_v31 }
 0x66c   : > { %v4671_v12 = vadd.f32 %v4654_v18, %v4620_v0  ;;  %v4752_v14 = vsel %vm4713_vm6, %v4740_v3, 0.0 }
 0x66d   : > { %v4753_v52 = vadd.f32 %v4752_v14, %v4751_v40 }
 0x66e   : > { %v4725_v19 = vsel %vm4713_vm6, %v4671_v12, 0.0  ;;  %v4741_v21 = vmul.f32 %v4671_v12, %v4671_v12  ;;  %4693 = vrot.lane.b32.xlu1 %v4671_v12, %s6424_s20 }
 0x66f   : > { %v4656_v32 = vpop.permute.xlu1 %4655  ;;  %v4726_v61 = vadd.f32 %v4725_v19, %v4724_v46 }
 0x670   : > { %v4754_v51 = vsel %vm4713_vm6, %v4741_v21, 0.0  ;;  %v4672_v55 = vadd.f32 %v4656_v32, %v4621_v38 }
 0x671   : > { %v4755_v4 = vadd.f32 %v4754_v51, %v4753_v52 }
 0x672   : > { %v4727_v43 = vsel %vm4713_vm6, %v4672_v55, 0.0  ;;  %v4742_v2 = vmul.f32 %v4672_v55, %v4672_v55  ;;  %4695 = vrot.lane.b32.xlu0 %v4672_v55, %s6424_s20 }
 0x673   : > { %v4728_v7 = vadd.f32 %v4727_v43, %v4726_v61 }
 0x674   : > { %v4756_v47 = vsel %vm4713_vm6, %v4742_v2, 0.0 }
 0x675   : > { %v4729_v50 = vrot.slane %v4728_v7, 4  ;;  %v4757_v16 = vadd.f32 %v4756_v47, %v4755_v4 }
 0x677   : > { %v4730_v53 = vadd.f32 %v4729_v50, %v4728_v7  ;;  %v4758_v39 = vrot.slane %v4757_v16, 4 }
 0x679   : > { %v4731_v10 = vrot.slane %v4730_v53, 2  ;;  %v4759_v15 = vadd.f32 %v4758_v39, %v4757_v16 }
 0x67b   : > { %v4732_v42 = vadd.f32 %v4731_v10, %v4730_v53  ;;  %v4760_v20 = vrot.slane %v4759_v15, 2 }
 0x67d   : > { %v4733_v23 = vrot.slane %v4732_v42, 1  ;;  %v4761_v11 = vadd.f32 %v4760_v20, %v4759_v15 }
 0x67f   : > { %v4734_v29 = vadd.f32 %v4733_v23, %v4732_v42  ;;  %v4762_v36 = vrot.slane %v4761_v11, 1 }
 0x681   : > { %4765 = vrot.lane.b32.xlu1 %v4734_v29, %s6424_s20  ;;  %v4763_v22 = vadd.f32 %v4762_v36, %v4761_v11 }
 0x683   : > { %4770 = vrot.lane.b32.xlu0 %v4763_v22, %s6424_s20  ;;  %s422_s20 = scalar_lea.vmem %s7350_s11, %s4914_s16 }
 0x6cc   : > { %v4682_v54 = vpop.permute.xlu1 %4681 }
 0x6cd   : > { %4705 = vst.msk [vmem:[%s414_s30] sm:$0xff] %vm461_vm0, %v4682_v54 }
 0x6d0   : > { %v4684_v57 = vpop.permute.xlu0 %4683 }
 0x6d1   : > { %4706 = vst.msk [vmem:[%s414_s30 + $0x8] sm:$0xff] %vm461_vm0, %v4684_v57 }
 0x6d4   : > { %v4688_v30 = vpop.permute.xlu0 %4687  ;;  %v4686_v44 = vpop.permute.xlu1 %4685 }
 0x6d5   : > { %4708 = vst.msk [vmem:[%s414_s30 + $0x18] sm:$0xff] %vm461_vm0, %v4688_v30  ;;  %4707 = vst.msk [vmem:[%s414_s30 + $0x10] sm:$0xff] %vm461_vm0, %v4686_v44 }
 0x6d8   : > { %v4690_v45 = vpop.permute.xlu1 %4689 }
 0x6d9   : > { %4709 = vst.msk [vmem:[%s414_s30 + $0x20] sm:$0xff] %vm461_vm0, %v4690_v45 }
 0x6dc   : > { %v4692_v59 = vpop.permute.xlu0 %4691 }
 0x6dd   : > { %4710 = vst.msk [vmem:[%s414_s30 + $0x28] sm:$0xff] %vm461_vm0, %v4692_v59 }
 0x6e0   : > { %v4694_v28 = vpop.permute.xlu1 %4693 }
 0x6e1   : > { %4711 = vst.msk [vmem:[%s414_s30 + $0x30] sm:$0xff] %vm461_vm0, %v4694_v28 }
 0x6e4   : > { %v4696_v1 = vpop.permute.xlu0 %4695 }
 0x6e5   : > { %4712 = vst.msk [vmem:[%s414_s30 + $0x38] sm:$0xff] %vm461_vm0, %v4696_v1 }
 0x6f3   : > { %v4766_v58 = vpop.permute.xlu1 %4765 }
 0x6f4   : > { %4768 = vst.msk [vmem:[%s418_s14] sm:$0xff] %vm461_vm0, %v4766_v58 }
 0x6f5   : > { %v4771_v24 = vpop.permute.xlu0 %4770 }
 0x6f6   : > { %4773 = vst.msk [vmem:[%s422_s20] sm:$0xff] %vm461_vm0, %v4771_v24 }
 0x6f7 PF: > { %s23_s17 = sadd.s32 1, %s6416_s17  }
 0x6f8   : > { %p20_p3 = scmp.ge.s32.totalorder %s23_s17, 4  }
 0x6fa   :  { %22 = sbr.rel (!%p20_p3) target bundleno = 1 (0x1), region = 163 }
 0x701   :  { %4823 = vsyncpa [#allocation4], 1 }
 0x702   :  { %4825 = vsyncpa [#allocation4 + $0x1], 1 }

</bundles_post_ra>
